<compile_context>
chip_gen: v7x
topology: tpu7x:2x2x1
jax: 0.10.0
libtpu: 0.0.40
codegen_flags: <defaults>
</compile_context>

<pallas_src>
import jax
import jax.numpy as jnp
from jax import lax
from jax.experimental import pallas as pl
from jax.experimental.pallas import tpu as pltpu


def _round_up(n, m):
    return -(-n // m) * m


# ----------------------------- Pallas kernel ------------------------------ #

def _bilstm_attention_kernel(x_ref,       # (T, Bt, I)     f32
                             wih_ref,     # (I, 8*Hp)      bf16 [fwd i f g o | bwd i f g o]
                             whh_f_ref,   # (Hp, 4*Hp)     bf16
                             whh_b_ref,   # (Hp, 4*Hp)     bf16
                             bg_f_ref,    # (1, 4*Hp)      f32
                             bg_b_ref,    # (1, 4*Hp)      f32
                             watt_f_ref,  # (1, Hp)        f32
                             watt_b_ref,  # (1, Hp)        f32
                             wfc_f_ref,   # (Hp, C)        bf16
                             wfc_b_ref,   # (Hp, C)        bf16
                             bfc_ref,     # (1, C)         f32
                             out_ref,     # (Bt, C)        f32
                             xpf_ref,     # (T, Bt, 4*Hp)  bf16 scratch
                             xpb_ref,     # (T, Bt, 4*Hp)  bf16 scratch
                             hf_ref,      # (T, Bt, Hp)    f32  scratch
                             hb_ref):     # (T, Bt, Hp)    f32  scratch
    T, Bt, Hp = hf_ref.shape
    G = 4 * Hp
    f32, bf16 = jnp.float32, jnp.bfloat16

    # ---- prologue: hoisted input projection (one dense bf16 MXU matmul) ----
    # xpf[s] = x[s] @ Wih_f + b_f   (forward-gate preactivations)
    # xpb[s] = x[s] @ Wih_b + b_b   (backward-gate preactivations); the
    # backward recurrence at step s reads xpb[T-1-s], so no reversed /
    # duplicated copy of x and no zero weight blocks are needed.
    x2d = x_ref[...].reshape(T * Bt, x_ref.shape[-1]).astype(bf16)
    proj = jnp.dot(x2d, wih_ref[...], preferred_element_type=f32)
    proj = proj.reshape(T, Bt, 2 * G)
    xpf_ref[...] = (proj[:, :, :G] + bg_f_ref[...].reshape(1, 1, G)).astype(bf16)
    xpb_ref[...] = (proj[:, :, G:] + bg_b_ref[...].reshape(1, 1, G)).astype(bf16)

    # ---- fused bidirectional recurrence (two Hp-contraction dots per step) --
    def lstm_cell(gates, c):                 # gates: (Bt, 4*Hp) f32, aligned
        i = jax.nn.sigmoid(gates[:, 0 * Hp:1 * Hp])
        f = jax.nn.sigmoid(gates[:, 1 * Hp:2 * Hp])
        g = jnp.tanh(gates[:, 2 * Hp:3 * Hp])
        o = jax.nn.sigmoid(gates[:, 3 * Hp:4 * Hp])
        c_new = f * c + i * g
        h_new = o * jnp.tanh(c_new)
        return h_new, c_new

    def step(s, carry):
        h_f, c_f, h_b, c_b = carry           # each (Bt, Hp) f32
        rec_f = jnp.dot(h_f.astype(bf16), whh_f_ref[...],
                        preferred_element_type=f32)
        rec_b = jnp.dot(h_b.astype(bf16), whh_b_ref[...],
                        preferred_element_type=f32)
        gates_f = xpf_ref[s].astype(f32) + rec_f
        gates_b = xpb_ref[T - 1 - s].astype(f32) + rec_b
        # TODO(synk): on v6e/v7x the sigmoid/tanh could take bf16 inputs
        #             (bf16-native EUP/VPU); kept f32 so the same kernel is
        #             also correct/fast on v5e (no bf16 VPU/EUP there).
        h_f, c_f = lstm_cell(gates_f, c_f)
        h_b, c_b = lstm_cell(gates_b, c_b)
        hf_ref[s] = h_f                       # forward hidden at time t = s
        hb_ref[T - 1 - s] = h_b               # backward hidden at time t = T-1-s
        return h_f, c_f, h_b, c_b

    z = jnp.zeros((Bt, Hp), f32)
    unroll = T if T <= 32 else 4             # bounded unroll for long sequences
    lax.fori_loop(0, T, step, (z, z, z, z), unroll=unroll)

    # ---- attention + FC epilogue (runs once per tile) -----------------------
    hf = hf_ref[...]                          # (T, Bt, Hp), time order
    hb = hb_ref[...]
    # Additive-attention scores; the scalar attention bias is a uniform shift
    # that cancels exactly through the softmax, so it is dropped.
    scores = (jnp.sum(hf * watt_f_ref[...].reshape(1, 1, Hp),
                      axis=-1, keepdims=True)
              + jnp.sum(hb * watt_b_ref[...].reshape(1, 1, Hp),
                        axis=-1, keepdims=True))            # (T, Bt, 1)
    m = jnp.max(scores, axis=0, keepdims=True)
    e = jnp.exp(scores - m)
    att = e / jnp.sum(e, axis=0, keepdims=True)              # (T, Bt, 1)
    att_f = jnp.sum(att * hf, axis=0)                        # (Bt, Hp)
    att_b = jnp.sum(att * hb, axis=0)
    # TODO(synk): nn.Dropout is identity at inference; training-mode random
    #             masking is not implemented here.
    out_ref[...] = (jnp.dot(att_f.astype(bf16), wfc_f_ref[...],
                            preferred_element_type=f32)
                    + jnp.dot(att_b.astype(bf16), wfc_b_ref[...],
                              preferred_element_type=f32)
                    + bfc_ref[...])                           # (Bt, C)


# ------------------------------- wrapper ----------------------------------- #

def bilstm_attention_forward(x, params, *, batch_tile=None,
                             scratch_budget_bytes=36 * 1024 * 1024):
    """x: (B, T, input_size) float32, params in PyTorch layout. Returns (B, C)."""
    B, T, I = x.shape
    H = params["w_hh_f"].shape[1]
    C = params["w_fc"].shape[0]
    f32, bf16 = jnp.float32, jnp.bfloat16

    # Hidden width padded so every gate block is a whole number of 128-lane
    # vregs.  Padded units have zero weights/biases -> they stay exactly 0 and
    # contribute nothing (exact).
    Hp = _round_up(max(H, 1), 128)

    # ---- batch tile: as large as the per-tile VMEM scratch budget allows ----
    def scratch_bytes(bt):
        xproj = 2 * T * bt * 4 * Hp * 2       # xpf + xpb (bf16)
        hseq = 2 * T * bt * Hp * 4            # hf + hb   (f32)
        xin = 2 * T * bt * I * 4              # double-buffered input block
        return xproj + hseq + xin

    if batch_tile is None:
        bt = min(256, _round_up(B, 8))
        while bt > 8 and scratch_bytes(bt) > scratch_budget_bytes:
            bt -= 8
        batch_tile = bt
    Bt = max(8, _round_up(batch_tile, 8))
    Bp = _round_up(B, Bt)
    n_tiles = Bp // Bt

    # ---- pack PyTorch-layout weights into MXU-friendly operands -------------
    def pack_ih(w):                            # (4H, I) -> (I, 4*Hp)
        w4 = jnp.transpose(w.reshape(4, H, I), (2, 0, 1))        # (I, 4, H)
        w4 = jnp.pad(w4, ((0, 0), (0, 0), (0, Hp - H)))
        return w4.reshape(I, 4 * Hp)

    def pack_hh(w):                            # (4H, H) -> (Hp, 4*Hp)
        w4 = jnp.transpose(w.reshape(4, H, H), (2, 0, 1))        # (H, 4, H)
        w4 = jnp.pad(w4, ((0, Hp - H), (0, 0), (0, Hp - H)))
        return w4.reshape(Hp, 4 * Hp)

    def pack_b(bih, bhh):                      # (4H,) -> (1, 4*Hp)
        b = (bih + bhh).reshape(4, H)
        b = jnp.pad(b, ((0, 0), (0, Hp - H)))
        return b.reshape(1, 4 * Hp).astype(f32)

    wih = jnp.concatenate([pack_ih(params["w_ih_f"]),
                           pack_ih(params["w_ih_b"])], axis=1).astype(bf16)
    whh_f = pack_hh(params["w_hh_f"]).astype(bf16)
    whh_b = pack_hh(params["w_hh_b"]).astype(bf16)
    bg_f = pack_b(params["b_ih_f"], params["b_hh_f"])
    bg_b = pack_b(params["b_ih_b"], params["b_hh_b"])

    w_att = params["w_att"].reshape(2 * H)
    watt_f = jnp.pad(w_att[:H], (0, Hp - H)).reshape(1, Hp).astype(f32)
    watt_b = jnp.pad(w_att[H:], (0, Hp - H)).reshape(1, Hp).astype(f32)
    wfc_f = jnp.pad(params["w_fc"][:, :H].T, ((0, Hp - H), (0, 0))).astype(bf16)
    wfc_b = jnp.pad(params["w_fc"][:, H:].T, ((0, Hp - H), (0, 0))).astype(bf16)
    bfc = params["b_fc"].reshape(1, C).astype(f32)

    # ---- inputs: time-major, batch padded to a whole number of tiles --------
    x_tm = jnp.transpose(x, (1, 0, 2)).astype(f32)               # (T, B, I)
    x_tm = jnp.pad(x_tm, ((0, 0), (0, Bp - B), (0, 0)))          # (T, Bp, I)

    def rep(shape):                            # grid-invariant (weight) operand
        return pl.BlockSpec(shape, lambda i: (0,) * len(shape))

    weight_bytes = ((wih.size + whh_f.size + whh_b.size
                     + wfc_f.size + wfc_b.size) * 2
                    + (bg_f.size + bg_b.size + watt_f.size
                       + watt_b.size + bfc.size) * 4)
    vmem_need = scratch_bytes(Bt) + 2 * weight_bytes + 2 * Bt * C * 4
    vmem_limit = int(min(max(vmem_need * 5 // 4, 32 * 1024 * 1024),
                         56 * 1024 * 1024))

    out = pl.pallas_call(
        _bilstm_attention_kernel,
        out_shape=jax.ShapeDtypeStruct((Bp, C), f32),
        grid=(n_tiles,),
        in_specs=[
            pl.BlockSpec((T, Bt, I), lambda i: (0, i, 0)),       # x batch tile
            rep(wih.shape), rep(whh_f.shape), rep(whh_b.shape),
            rep(bg_f.shape), rep(bg_b.shape),
            rep(watt_f.shape), rep(watt_b.shape),
            rep(wfc_f.shape), rep(wfc_b.shape), rep(bfc.shape),
        ],
        out_specs=pl.BlockSpec((Bt, C), lambda i: (i, 0)),
        scratch_shapes=[
            pltpu.VMEM((T, Bt, 4 * Hp), bf16),   # forward-gate x projections
            pltpu.VMEM((T, Bt, 4 * Hp), bf16),   # backward-gate x projections
            pltpu.VMEM((T, Bt, Hp), f32),        # forward hidden sequence
            pltpu.VMEM((T, Bt, Hp), f32),        # backward hidden sequence
        ],
        compiler_params=pltpu.CompilerParams(
            dimension_semantics=("parallel",),
            vmem_limit_bytes=vmem_limit),
    )(x_tm, wih, whh_f, whh_b, bg_f, bg_b, watt_f, watt_b, wfc_f, wfc_b, bfc)
    return out[:B]


# ------------------------ pure-JAX reference (check) ----------------------- #

def reference_forward(x, params):
    B, T, _ = x.shape
    H = params["w_hh_f"].shape[1]

    def run_dir(wih, whh, bih, bhh, reverse):
        h = jnp.zeros((B, H), jnp.float32)
        c = jnp.zeros((B, H), jnp.float32)
        hs = {}
        ts = range(T - 1, -1, -1) if reverse else range(T)
        for t in ts:
            g = x[:, t, :] @ wih.T + bih + h @ whh.T + bhh
            i = jax.nn.sigmoid(g[:, :H])
            f = jax.nn.sigmoid(g[:, H:2 * H])
            gg = jnp.tanh(g[:, 2 * H:3 * H])
            o = jax.nn.sigmoid(g[:, 3 * H:])
            c = f * c + i * gg
            h = o * jnp.tanh(c)
            hs[t] = h
        return jnp.stack([hs[t] for t in range(T)], axis=1)      # (B, T, H)

    hf = run_dir(params["w_ih_f"], params["w_hh_f"],
                 params["b_ih_f"], params["b_hh_f"], reverse=False)
    hb = run_dir(params["w_ih_b"], params["w_hh_b"],
                 params["b_ih_b"], params["b_hh_b"], reverse=True)
    out = jnp.concatenate([hf, hb], axis=-1)                     # (B, T, 2H)
    scores = out @ params["w_att"].T + params["b_att"]           # (B, T, 1)
    att = jax.nn.softmax(scores, axis=1)
    att_out = jnp.sum(att * out, axis=1)                         # (B, 2H)
    return att_out @ params["w_fc"].T + params["b_fc"]           # (B, C)


# --------------------------------- main ------------------------------------ #

def init_params(key, input_size, hidden_size, num_classes):
    """Deterministic init mirroring PyTorch parameter shapes."""
    H, I, C = hidden_size, input_size, num_classes
    k = 1.0 / (H ** 0.5)
    names_shapes = [
        ("w_ih_f", (4 * H, I)), ("w_hh_f", (4 * H, H)),
        ("b_ih_f", (4 * H,)), ("b_hh_f", (4 * H,)),
        ("w_ih_b", (4 * H, I)), ("w_hh_b", (4 * H, H)),
        ("b_ih_b", (4 * H,)), ("b_hh_b", (4 * H,)),
        ("w_att", (1, 2 * H)), ("b_att", (1,)),
        ("w_fc", (C, 2 * H)), ("b_fc", (C,)),
    ]
    keys = jax.random.split(key, len(names_shapes))
    return {name: jax.random.uniform(kk, shape, jnp.float32, -k, k)
            for kk, (name, shape) in zip(keys, names_shapes)}


if __name__ == "__main__":
    batch, seq, input_size, hidden_size, num_classes = 2, 8, 16, 32, 4

    root = jax.random.PRNGKey(0)
    kx, kp = jax.random.split(root)
    x = jax.random.normal(kx, (batch, seq, input_size), jnp.float32)
    params = init_params(kp, input_size, hidden_size, num_classes)

    out = bilstm_attention_forward(x, params)
    out = jax.block_until_ready(out)

    ref = reference_forward(x, params)
    assert out.shape == (batch, num_classes)
    # MXU operands and the stored gate projections are bf16, so the check
    # against the pure-f32 reference uses a correspondingly looser tolerance
    # (a packing / permutation bug would still blow far past it).
    assert jnp.allclose(out, ref, atol=5e-2, rtol=5e-2), (out, ref)

    print("KERNEL_OK")
</pallas_src>

<mosaic_0001>
module attributes {stable_mosaic.version = 11 : i64} {
  func.func @_bilstm_attention_kernel(%arg0: i32, %arg1: memref<8x8x16xf32, #tpu.memory_space<vmem>>, %arg2: memref<16x1024xbf16, #tpu.memory_space<vmem>>, %arg3: memref<128x512xbf16, #tpu.memory_space<vmem>>, %arg4: memref<128x512xbf16, #tpu.memory_space<vmem>>, %arg5: memref<1x512xf32, #tpu.memory_space<vmem>>, %arg6: memref<1x512xf32, #tpu.memory_space<vmem>>, %arg7: memref<1x128xf32, #tpu.memory_space<vmem>>, %arg8: memref<1x128xf32, #tpu.memory_space<vmem>>, %arg9: memref<128x4xbf16, #tpu.memory_space<vmem>>, %arg10: memref<128x4xbf16, #tpu.memory_space<vmem>>, %arg11: memref<1x4xf32, #tpu.memory_space<vmem>>, %arg12: memref<8x4xf32, #tpu.memory_space<vmem>>, %arg13: memref<8x8x512xbf16, #tpu.memory_space<vmem>>, %arg14: memref<8x8x512xbf16, #tpu.memory_space<vmem>>, %arg15: memref<8x8x128xf32, #tpu.memory_space<vmem>>, %arg16: memref<8x8x128xf32, #tpu.memory_space<vmem>>) attributes {dimension_semantics = [#tpu.dimension_semantics<parallel>], iteration_bounds = array<i64: 1>, scalar_prefetch = 0 : i64, scratch_operands = 4 : i64, tpu.core_type = #tpu.core_type<tc>, window_params = [{transform_indices = @transform_0, window_bounds = array<i64: 8, 8, 16>}, {pipeline_mode = #tpu.pipeline_mode<synchronous>, transform_indices = @transform_1, window_bounds = array<i64: 16, 1024>}, {pipeline_mode = #tpu.pipeline_mode<synchronous>, transform_indices = @transform_2, window_bounds = array<i64: 128, 512>}, {pipeline_mode = #tpu.pipeline_mode<synchronous>, transform_indices = @transform_3, window_bounds = array<i64: 128, 512>}, {pipeline_mode = #tpu.pipeline_mode<synchronous>, transform_indices = @transform_4, window_bounds = array<i64: 1, 512>}, {pipeline_mode = #tpu.pipeline_mode<synchronous>, transform_indices = @transform_5, window_bounds = array<i64: 1, 512>}, {pipeline_mode = #tpu.pipeline_mode<synchronous>, transform_indices = @transform_6, window_bounds = array<i64: 1, 128>}, {pipeline_mode = #tpu.pipeline_mode<synchronous>, transform_indices = @transform_7, window_bounds = array<i64: 1, 128>}, {pipeline_mode = #tpu.pipeline_mode<synchronous>, transform_indices = @transform_8, window_bounds = array<i64: 128, 4>}, {pipeline_mode = #tpu.pipeline_mode<synchronous>, transform_indices = @transform_9, window_bounds = array<i64: 128, 4>}, {pipeline_mode = #tpu.pipeline_mode<synchronous>, transform_indices = @transform_10, window_bounds = array<i64: 1, 4>}, {transform_indices = @transform_11, window_bounds = array<i64: 8, 4>}]} {
    %c0 = arith.constant 0 : index
    %c0_0 = arith.constant 0 : index
    %c0_1 = arith.constant 0 : index
    %0 = vector.load %arg1[%c0, %c0_0, %c0_1] : memref<8x8x16xf32, #tpu.memory_space<vmem>>, vector<8x8x16xf32>
    %1 = vector.shape_cast %0 : vector<8x8x16xf32> to vector<64x16xf32>
    %2 = arith.truncf %1 : vector<64x16xf32> to vector<64x16xbf16>
    %c0_2 = arith.constant 0 : index
    %c0_3 = arith.constant 0 : index
    %3 = vector.load %arg2[%c0_2, %c0_3] : memref<16x1024xbf16, #tpu.memory_space<vmem>>, vector<16x1024xbf16>
    %cst = arith.constant dense<0.000000e+00> : vector<64x1024xf32>
    %4 = tpu.matmul %2, %3, %cst {dimension_numbers = #tpu.dot_dimension_numbers<[1], [0], [0], [1], [0, 0, 1, 1], [], []>} : vector<64x16xbf16>, vector<16x1024xbf16>, vector<64x1024xf32> -> vector<64x1024xf32>
    %5 = vector.shape_cast %4 : vector<64x1024xf32> to vector<8x8x1024xf32>
    %6 = vector.extract_strided_slice %5 {offsets = [0, 0, 0], sizes = [8, 8, 512], strides = [1, 1, 1]} : vector<8x8x1024xf32> to vector<8x8x512xf32>
    %c0_4 = arith.constant 0 : index
    %c0_5 = arith.constant 0 : index
    %7 = vector.load %arg5[%c0_4, %c0_5] : memref<1x512xf32, #tpu.memory_space<vmem>>, vector<1x512xf32>
    %8 = vector.shape_cast %7 : vector<1x512xf32> to vector<1x1x512xf32>
    %9 = vector.broadcast %8 : vector<1x1x512xf32> to vector<8x8x512xf32>
    %10 = arith.addf %6, %9 : vector<8x8x512xf32>
    %11 = arith.truncf %10 : vector<8x8x512xf32> to vector<8x8x512xbf16>
    %c0_6 = arith.constant 0 : index
    %c0_7 = arith.constant 0 : index
    %c0_8 = arith.constant 0 : index
    %12 = vector.load %arg13[%c0_6, %c0_7, %c0_8] : memref<8x8x512xbf16, #tpu.memory_space<vmem>>, vector<8x8x512xbf16>
    tpu.vector_store %arg13[%c0_6, %c0_7, %c0_8], %11 {strides = array<i32>} : memref<8x8x512xbf16, #tpu.memory_space<vmem>>, vector<8x8x512xbf16>,
    %13 = vector.extract_strided_slice %5 {offsets = [0, 0, 512], sizes = [8, 8, 512], strides = [1, 1, 1]} : vector<8x8x1024xf32> to vector<8x8x512xf32>
    %c0_9 = arith.constant 0 : index
    %c0_10 = arith.constant 0 : index
    %14 = vector.load %arg6[%c0_9, %c0_10] : memref<1x512xf32, #tpu.memory_space<vmem>>, vector<1x512xf32>
    %15 = vector.shape_cast %14 : vector<1x512xf32> to vector<1x1x512xf32>
    %16 = vector.broadcast %15 : vector<1x1x512xf32> to vector<8x8x512xf32>
    %17 = arith.addf %13, %16 : vector<8x8x512xf32>
    %18 = arith.truncf %17 : vector<8x8x512xf32> to vector<8x8x512xbf16>
    %c0_11 = arith.constant 0 : index
    %c0_12 = arith.constant 0 : index
    %c0_13 = arith.constant 0 : index
    %19 = vector.load %arg14[%c0_11, %c0_12, %c0_13] : memref<8x8x512xbf16, #tpu.memory_space<vmem>>, vector<8x8x512xbf16>
    tpu.vector_store %arg14[%c0_11, %c0_12, %c0_13], %18 {strides = array<i32>} : memref<8x8x512xbf16, #tpu.memory_space<vmem>>, vector<8x8x512xbf16>,
    %cst_14 = arith.constant 0.000000e+00 : f32
    %20 = vector.broadcast %cst_14 : f32 to vector<8x128xf32>
    %c0_i32 = arith.constant 0 : i32
    %21 = arith.truncf %20 : vector<8x128xf32> to vector<8x128xbf16>
    %c0_15 = arith.constant 0 : index
    %c0_16 = arith.constant 0 : index
    %22 = vector.load %arg3[%c0_15, %c0_16] : memref<128x512xbf16, #tpu.memory_space<vmem>>, vector<128x512xbf16>
    %cst_17 = arith.constant dense<0.000000e+00> : vector<8x512xf32>
    %23 = tpu.matmul %21, %22, %cst_17 {dimension_numbers = #tpu.dot_dimension_numbers<[1], [0], [0], [1], [0, 0, 1, 1], [], []>} : vector<8x128xbf16>, vector<128x512xbf16>, vector<8x512xf32> -> vector<8x512xf32>
    %24 = arith.truncf %20 : vector<8x128xf32> to vector<8x128xbf16>
    %c0_18 = arith.constant 0 : index
    %c0_19 = arith.constant 0 : index
    %25 = vector.load %arg4[%c0_18, %c0_19] : memref<128x512xbf16, #tpu.memory_space<vmem>>, vector<128x512xbf16>
    %cst_20 = arith.constant dense<0.000000e+00> : vector<8x512xf32>
    %26 = tpu.matmul %24, %25, %cst_20 {dimension_numbers = #tpu.dot_dimension_numbers<[1], [0], [0], [1], [0, 0, 1, 1], [], []>} : vector<8x128xbf16>, vector<128x512xbf16>, vector<8x512xf32> -> vector<8x512xf32>
    %27 = arith.index_cast %c0_i32 : i32 to index
    %c0_21 = arith.constant 0 : index
    %c0_22 = arith.constant 0 : index
    %28 = vector.load %arg13[%27, %c0_21, %c0_22] : memref<8x8x512xbf16, #tpu.memory_space<vmem>>, vector<1x8x512xbf16>
    %29 = vector.shape_cast %28 : vector<1x8x512xbf16> to vector<8x512xbf16>
    %30 = arith.extf %29 : vector<8x512xbf16> to vector<8x512xf32>
    %31 = arith.addf %30, %23 : vector<8x512xf32>
    %c7_i32 = arith.constant 7 : i32
    %32 = arith.subi %c7_i32, %c0_i32 : i32
    %33 = arith.index_cast %32 : i32 to index
    %c0_23 = arith.constant 0 : index
    %c0_24 = arith.constant 0 : index
    %34 = vector.load %arg14[%33, %c0_23, %c0_24] : memref<8x8x512xbf16, #tpu.memory_space<vmem>>, vector<1x8x512xbf16>
    %35 = vector.shape_cast %34 : vector<1x8x512xbf16> to vector<8x512xbf16>
    %36 = arith.extf %35 : vector<8x512xbf16> to vector<8x512xf32>
    %37 = arith.addf %36, %26 : vector<8x512xf32>
    %38 = vector.extract_strided_slice %31 {offsets = [0, 0], sizes = [8, 128], strides = [1, 1]} : vector<8x512xf32> to vector<8x128xf32>
    %39 = arith.negf %38 : vector<8x128xf32>
    %40 = math.exp %39 : vector<8x128xf32>
    %cst_25 = arith.constant 1.000000e+00 : f32
    %41 = vector.broadcast %cst_25 : f32 to vector<8x128xf32>
    %42 = arith.addf %41, %40 : vector<8x128xf32>
    %43 = arith.divf %41, %42 : vector<8x128xf32>
    %44 = vector.extract_strided_slice %31 {offsets = [0, 128], sizes = [8, 128], strides = [1, 1]} : vector<8x512xf32> to vector<8x128xf32>
    %45 = arith.negf %44 : vector<8x128xf32>
    %46 = math.exp %45 : vector<8x128xf32>
    %cst_26 = arith.constant 1.000000e+00 : f32
    %47 = vector.broadcast %cst_26 : f32 to vector<8x128xf32>
    %48 = arith.addf %47, %46 : vector<8x128xf32>
    %49 = arith.divf %47, %48 : vector<8x128xf32>
    %50 = vector.extract_strided_slice %31 {offsets = [0, 256], sizes = [8, 128], strides = [1, 1]} : vector<8x512xf32> to vector<8x128xf32>
    %51 = math.tanh %50 : vector<8x128xf32>
    %52 = vector.extract_strided_slice %31 {offsets = [0, 384], sizes = [8, 128], strides = [1, 1]} : vector<8x512xf32> to vector<8x128xf32>
    %53 = arith.negf %52 : vector<8x128xf32>
    %54 = math.exp %53 : vector<8x128xf32>
    %cst_27 = arith.constant 1.000000e+00 : f32
    %55 = vector.broadcast %cst_27 : f32 to vector<8x128xf32>
    %56 = arith.addf %55, %54 : vector<8x128xf32>
    %57 = arith.divf %55, %56 : vector<8x128xf32>
    %58 = arith.mulf %49, %20 : vector<8x128xf32>
    %59 = arith.mulf %43, %51 : vector<8x128xf32>
    %60 = arith.addf %58, %59 : vector<8x128xf32>
    %61 = math.tanh %60 : vector<8x128xf32>
    %62 = arith.mulf %57, %61 : vector<8x128xf32>
    %63 = vector.extract_strided_slice %37 {offsets = [0, 0], sizes = [8, 128], strides = [1, 1]} : vector<8x512xf32> to vector<8x128xf32>
    %64 = arith.negf %63 : vector<8x128xf32>
    %65 = math.exp %64 : vector<8x128xf32>
    %cst_28 = arith.constant 1.000000e+00 : f32
    %66 = vector.broadcast %cst_28 : f32 to vector<8x128xf32>
    %67 = arith.addf %66, %65 : vector<8x128xf32>
    %68 = arith.divf %66, %67 : vector<8x128xf32>
    %69 = vector.extract_strided_slice %37 {offsets = [0, 128], sizes = [8, 128], strides = [1, 1]} : vector<8x512xf32> to vector<8x128xf32>
    %70 = arith.negf %69 : vector<8x128xf32>
    %71 = math.exp %70 : vector<8x128xf32>
    %cst_29 = arith.constant 1.000000e+00 : f32
    %72 = vector.broadcast %cst_29 : f32 to vector<8x128xf32>
    %73 = arith.addf %72, %71 : vector<8x128xf32>
    %74 = arith.divf %72, %73 : vector<8x128xf32>
    %75 = vector.extract_strided_slice %37 {offsets = [0, 256], sizes = [8, 128], strides = [1, 1]} : vector<8x512xf32> to vector<8x128xf32>
    %76 = math.tanh %75 : vector<8x128xf32>
    %77 = vector.extract_strided_slice %37 {offsets = [0, 384], sizes = [8, 128], strides = [1, 1]} : vector<8x512xf32> to vector<8x128xf32>
    %78 = arith.negf %77 : vector<8x128xf32>
    %79 = math.exp %78 : vector<8x128xf32>
    %cst_30 = arith.constant 1.000000e+00 : f32
    %80 = vector.broadcast %cst_30 : f32 to vector<8x128xf32>
    %81 = arith.addf %80, %79 : vector<8x128xf32>
    %82 = arith.divf %80, %81 : vector<8x128xf32>
    %83 = arith.mulf %74, %20 : vector<8x128xf32>
    %84 = arith.mulf %68, %76 : vector<8x128xf32>
    %85 = arith.addf %83, %84 : vector<8x128xf32>
    %86 = math.tanh %85 : vector<8x128xf32>
    %87 = arith.mulf %82, %86 : vector<8x128xf32>
    %88 = arith.index_cast %c0_i32 : i32 to index
    %c0_31 = arith.constant 0 : index
    %c0_32 = arith.constant 0 : index
    %89 = vector.load %arg15[%88, %c0_31, %c0_32] : memref<8x8x128xf32, #tpu.memory_space<vmem>>, vector<1x8x128xf32>
    %90 = vector.shape_cast %89 : vector<1x8x128xf32> to vector<8x128xf32>
    %91 = vector.shape_cast %62 : vector<8x128xf32> to vector<1x8x128xf32>
    tpu.vector_store %arg15[%88, %c0_31, %c0_32], %91 {strides = array<i32>} : memref<8x8x128xf32, #tpu.memory_space<vmem>>, vector<1x8x128xf32>,
    %c7_i32_33 = arith.constant 7 : i32
    %92 = arith.subi %c7_i32_33, %c0_i32 : i32
    %93 = arith.index_cast %92 : i32 to index
    %c0_34 = arith.constant 0 : index
    %c0_35 = arith.constant 0 : index
    %94 = vector.load %arg16[%93, %c0_34, %c0_35] : memref<8x8x128xf32, #tpu.memory_space<vmem>>, vector<1x8x128xf32>
    %95 = vector.shape_cast %94 : vector<1x8x128xf32> to vector<8x128xf32>
    %96 = vector.shape_cast %87 : vector<8x128xf32> to vector<1x8x128xf32>
    tpu.vector_store %arg16[%93, %c0_34, %c0_35], %96 {strides = array<i32>} : memref<8x8x128xf32, #tpu.memory_space<vmem>>, vector<1x8x128xf32>,
    %c1_i32 = arith.constant 1 : i32
    %97 = arith.truncf %62 : vector<8x128xf32> to vector<8x128xbf16>
    %c0_36 = arith.constant 0 : index
    %c0_37 = arith.constant 0 : index
    %98 = vector.load %arg3[%c0_36, %c0_37] : memref<128x512xbf16, #tpu.memory_space<vmem>>, vector<128x512xbf16>
    %cst_38 = arith.constant dense<0.000000e+00> : vector<8x512xf32>
    %99 = tpu.matmul %97, %98, %cst_38 {dimension_numbers = #tpu.dot_dimension_numbers<[1], [0], [0], [1], [0, 0, 1, 1], [], []>} : vector<8x128xbf16>, vector<128x512xbf16>, vector<8x512xf32> -> vector<8x512xf32>
    %100 = arith.truncf %87 : vector<8x128xf32> to vector<8x128xbf16>
    %c0_39 = arith.constant 0 : index
    %c0_40 = arith.constant 0 : index
    %101 = vector.load %arg4[%c0_39, %c0_40] : memref<128x512xbf16, #tpu.memory_space<vmem>>, vector<128x512xbf16>
    %cst_41 = arith.constant dense<0.000000e+00> : vector<8x512xf32>
    %102 = tpu.matmul %100, %101, %cst_41 {dimension_numbers = #tpu.dot_dimension_numbers<[1], [0], [0], [1], [0, 0, 1, 1], [], []>} : vector<8x128xbf16>, vector<128x512xbf16>, vector<8x512xf32> -> vector<8x512xf32>
    %103 = arith.index_cast %c1_i32 : i32 to index
    %c0_42 = arith.constant 0 : index
    %c0_43 = arith.constant 0 : index
    %104 = vector.load %arg13[%103, %c0_42, %c0_43] : memref<8x8x512xbf16, #tpu.memory_space<vmem>>, vector<1x8x512xbf16>
    %105 = vector.shape_cast %104 : vector<1x8x512xbf16> to vector<8x512xbf16>
    %106 = arith.extf %105 : vector<8x512xbf16> to vector<8x512xf32>
    %107 = arith.addf %106, %99 : vector<8x512xf32>
    %c7_i32_44 = arith.constant 7 : i32
    %108 = arith.subi %c7_i32_44, %c1_i32 : i32
    %109 = arith.index_cast %108 : i32 to index
    %c0_45 = arith.constant 0 : index
    %c0_46 = arith.constant 0 : index
    %110 = vector.load %arg14[%109, %c0_45, %c0_46] : memref<8x8x512xbf16, #tpu.memory_space<vmem>>, vector<1x8x512xbf16>
    %111 = vector.shape_cast %110 : vector<1x8x512xbf16> to vector<8x512xbf16>
    %112 = arith.extf %111 : vector<8x512xbf16> to vector<8x512xf32>
    %113 = arith.addf %112, %102 : vector<8x512xf32>
    %114 = vector.extract_strided_slice %107 {offsets = [0, 0], sizes = [8, 128], strides = [1, 1]} : vector<8x512xf32> to vector<8x128xf32>
    %115 = arith.negf %114 : vector<8x128xf32>
    %116 = math.exp %115 : vector<8x128xf32>
    %cst_47 = arith.constant 1.000000e+00 : f32
    %117 = vector.broadcast %cst_47 : f32 to vector<8x128xf32>
    %118 = arith.addf %117, %116 : vector<8x128xf32>
    %119 = arith.divf %117, %118 : vector<8x128xf32>
    %120 = vector.extract_strided_slice %107 {offsets = [0, 128], sizes = [8, 128], strides = [1, 1]} : vector<8x512xf32> to vector<8x128xf32>
    %121 = arith.negf %120 : vector<8x128xf32>
    %122 = math.exp %121 : vector<8x128xf32>
    %cst_48 = arith.constant 1.000000e+00 : f32
    %123 = vector.broadcast %cst_48 : f32 to vector<8x128xf32>
    %124 = arith.addf %123, %122 : vector<8x128xf32>
    %125 = arith.divf %123, %124 : vector<8x128xf32>
    %126 = vector.extract_strided_slice %107 {offsets = [0, 256], sizes = [8, 128], strides = [1, 1]} : vector<8x512xf32> to vector<8x128xf32>
    %127 = math.tanh %126 : vector<8x128xf32>
    %128 = vector.extract_strided_slice %107 {offsets = [0, 384], sizes = [8, 128], strides = [1, 1]} : vector<8x512xf32> to vector<8x128xf32>
    %129 = arith.negf %128 : vector<8x128xf32>
    %130 = math.exp %129 : vector<8x128xf32>
    %cst_49 = arith.constant 1.000000e+00 : f32
    %131 = vector.broadcast %cst_49 : f32 to vector<8x128xf32>
    %132 = arith.addf %131, %130 : vector<8x128xf32>
    %133 = arith.divf %131, %132 : vector<8x128xf32>
    %134 = arith.mulf %125, %60 : vector<8x128xf32>
    %135 = arith.mulf %119, %127 : vector<8x128xf32>
    %136 = arith.addf %134, %135 : vector<8x128xf32>
    %137 = math.tanh %136 : vector<8x128xf32>
    %138 = arith.mulf %133, %137 : vector<8x128xf32>
    %139 = vector.extract_strided_slice %113 {offsets = [0, 0], sizes = [8, 128], strides = [1, 1]} : vector<8x512xf32> to vector<8x128xf32>
    %140 = arith.negf %139 : vector<8x128xf32>
    %141 = math.exp %140 : vector<8x128xf32>
    %cst_50 = arith.constant 1.000000e+00 : f32
    %142 = vector.broadcast %cst_50 : f32 to vector<8x128xf32>
    %143 = arith.addf %142, %141 : vector<8x128xf32>
    %144 = arith.divf %142, %143 : vector<8x128xf32>
    %145 = vector.extract_strided_slice %113 {offsets = [0, 128], sizes = [8, 128], strides = [1, 1]} : vector<8x512xf32> to vector<8x128xf32>
    %146 = arith.negf %145 : vector<8x128xf32>
    %147 = math.exp %146 : vector<8x128xf32>
    %cst_51 = arith.constant 1.000000e+00 : f32
    %148 = vector.broadcast %cst_51 : f32 to vector<8x128xf32>
    %149 = arith.addf %148, %147 : vector<8x128xf32>
    %150 = arith.divf %148, %149 : vector<8x128xf32>
    %151 = vector.extract_strided_slice %113 {offsets = [0, 256], sizes = [8, 128], strides = [1, 1]} : vector<8x512xf32> to vector<8x128xf32>
    %152 = math.tanh %151 : vector<8x128xf32>
    %153 = vector.extract_strided_slice %113 {offsets = [0, 384], sizes = [8, 128], strides = [1, 1]} : vector<8x512xf32> to vector<8x128xf32>
    %154 = arith.negf %153 : vector<8x128xf32>
    %155 = math.exp %154 : vector<8x128xf32>
    %cst_52 = arith.constant 1.000000e+00 : f32
    %156 = vector.broadcast %cst_52 : f32 to vector<8x128xf32>
    %157 = arith.addf %156, %155 : vector<8x128xf32>
    %158 = arith.divf %156, %157 : vector<8x128xf32>
    %159 = arith.mulf %150, %85 : vector<8x128xf32>
    %160 = arith.mulf %144, %152 : vector<8x128xf32>
    %161 = arith.addf %159, %160 : vector<8x128xf32>
    %162 = math.tanh %161 : vector<8x128xf32>
    %163 = arith.mulf %158, %162 : vector<8x128xf32>
    %164 = arith.index_cast %c1_i32 : i32 to index
    %c0_53 = arith.constant 0 : index
    %c0_54 = arith.constant 0 : index
    %165 = vector.load %arg15[%164, %c0_53, %c0_54] : memref<8x8x128xf32, #tpu.memory_space<vmem>>, vector<1x8x128xf32>
    %166 = vector.shape_cast %165 : vector<1x8x128xf32> to vector<8x128xf32>
    %167 = vector.shape_cast %138 : vector<8x128xf32> to vector<1x8x128xf32>
    tpu.vector_store %arg15[%164, %c0_53, %c0_54], %167 {strides = array<i32>} : memref<8x8x128xf32, #tpu.memory_space<vmem>>, vector<1x8x128xf32>,
    %c7_i32_55 = arith.constant 7 : i32
    %168 = arith.subi %c7_i32_55, %c1_i32 : i32
    %169 = arith.index_cast %168 : i32 to index
    %c0_56 = arith.constant 0 : index
    %c0_57 = arith.constant 0 : index
    %170 = vector.load %arg16[%169, %c0_56, %c0_57] : memref<8x8x128xf32, #tpu.memory_space<vmem>>, vector<1x8x128xf32>
    %171 = vector.shape_cast %170 : vector<1x8x128xf32> to vector<8x128xf32>
    %172 = vector.shape_cast %163 : vector<8x128xf32> to vector<1x8x128xf32>
    tpu.vector_store %arg16[%169, %c0_56, %c0_57], %172 {strides = array<i32>} : memref<8x8x128xf32, #tpu.memory_space<vmem>>, vector<1x8x128xf32>,
    %c2_i32 = arith.constant 2 : i32
    %173 = arith.truncf %138 : vector<8x128xf32> to vector<8x128xbf16>
    %c0_58 = arith.constant 0 : index
    %c0_59 = arith.constant 0 : index
    %174 = vector.load %arg3[%c0_58, %c0_59] : memref<128x512xbf16, #tpu.memory_space<vmem>>, vector<128x512xbf16>
    %cst_60 = arith.constant dense<0.000000e+00> : vector<8x512xf32>
    %175 = tpu.matmul %173, %174, %cst_60 {dimension_numbers = #tpu.dot_dimension_numbers<[1], [0], [0], [1], [0, 0, 1, 1], [], []>} : vector<8x128xbf16>, vector<128x512xbf16>, vector<8x512xf32> -> vector<8x512xf32>
    %176 = arith.truncf %163 : vector<8x128xf32> to vector<8x128xbf16>
    %c0_61 = arith.constant 0 : index
    %c0_62 = arith.constant 0 : index
    %177 = vector.load %arg4[%c0_61, %c0_62] : memref<128x512xbf16, #tpu.memory_space<vmem>>, vector<128x512xbf16>
    %cst_63 = arith.constant dense<0.000000e+00> : vector<8x512xf32>
    %178 = tpu.matmul %176, %177, %cst_63 {dimension_numbers = #tpu.dot_dimension_numbers<[1], [0], [0], [1], [0, 0, 1, 1], [], []>} : vector<8x128xbf16>, vector<128x512xbf16>, vector<8x512xf32> -> vector<8x512xf32>
    %179 = arith.index_cast %c2_i32 : i32 to index
    %c0_64 = arith.constant 0 : index
    %c0_65 = arith.constant 0 : index
    %180 = vector.load %arg13[%179, %c0_64, %c0_65] : memref<8x8x512xbf16, #tpu.memory_space<vmem>>, vector<1x8x512xbf16>
    %181 = vector.shape_cast %180 : vector<1x8x512xbf16> to vector<8x512xbf16>
    %182 = arith.extf %181 : vector<8x512xbf16> to vector<8x512xf32>
    %183 = arith.addf %182, %175 : vector<8x512xf32>
    %c7_i32_66 = arith.constant 7 : i32
    %184 = arith.subi %c7_i32_66, %c2_i32 : i32
    %185 = arith.index_cast %184 : i32 to index
    %c0_67 = arith.constant 0 : index
    %c0_68 = arith.constant 0 : index
    %186 = vector.load %arg14[%185, %c0_67, %c0_68] : memref<8x8x512xbf16, #tpu.memory_space<vmem>>, vector<1x8x512xbf16>
    %187 = vector.shape_cast %186 : vector<1x8x512xbf16> to vector<8x512xbf16>
    %188 = arith.extf %187 : vector<8x512xbf16> to vector<8x512xf32>
    %189 = arith.addf %188, %178 : vector<8x512xf32>
    %190 = vector.extract_strided_slice %183 {offsets = [0, 0], sizes = [8, 128], strides = [1, 1]} : vector<8x512xf32> to vector<8x128xf32>
    %191 = arith.negf %190 : vector<8x128xf32>
    %192 = math.exp %191 : vector<8x128xf32>
    %cst_69 = arith.constant 1.000000e+00 : f32
    %193 = vector.broadcast %cst_69 : f32 to vector<8x128xf32>
    %194 = arith.addf %193, %192 : vector<8x128xf32>
    %195 = arith.divf %193, %194 : vector<8x128xf32>
    %196 = vector.extract_strided_slice %183 {offsets = [0, 128], sizes = [8, 128], strides = [1, 1]} : vector<8x512xf32> to vector<8x128xf32>
    %197 = arith.negf %196 : vector<8x128xf32>
    %198 = math.exp %197 : vector<8x128xf32>
    %cst_70 = arith.constant 1.000000e+00 : f32
    %199 = vector.broadcast %cst_70 : f32 to vector<8x128xf32>
    %200 = arith.addf %199, %198 : vector<8x128xf32>
    %201 = arith.divf %199, %200 : vector<8x128xf32>
    %202 = vector.extract_strided_slice %183 {offsets = [0, 256], sizes = [8, 128], strides = [1, 1]} : vector<8x512xf32> to vector<8x128xf32>
    %203 = math.tanh %202 : vector<8x128xf32>
    %204 = vector.extract_strided_slice %183 {offsets = [0, 384], sizes = [8, 128], strides = [1, 1]} : vector<8x512xf32> to vector<8x128xf32>
    %205 = arith.negf %204 : vector<8x128xf32>
    %206 = math.exp %205 : vector<8x128xf32>
    %cst_71 = arith.constant 1.000000e+00 : f32
    %207 = vector.broadcast %cst_71 : f32 to vector<8x128xf32>
    %208 = arith.addf %207, %206 : vector<8x128xf32>
    %209 = arith.divf %207, %208 : vector<8x128xf32>
    %210 = arith.mulf %201, %136 : vector<8x128xf32>
    %211 = arith.mulf %195, %203 : vector<8x128xf32>
    %212 = arith.addf %210, %211 : vector<8x128xf32>
    %213 = math.tanh %212 : vector<8x128xf32>
    %214 = arith.mulf %209, %213 : vector<8x128xf32>
    %215 = vector.extract_strided_slice %189 {offsets = [0, 0], sizes = [8, 128], strides = [1, 1]} : vector<8x512xf32> to vector<8x128xf32>
    %216 = arith.negf %215 : vector<8x128xf32>
    %217 = math.exp %216 : vector<8x128xf32>
    %cst_72 = arith.constant 1.000000e+00 : f32
    %218 = vector.broadcast %cst_72 : f32 to vector<8x128xf32>
    %219 = arith.addf %218, %217 : vector<8x128xf32>
    %220 = arith.divf %218, %219 : vector<8x128xf32>
    %221 = vector.extract_strided_slice %189 {offsets = [0, 128], sizes = [8, 128], strides = [1, 1]} : vector<8x512xf32> to vector<8x128xf32>
    %222 = arith.negf %221 : vector<8x128xf32>
    %223 = math.exp %222 : vector<8x128xf32>
    %cst_73 = arith.constant 1.000000e+00 : f32
    %224 = vector.broadcast %cst_73 : f32 to vector<8x128xf32>
    %225 = arith.addf %224, %223 : vector<8x128xf32>
    %226 = arith.divf %224, %225 : vector<8x128xf32>
    %227 = vector.extract_strided_slice %189 {offsets = [0, 256], sizes = [8, 128], strides = [1, 1]} : vector<8x512xf32> to vector<8x128xf32>
    %228 = math.tanh %227 : vector<8x128xf32>
    %229 = vector.extract_strided_slice %189 {offsets = [0, 384], sizes = [8, 128], strides = [1, 1]} : vector<8x512xf32> to vector<8x128xf32>
    %230 = arith.negf %229 : vector<8x128xf32>
    %231 = math.exp %230 : vector<8x128xf32>
    %cst_74 = arith.constant 1.000000e+00 : f32
    %232 = vector.broadcast %cst_74 : f32 to vector<8x128xf32>
    %233 = arith.addf %232, %231 : vector<8x128xf32>
    %234 = arith.divf %232, %233 : vector<8x128xf32>
    %235 = arith.mulf %226, %161 : vector<8x128xf32>
    %236 = arith.mulf %220, %228 : vector<8x128xf32>
    %237 = arith.addf %235, %236 : vector<8x128xf32>
    %238 = math.tanh %237 : vector<8x128xf32>
    %239 = arith.mulf %234, %238 : vector<8x128xf32>
    %240 = arith.index_cast %c2_i32 : i32 to index
    %c0_75 = arith.constant 0 : index
    %c0_76 = arith.constant 0 : index
    %241 = vector.load %arg15[%240, %c0_75, %c0_76] : memref<8x8x128xf32, #tpu.memory_space<vmem>>, vector<1x8x128xf32>
    %242 = vector.shape_cast %241 : vector<1x8x128xf32> to vector<8x128xf32>
    %243 = vector.shape_cast %214 : vector<8x128xf32> to vector<1x8x128xf32>
    tpu.vector_store %arg15[%240, %c0_75, %c0_76], %243 {strides = array<i32>} : memref<8x8x128xf32, #tpu.memory_space<vmem>>, vector<1x8x128xf32>,
    %c7_i32_77 = arith.constant 7 : i32
    %244 = arith.subi %c7_i32_77, %c2_i32 : i32
    %245 = arith.index_cast %244 : i32 to index
    %c0_78 = arith.constant 0 : index
    %c0_79 = arith.constant 0 : index
    %246 = vector.load %arg16[%245, %c0_78, %c0_79] : memref<8x8x128xf32, #tpu.memory_space<vmem>>, vector<1x8x128xf32>
    %247 = vector.shape_cast %246 : vector<1x8x128xf32> to vector<8x128xf32>
    %248 = vector.shape_cast %239 : vector<8x128xf32> to vector<1x8x128xf32>
    tpu.vector_store %arg16[%245, %c0_78, %c0_79], %248 {strides = array<i32>} : memref<8x8x128xf32, #tpu.memory_space<vmem>>, vector<1x8x128xf32>,
    %c3_i32 = arith.constant 3 : i32
    %249 = arith.truncf %214 : vector<8x128xf32> to vector<8x128xbf16>
    %c0_80 = arith.constant 0 : index
    %c0_81 = arith.constant 0 : index
    %250 = vector.load %arg3[%c0_80, %c0_81] : memref<128x512xbf16, #tpu.memory_space<vmem>>, vector<128x512xbf16>
    %cst_82 = arith.constant dense<0.000000e+00> : vector<8x512xf32>
    %251 = tpu.matmul %249, %250, %cst_82 {dimension_numbers = #tpu.dot_dimension_numbers<[1], [0], [0], [1], [0, 0, 1, 1], [], []>} : vector<8x128xbf16>, vector<128x512xbf16>, vector<8x512xf32> -> vector<8x512xf32>
    %252 = arith.truncf %239 : vector<8x128xf32> to vector<8x128xbf16>
    %c0_83 = arith.constant 0 : index
    %c0_84 = arith.constant 0 : index
    %253 = vector.load %arg4[%c0_83, %c0_84] : memref<128x512xbf16, #tpu.memory_space<vmem>>, vector<128x512xbf16>
    %cst_85 = arith.constant dense<0.000000e+00> : vector<8x512xf32>
    %254 = tpu.matmul %252, %253, %cst_85 {dimension_numbers = #tpu.dot_dimension_numbers<[1], [0], [0], [1], [0, 0, 1, 1], [], []>} : vector<8x128xbf16>, vector<128x512xbf16>, vector<8x512xf32> -> vector<8x512xf32>
    %255 = arith.index_cast %c3_i32 : i32 to index
    %c0_86 = arith.constant 0 : index
    %c0_87 = arith.constant 0 : index
    %256 = vector.load %arg13[%255, %c0_86, %c0_87] : memref<8x8x512xbf16, #tpu.memory_space<vmem>>, vector<1x8x512xbf16>
    %257 = vector.shape_cast %256 : vector<1x8x512xbf16> to vector<8x512xbf16>
    %258 = arith.extf %257 : vector<8x512xbf16> to vector<8x512xf32>
    %259 = arith.addf %258, %251 : vector<8x512xf32>
    %c7_i32_88 = arith.constant 7 : i32
    %260 = arith.subi %c7_i32_88, %c3_i32 : i32
    %261 = arith.index_cast %260 : i32 to index
    %c0_89 = arith.constant 0 : index
    %c0_90 = arith.constant 0 : index
    %262 = vector.load %arg14[%261, %c0_89, %c0_90] : memref<8x8x512xbf16, #tpu.memory_space<vmem>>, vector<1x8x512xbf16>
    %263 = vector.shape_cast %262 : vector<1x8x512xbf16> to vector<8x512xbf16>
    %264 = arith.extf %263 : vector<8x512xbf16> to vector<8x512xf32>
    %265 = arith.addf %264, %254 : vector<8x512xf32>
    %266 = vector.extract_strided_slice %259 {offsets = [0, 0], sizes = [8, 128], strides = [1, 1]} : vector<8x512xf32> to vector<8x128xf32>
    %267 = arith.negf %266 : vector<8x128xf32>
    %268 = math.exp %267 : vector<8x128xf32>
    %cst_91 = arith.constant 1.000000e+00 : f32
    %269 = vector.broadcast %cst_91 : f32 to vector<8x128xf32>
    %270 = arith.addf %269, %268 : vector<8x128xf32>
    %271 = arith.divf %269, %270 : vector<8x128xf32>
    %272 = vector.extract_strided_slice %259 {offsets = [0, 128], sizes = [8, 128], strides = [1, 1]} : vector<8x512xf32> to vector<8x128xf32>
    %273 = arith.negf %272 : vector<8x128xf32>
    %274 = math.exp %273 : vector<8x128xf32>
    %cst_92 = arith.constant 1.000000e+00 : f32
    %275 = vector.broadcast %cst_92 : f32 to vector<8x128xf32>
    %276 = arith.addf %275, %274 : vector<8x128xf32>
    %277 = arith.divf %275, %276 : vector<8x128xf32>
    %278 = vector.extract_strided_slice %259 {offsets = [0, 256], sizes = [8, 128], strides = [1, 1]} : vector<8x512xf32> to vector<8x128xf32>
    %279 = math.tanh %278 : vector<8x128xf32>
    %280 = vector.extract_strided_slice %259 {offsets = [0, 384], sizes = [8, 128], strides = [1, 1]} : vector<8x512xf32> to vector<8x128xf32>
    %281 = arith.negf %280 : vector<8x128xf32>
    %282 = math.exp %281 : vector<8x128xf32>
    %cst_93 = arith.constant 1.000000e+00 : f32
    %283 = vector.broadcast %cst_93 : f32 to vector<8x128xf32>
    %284 = arith.addf %283, %282 : vector<8x128xf32>
    %285 = arith.divf %283, %284 : vector<8x128xf32>
    %286 = arith.mulf %277, %212 : vector<8x128xf32>
    %287 = arith.mulf %271, %279 : vector<8x128xf32>
    %288 = arith.addf %286, %287 : vector<8x128xf32>
    %289 = math.tanh %288 : vector<8x128xf32>
    %290 = arith.mulf %285, %289 : vector<8x128xf32>
    %291 = vector.extract_strided_slice %265 {offsets = [0, 0], sizes = [8, 128], strides = [1, 1]} : vector<8x512xf32> to vector<8x128xf32>
    %292 = arith.negf %291 : vector<8x128xf32>
    %293 = math.exp %292 : vector<8x128xf32>
    %cst_94 = arith.constant 1.000000e+00 : f32
    %294 = vector.broadcast %cst_94 : f32 to vector<8x128xf32>
    %295 = arith.addf %294, %293 : vector<8x128xf32>
    %296 = arith.divf %294, %295 : vector<8x128xf32>
    %297 = vector.extract_strided_slice %265 {offsets = [0, 128], sizes = [8, 128], strides = [1, 1]} : vector<8x512xf32> to vector<8x128xf32>
    %298 = arith.negf %297 : vector<8x128xf32>
    %299 = math.exp %298 : vector<8x128xf32>
    %cst_95 = arith.constant 1.000000e+00 : f32
    %300 = vector.broadcast %cst_95 : f32 to vector<8x128xf32>
    %301 = arith.addf %300, %299 : vector<8x128xf32>
    %302 = arith.divf %300, %301 : vector<8x128xf32>
    %303 = vector.extract_strided_slice %265 {offsets = [0, 256], sizes = [8, 128], strides = [1, 1]} : vector<8x512xf32> to vector<8x128xf32>
    %304 = math.tanh %303 : vector<8x128xf32>
    %305 = vector.extract_strided_slice %265 {offsets = [0, 384], sizes = [8, 128], strides = [1, 1]} : vector<8x512xf32> to vector<8x128xf32>
    %306 = arith.negf %305 : vector<8x128xf32>
    %307 = math.exp %306 : vector<8x128xf32>
    %cst_96 = arith.constant 1.000000e+00 : f32
    %308 = vector.broadcast %cst_96 : f32 to vector<8x128xf32>
    %309 = arith.addf %308, %307 : vector<8x128xf32>
    %310 = arith.divf %308, %309 : vector<8x128xf32>
    %311 = arith.mulf %302, %237 : vector<8x128xf32>
    %312 = arith.mulf %296, %304 : vector<8x128xf32>
    %313 = arith.addf %311, %312 : vector<8x128xf32>
    %314 = math.tanh %313 : vector<8x128xf32>
    %315 = arith.mulf %310, %314 : vector<8x128xf32>
    %316 = arith.index_cast %c3_i32 : i32 to index
    %c0_97 = arith.constant 0 : index
    %c0_98 = arith.constant 0 : index
    %317 = vector.load %arg15[%316, %c0_97, %c0_98] : memref<8x8x128xf32, #tpu.memory_space<vmem>>, vector<1x8x128xf32>
    %318 = vector.shape_cast %317 : vector<1x8x128xf32> to vector<8x128xf32>
    %319 = vector.shape_cast %290 : vector<8x128xf32> to vector<1x8x128xf32>
    tpu.vector_store %arg15[%316, %c0_97, %c0_98], %319 {strides = array<i32>} : memref<8x8x128xf32, #tpu.memory_space<vmem>>, vector<1x8x128xf32>,
    %c7_i32_99 = arith.constant 7 : i32
    %320 = arith.subi %c7_i32_99, %c3_i32 : i32
    %321 = arith.index_cast %320 : i32 to index
    %c0_100 = arith.constant 0 : index
    %c0_101 = arith.constant 0 : index
    %322 = vector.load %arg16[%321, %c0_100, %c0_101] : memref<8x8x128xf32, #tpu.memory_space<vmem>>, vector<1x8x128xf32>
    %323 = vector.shape_cast %322 : vector<1x8x128xf32> to vector<8x128xf32>
    %324 = vector.shape_cast %315 : vector<8x128xf32> to vector<1x8x128xf32>
    tpu.vector_store %arg16[%321, %c0_100, %c0_101], %324 {strides = array<i32>} : memref<8x8x128xf32, #tpu.memory_space<vmem>>, vector<1x8x128xf32>,
    %c4_i32 = arith.constant 4 : i32
    %325 = arith.truncf %290 : vector<8x128xf32> to vector<8x128xbf16>
    %c0_102 = arith.constant 0 : index
    %c0_103 = arith.constant 0 : index
    %326 = vector.load %arg3[%c0_102, %c0_103] : memref<128x512xbf16, #tpu.memory_space<vmem>>, vector<128x512xbf16>
    %cst_104 = arith.constant dense<0.000000e+00> : vector<8x512xf32>
    %327 = tpu.matmul %325, %326, %cst_104 {dimension_numbers = #tpu.dot_dimension_numbers<[1], [0], [0], [1], [0, 0, 1, 1], [], []>} : vector<8x128xbf16>, vector<128x512xbf16>, vector<8x512xf32> -> vector<8x512xf32>
    %328 = arith.truncf %315 : vector<8x128xf32> to vector<8x128xbf16>
    %c0_105 = arith.constant 0 : index
    %c0_106 = arith.constant 0 : index
    %329 = vector.load %arg4[%c0_105, %c0_106] : memref<128x512xbf16, #tpu.memory_space<vmem>>, vector<128x512xbf16>
    %cst_107 = arith.constant dense<0.000000e+00> : vector<8x512xf32>
    %330 = tpu.matmul %328, %329, %cst_107 {dimension_numbers = #tpu.dot_dimension_numbers<[1], [0], [0], [1], [0, 0, 1, 1], [], []>} : vector<8x128xbf16>, vector<128x512xbf16>, vector<8x512xf32> -> vector<8x512xf32>
    %331 = arith.index_cast %c4_i32 : i32 to index
    %c0_108 = arith.constant 0 : index
    %c0_109 = arith.constant 0 : index
    %332 = vector.load %arg13[%331, %c0_108, %c0_109] : memref<8x8x512xbf16, #tpu.memory_space<vmem>>, vector<1x8x512xbf16>
    %333 = vector.shape_cast %332 : vector<1x8x512xbf16> to vector<8x512xbf16>
    %334 = arith.extf %333 : vector<8x512xbf16> to vector<8x512xf32>
    %335 = arith.addf %334, %327 : vector<8x512xf32>
    %c7_i32_110 = arith.constant 7 : i32
    %336 = arith.subi %c7_i32_110, %c4_i32 : i32
    %337 = arith.index_cast %336 : i32 to index
    %c0_111 = arith.constant 0 : index
    %c0_112 = arith.constant 0 : index
    %338 = vector.load %arg14[%337, %c0_111, %c0_112] : memref<8x8x512xbf16, #tpu.memory_space<vmem>>, vector<1x8x512xbf16>
    %339 = vector.shape_cast %338 : vector<1x8x512xbf16> to vector<8x512xbf16>
    %340 = arith.extf %339 : vector<8x512xbf16> to vector<8x512xf32>
    %341 = arith.addf %340, %330 : vector<8x512xf32>
    %342 = vector.extract_strided_slice %335 {offsets = [0, 0], sizes = [8, 128], strides = [1, 1]} : vector<8x512xf32> to vector<8x128xf32>
    %343 = arith.negf %342 : vector<8x128xf32>
    %344 = math.exp %343 : vector<8x128xf32>
    %cst_113 = arith.constant 1.000000e+00 : f32
    %345 = vector.broadcast %cst_113 : f32 to vector<8x128xf32>
    %346 = arith.addf %345, %344 : vector<8x128xf32>
    %347 = arith.divf %345, %346 : vector<8x128xf32>
    %348 = vector.extract_strided_slice %335 {offsets = [0, 128], sizes = [8, 128], strides = [1, 1]} : vector<8x512xf32> to vector<8x128xf32>
    %349 = arith.negf %348 : vector<8x128xf32>
    %350 = math.exp %349 : vector<8x128xf32>
    %cst_114 = arith.constant 1.000000e+00 : f32
    %351 = vector.broadcast %cst_114 : f32 to vector<8x128xf32>
    %352 = arith.addf %351, %350 : vector<8x128xf32>
    %353 = arith.divf %351, %352 : vector<8x128xf32>
    %354 = vector.extract_strided_slice %335 {offsets = [0, 256], sizes = [8, 128], strides = [1, 1]} : vector<8x512xf32> to vector<8x128xf32>
    %355 = math.tanh %354 : vector<8x128xf32>
    %356 = vector.extract_strided_slice %335 {offsets = [0, 384], sizes = [8, 128], strides = [1, 1]} : vector<8x512xf32> to vector<8x128xf32>
    %357 = arith.negf %356 : vector<8x128xf32>
    %358 = math.exp %357 : vector<8x128xf32>
    %cst_115 = arith.constant 1.000000e+00 : f32
    %359 = vector.broadcast %cst_115 : f32 to vector<8x128xf32>
    %360 = arith.addf %359, %358 : vector<8x128xf32>
    %361 = arith.divf %359, %360 : vector<8x128xf32>
    %362 = arith.mulf %353, %288 : vector<8x128xf32>
    %363 = arith.mulf %347, %355 : vector<8x128xf32>
    %364 = arith.addf %362, %363 : vector<8x128xf32>
    %365 = math.tanh %364 : vector<8x128xf32>
    %366 = arith.mulf %361, %365 : vector<8x128xf32>
    %367 = vector.extract_strided_slice %341 {offsets = [0, 0], sizes = [8, 128], strides = [1, 1]} : vector<8x512xf32> to vector<8x128xf32>
    %368 = arith.negf %367 : vector<8x128xf32>
    %369 = math.exp %368 : vector<8x128xf32>
    %cst_116 = arith.constant 1.000000e+00 : f32
    %370 = vector.broadcast %cst_116 : f32 to vector<8x128xf32>
    %371 = arith.addf %370, %369 : vector<8x128xf32>
    %372 = arith.divf %370, %371 : vector<8x128xf32>
    %373 = vector.extract_strided_slice %341 {offsets = [0, 128], sizes = [8, 128], strides = [1, 1]} : vector<8x512xf32> to vector<8x128xf32>
    %374 = arith.negf %373 : vector<8x128xf32>
    %375 = math.exp %374 : vector<8x128xf32>
    %cst_117 = arith.constant 1.000000e+00 : f32
    %376 = vector.broadcast %cst_117 : f32 to vector<8x128xf32>
    %377 = arith.addf %376, %375 : vector<8x128xf32>
    %378 = arith.divf %376, %377 : vector<8x128xf32>
    %379 = vector.extract_strided_slice %341 {offsets = [0, 256], sizes = [8, 128], strides = [1, 1]} : vector<8x512xf32> to vector<8x128xf32>
    %380 = math.tanh %379 : vector<8x128xf32>
    %381 = vector.extract_strided_slice %341 {offsets = [0, 384], sizes = [8, 128], strides = [1, 1]} : vector<8x512xf32> to vector<8x128xf32>
    %382 = arith.negf %381 : vector<8x128xf32>
    %383 = math.exp %382 : vector<8x128xf32>
    %cst_118 = arith.constant 1.000000e+00 : f32
    %384 = vector.broadcast %cst_118 : f32 to vector<8x128xf32>
    %385 = arith.addf %384, %383 : vector<8x128xf32>
    %386 = arith.divf %384, %385 : vector<8x128xf32>
    %387 = arith.mulf %378, %313 : vector<8x128xf32>
    %388 = arith.mulf %372, %380 : vector<8x128xf32>
    %389 = arith.addf %387, %388 : vector<8x128xf32>
    %390 = math.tanh %389 : vector<8x128xf32>
    %391 = arith.mulf %386, %390 : vector<8x128xf32>
    %392 = arith.index_cast %c4_i32 : i32 to index
    %c0_119 = arith.constant 0 : index
    %c0_120 = arith.constant 0 : index
    %393 = vector.load %arg15[%392, %c0_119, %c0_120] : memref<8x8x128xf32, #tpu.memory_space<vmem>>, vector<1x8x128xf32>
    %394 = vector.shape_cast %393 : vector<1x8x128xf32> to vector<8x128xf32>
    %395 = vector.shape_cast %366 : vector<8x128xf32> to vector<1x8x128xf32>
    tpu.vector_store %arg15[%392, %c0_119, %c0_120], %395 {strides = array<i32>} : memref<8x8x128xf32, #tpu.memory_space<vmem>>, vector<1x8x128xf32>,
    %c7_i32_121 = arith.constant 7 : i32
    %396 = arith.subi %c7_i32_121, %c4_i32 : i32
    %397 = arith.index_cast %396 : i32 to index
    %c0_122 = arith.constant 0 : index
    %c0_123 = arith.constant 0 : index
    %398 = vector.load %arg16[%397, %c0_122, %c0_123] : memref<8x8x128xf32, #tpu.memory_space<vmem>>, vector<1x8x128xf32>
    %399 = vector.shape_cast %398 : vector<1x8x128xf32> to vector<8x128xf32>
    %400 = vector.shape_cast %391 : vector<8x128xf32> to vector<1x8x128xf32>
    tpu.vector_store %arg16[%397, %c0_122, %c0_123], %400 {strides = array<i32>} : memref<8x8x128xf32, #tpu.memory_space<vmem>>, vector<1x8x128xf32>,
    %c5_i32 = arith.constant 5 : i32
    %401 = arith.truncf %366 : vector<8x128xf32> to vector<8x128xbf16>
    %c0_124 = arith.constant 0 : index
    %c0_125 = arith.constant 0 : index
    %402 = vector.load %arg3[%c0_124, %c0_125] : memref<128x512xbf16, #tpu.memory_space<vmem>>, vector<128x512xbf16>
    %cst_126 = arith.constant dense<0.000000e+00> : vector<8x512xf32>
    %403 = tpu.matmul %401, %402, %cst_126 {dimension_numbers = #tpu.dot_dimension_numbers<[1], [0], [0], [1], [0, 0, 1, 1], [], []>} : vector<8x128xbf16>, vector<128x512xbf16>, vector<8x512xf32> -> vector<8x512xf32>
    %404 = arith.truncf %391 : vector<8x128xf32> to vector<8x128xbf16>
    %c0_127 = arith.constant 0 : index
    %c0_128 = arith.constant 0 : index
    %405 = vector.load %arg4[%c0_127, %c0_128] : memref<128x512xbf16, #tpu.memory_space<vmem>>, vector<128x512xbf16>
    %cst_129 = arith.constant dense<0.000000e+00> : vector<8x512xf32>
    %406 = tpu.matmul %404, %405, %cst_129 {dimension_numbers = #tpu.dot_dimension_numbers<[1], [0], [0], [1], [0, 0, 1, 1], [], []>} : vector<8x128xbf16>, vector<128x512xbf16>, vector<8x512xf32> -> vector<8x512xf32>
    %407 = arith.index_cast %c5_i32 : i32 to index
    %c0_130 = arith.constant 0 : index
    %c0_131 = arith.constant 0 : index
    %408 = vector.load %arg13[%407, %c0_130, %c0_131] : memref<8x8x512xbf16, #tpu.memory_space<vmem>>, vector<1x8x512xbf16>
    %409 = vector.shape_cast %408 : vector<1x8x512xbf16> to vector<8x512xbf16>
    %410 = arith.extf %409 : vector<8x512xbf16> to vector<8x512xf32>
    %411 = arith.addf %410, %403 : vector<8x512xf32>
    %c7_i32_132 = arith.constant 7 : i32
    %412 = arith.subi %c7_i32_132, %c5_i32 : i32
    %413 = arith.index_cast %412 : i32 to index
    %c0_133 = arith.constant 0 : index
    %c0_134 = arith.constant 0 : index
    %414 = vector.load %arg14[%413, %c0_133, %c0_134] : memref<8x8x512xbf16, #tpu.memory_space<vmem>>, vector<1x8x512xbf16>
    %415 = vector.shape_cast %414 : vector<1x8x512xbf16> to vector<8x512xbf16>
    %416 = arith.extf %415 : vector<8x512xbf16> to vector<8x512xf32>
    %417 = arith.addf %416, %406 : vector<8x512xf32>
    %418 = vector.extract_strided_slice %411 {offsets = [0, 0], sizes = [8, 128], strides = [1, 1]} : vector<8x512xf32> to vector<8x128xf32>
    %419 = arith.negf %418 : vector<8x128xf32>
    %420 = math.exp %419 : vector<8x128xf32>
    %cst_135 = arith.constant 1.000000e+00 : f32
    %421 = vector.broadcast %cst_135 : f32 to vector<8x128xf32>
    %422 = arith.addf %421, %420 : vector<8x128xf32>
    %423 = arith.divf %421, %422 : vector<8x128xf32>
    %424 = vector.extract_strided_slice %411 {offsets = [0, 128], sizes = [8, 128], strides = [1, 1]} : vector<8x512xf32> to vector<8x128xf32>
    %425 = arith.negf %424 : vector<8x128xf32>
    %426 = math.exp %425 : vector<8x128xf32>
    %cst_136 = arith.constant 1.000000e+00 : f32
    %427 = vector.broadcast %cst_136 : f32 to vector<8x128xf32>
    %428 = arith.addf %427, %426 : vector<8x128xf32>
    %429 = arith.divf %427, %428 : vector<8x128xf32>
    %430 = vector.extract_strided_slice %411 {offsets = [0, 256], sizes = [8, 128], strides = [1, 1]} : vector<8x512xf32> to vector<8x128xf32>
    %431 = math.tanh %430 : vector<8x128xf32>
    %432 = vector.extract_strided_slice %411 {offsets = [0, 384], sizes = [8, 128], strides = [1, 1]} : vector<8x512xf32> to vector<8x128xf32>
    %433 = arith.negf %432 : vector<8x128xf32>
    %434 = math.exp %433 : vector<8x128xf32>
    %cst_137 = arith.constant 1.000000e+00 : f32
    %435 = vector.broadcast %cst_137 : f32 to vector<8x128xf32>
    %436 = arith.addf %435, %434 : vector<8x128xf32>
    %437 = arith.divf %435, %436 : vector<8x128xf32>
    %438 = arith.mulf %429, %364 : vector<8x128xf32>
    %439 = arith.mulf %423, %431 : vector<8x128xf32>
    %440 = arith.addf %438, %439 : vector<8x128xf32>
    %441 = math.tanh %440 : vector<8x128xf32>
    %442 = arith.mulf %437, %441 : vector<8x128xf32>
    %443 = vector.extract_strided_slice %417 {offsets = [0, 0], sizes = [8, 128], strides = [1, 1]} : vector<8x512xf32> to vector<8x128xf32>
    %444 = arith.negf %443 : vector<8x128xf32>
    %445 = math.exp %444 : vector<8x128xf32>
    %cst_138 = arith.constant 1.000000e+00 : f32
    %446 = vector.broadcast %cst_138 : f32 to vector<8x128xf32>
    %447 = arith.addf %446, %445 : vector<8x128xf32>
    %448 = arith.divf %446, %447 : vector<8x128xf32>
    %449 = vector.extract_strided_slice %417 {offsets = [0, 128], sizes = [8, 128], strides = [1, 1]} : vector<8x512xf32> to vector<8x128xf32>
    %450 = arith.negf %449 : vector<8x128xf32>
    %451 = math.exp %450 : vector<8x128xf32>
    %cst_139 = arith.constant 1.000000e+00 : f32
    %452 = vector.broadcast %cst_139 : f32 to vector<8x128xf32>
    %453 = arith.addf %452, %451 : vector<8x128xf32>
    %454 = arith.divf %452, %453 : vector<8x128xf32>
    %455 = vector.extract_strided_slice %417 {offsets = [0, 256], sizes = [8, 128], strides = [1, 1]} : vector<8x512xf32> to vector<8x128xf32>
    %456 = math.tanh %455 : vector<8x128xf32>
    %457 = vector.extract_strided_slice %417 {offsets = [0, 384], sizes = [8, 128], strides = [1, 1]} : vector<8x512xf32> to vector<8x128xf32>
    %458 = arith.negf %457 : vector<8x128xf32>
    %459 = math.exp %458 : vector<8x128xf32>
    %cst_140 = arith.constant 1.000000e+00 : f32
    %460 = vector.broadcast %cst_140 : f32 to vector<8x128xf32>
    %461 = arith.addf %460, %459 : vector<8x128xf32>
    %462 = arith.divf %460, %461 : vector<8x128xf32>
    %463 = arith.mulf %454, %389 : vector<8x128xf32>
    %464 = arith.mulf %448, %456 : vector<8x128xf32>
    %465 = arith.addf %463, %464 : vector<8x128xf32>
    %466 = math.tanh %465 : vector<8x128xf32>
    %467 = arith.mulf %462, %466 : vector<8x128xf32>
    %468 = arith.index_cast %c5_i32 : i32 to index
    %c0_141 = arith.constant 0 : index
    %c0_142 = arith.constant 0 : index
    %469 = vector.load %arg15[%468, %c0_141, %c0_142] : memref<8x8x128xf32, #tpu.memory_space<vmem>>, vector<1x8x128xf32>
    %470 = vector.shape_cast %469 : vector<1x8x128xf32> to vector<8x128xf32>
    %471 = vector.shape_cast %442 : vector<8x128xf32> to vector<1x8x128xf32>
    tpu.vector_store %arg15[%468, %c0_141, %c0_142], %471 {strides = array<i32>} : memref<8x8x128xf32, #tpu.memory_space<vmem>>, vector<1x8x128xf32>,
    %c7_i32_143 = arith.constant 7 : i32
    %472 = arith.subi %c7_i32_143, %c5_i32 : i32
    %473 = arith.index_cast %472 : i32 to index
    %c0_144 = arith.constant 0 : index
    %c0_145 = arith.constant 0 : index
    %474 = vector.load %arg16[%473, %c0_144, %c0_145] : memref<8x8x128xf32, #tpu.memory_space<vmem>>, vector<1x8x128xf32>
    %475 = vector.shape_cast %474 : vector<1x8x128xf32> to vector<8x128xf32>
    %476 = vector.shape_cast %467 : vector<8x128xf32> to vector<1x8x128xf32>
    tpu.vector_store %arg16[%473, %c0_144, %c0_145], %476 {strides = array<i32>} : memref<8x8x128xf32, #tpu.memory_space<vmem>>, vector<1x8x128xf32>,
    %c6_i32 = arith.constant 6 : i32
    %477 = arith.truncf %442 : vector<8x128xf32> to vector<8x128xbf16>
    %c0_146 = arith.constant 0 : index
    %c0_147 = arith.constant 0 : index
    %478 = vector.load %arg3[%c0_146, %c0_147] : memref<128x512xbf16, #tpu.memory_space<vmem>>, vector<128x512xbf16>
    %cst_148 = arith.constant dense<0.000000e+00> : vector<8x512xf32>
    %479 = tpu.matmul %477, %478, %cst_148 {dimension_numbers = #tpu.dot_dimension_numbers<[1], [0], [0], [1], [0, 0, 1, 1], [], []>} : vector<8x128xbf16>, vector<128x512xbf16>, vector<8x512xf32> -> vector<8x512xf32>
    %480 = arith.truncf %467 : vector<8x128xf32> to vector<8x128xbf16>
    %c0_149 = arith.constant 0 : index
    %c0_150 = arith.constant 0 : index
    %481 = vector.load %arg4[%c0_149, %c0_150] : memref<128x512xbf16, #tpu.memory_space<vmem>>, vector<128x512xbf16>
    %cst_151 = arith.constant dense<0.000000e+00> : vector<8x512xf32>
    %482 = tpu.matmul %480, %481, %cst_151 {dimension_numbers = #tpu.dot_dimension_numbers<[1], [0], [0], [1], [0, 0, 1, 1], [], []>} : vector<8x128xbf16>, vector<128x512xbf16>, vector<8x512xf32> -> vector<8x512xf32>
    %483 = arith.index_cast %c6_i32 : i32 to index
    %c0_152 = arith.constant 0 : index
    %c0_153 = arith.constant 0 : index
    %484 = vector.load %arg13[%483, %c0_152, %c0_153] : memref<8x8x512xbf16, #tpu.memory_space<vmem>>, vector<1x8x512xbf16>
    %485 = vector.shape_cast %484 : vector<1x8x512xbf16> to vector<8x512xbf16>
    %486 = arith.extf %485 : vector<8x512xbf16> to vector<8x512xf32>
    %487 = arith.addf %486, %479 : vector<8x512xf32>
    %c7_i32_154 = arith.constant 7 : i32
    %488 = arith.subi %c7_i32_154, %c6_i32 : i32
    %489 = arith.index_cast %488 : i32 to index
    %c0_155 = arith.constant 0 : index
    %c0_156 = arith.constant 0 : index
    %490 = vector.load %arg14[%489, %c0_155, %c0_156] : memref<8x8x512xbf16, #tpu.memory_space<vmem>>, vector<1x8x512xbf16>
    %491 = vector.shape_cast %490 : vector<1x8x512xbf16> to vector<8x512xbf16>
    %492 = arith.extf %491 : vector<8x512xbf16> to vector<8x512xf32>
    %493 = arith.addf %492, %482 : vector<8x512xf32>
    %494 = vector.extract_strided_slice %487 {offsets = [0, 0], sizes = [8, 128], strides = [1, 1]} : vector<8x512xf32> to vector<8x128xf32>
    %495 = arith.negf %494 : vector<8x128xf32>
    %496 = math.exp %495 : vector<8x128xf32>
    %cst_157 = arith.constant 1.000000e+00 : f32
    %497 = vector.broadcast %cst_157 : f32 to vector<8x128xf32>
    %498 = arith.addf %497, %496 : vector<8x128xf32>
    %499 = arith.divf %497, %498 : vector<8x128xf32>
    %500 = vector.extract_strided_slice %487 {offsets = [0, 128], sizes = [8, 128], strides = [1, 1]} : vector<8x512xf32> to vector<8x128xf32>
    %501 = arith.negf %500 : vector<8x128xf32>
    %502 = math.exp %501 : vector<8x128xf32>
    %cst_158 = arith.constant 1.000000e+00 : f32
    %503 = vector.broadcast %cst_158 : f32 to vector<8x128xf32>
    %504 = arith.addf %503, %502 : vector<8x128xf32>
    %505 = arith.divf %503, %504 : vector<8x128xf32>
    %506 = vector.extract_strided_slice %487 {offsets = [0, 256], sizes = [8, 128], strides = [1, 1]} : vector<8x512xf32> to vector<8x128xf32>
    %507 = math.tanh %506 : vector<8x128xf32>
    %508 = vector.extract_strided_slice %487 {offsets = [0, 384], sizes = [8, 128], strides = [1, 1]} : vector<8x512xf32> to vector<8x128xf32>
    %509 = arith.negf %508 : vector<8x128xf32>
    %510 = math.exp %509 : vector<8x128xf32>
    %cst_159 = arith.constant 1.000000e+00 : f32
    %511 = vector.broadcast %cst_159 : f32 to vector<8x128xf32>
    %512 = arith.addf %511, %510 : vector<8x128xf32>
    %513 = arith.divf %511, %512 : vector<8x128xf32>
    %514 = arith.mulf %505, %440 : vector<8x128xf32>
    %515 = arith.mulf %499, %507 : vector<8x128xf32>
    %516 = arith.addf %514, %515 : vector<8x128xf32>
    %517 = math.tanh %516 : vector<8x128xf32>
    %518 = arith.mulf %513, %517 : vector<8x128xf32>
    %519 = vector.extract_strided_slice %493 {offsets = [0, 0], sizes = [8, 128], strides = [1, 1]} : vector<8x512xf32> to vector<8x128xf32>
    %520 = arith.negf %519 : vector<8x128xf32>
    %521 = math.exp %520 : vector<8x128xf32>
    %cst_160 = arith.constant 1.000000e+00 : f32
    %522 = vector.broadcast %cst_160 : f32 to vector<8x128xf32>
    %523 = arith.addf %522, %521 : vector<8x128xf32>
    %524 = arith.divf %522, %523 : vector<8x128xf32>
    %525 = vector.extract_strided_slice %493 {offsets = [0, 128], sizes = [8, 128], strides = [1, 1]} : vector<8x512xf32> to vector<8x128xf32>
    %526 = arith.negf %525 : vector<8x128xf32>
    %527 = math.exp %526 : vector<8x128xf32>
    %cst_161 = arith.constant 1.000000e+00 : f32
    %528 = vector.broadcast %cst_161 : f32 to vector<8x128xf32>
    %529 = arith.addf %528, %527 : vector<8x128xf32>
    %530 = arith.divf %528, %529 : vector<8x128xf32>
    %531 = vector.extract_strided_slice %493 {offsets = [0, 256], sizes = [8, 128], strides = [1, 1]} : vector<8x512xf32> to vector<8x128xf32>
    %532 = math.tanh %531 : vector<8x128xf32>
    %533 = vector.extract_strided_slice %493 {offsets = [0, 384], sizes = [8, 128], strides = [1, 1]} : vector<8x512xf32> to vector<8x128xf32>
    %534 = arith.negf %533 : vector<8x128xf32>
    %535 = math.exp %534 : vector<8x128xf32>
    %cst_162 = arith.constant 1.000000e+00 : f32
    %536 = vector.broadcast %cst_162 : f32 to vector<8x128xf32>
    %537 = arith.addf %536, %535 : vector<8x128xf32>
    %538 = arith.divf %536, %537 : vector<8x128xf32>
    %539 = arith.mulf %530, %465 : vector<8x128xf32>
    %540 = arith.mulf %524, %532 : vector<8x128xf32>
    %541 = arith.addf %539, %540 : vector<8x128xf32>
    %542 = math.tanh %541 : vector<8x128xf32>
    %543 = arith.mulf %538, %542 : vector<8x128xf32>
    %544 = arith.index_cast %c6_i32 : i32 to index
    %c0_163 = arith.constant 0 : index
    %c0_164 = arith.constant 0 : index
    %545 = vector.load %arg15[%544, %c0_163, %c0_164] : memref<8x8x128xf32, #tpu.memory_space<vmem>>, vector<1x8x128xf32>
    %546 = vector.shape_cast %545 : vector<1x8x128xf32> to vector<8x128xf32>
    %547 = vector.shape_cast %518 : vector<8x128xf32> to vector<1x8x128xf32>
    tpu.vector_store %arg15[%544, %c0_163, %c0_164], %547 {strides = array<i32>} : memref<8x8x128xf32, #tpu.memory_space<vmem>>, vector<1x8x128xf32>,
    %c7_i32_165 = arith.constant 7 : i32
    %548 = arith.subi %c7_i32_165, %c6_i32 : i32
    %549 = arith.index_cast %548 : i32 to index
    %c0_166 = arith.constant 0 : index
    %c0_167 = arith.constant 0 : index
    %550 = vector.load %arg16[%549, %c0_166, %c0_167] : memref<8x8x128xf32, #tpu.memory_space<vmem>>, vector<1x8x128xf32>
    %551 = vector.shape_cast %550 : vector<1x8x128xf32> to vector<8x128xf32>
    %552 = vector.shape_cast %543 : vector<8x128xf32> to vector<1x8x128xf32>
    tpu.vector_store %arg16[%549, %c0_166, %c0_167], %552 {strides = array<i32>} : memref<8x8x128xf32, #tpu.memory_space<vmem>>, vector<1x8x128xf32>,
    %c7_i32_168 = arith.constant 7 : i32
    %553 = arith.truncf %518 : vector<8x128xf32> to vector<8x128xbf16>
    %c0_169 = arith.constant 0 : index
    %c0_170 = arith.constant 0 : index
    %554 = vector.load %arg3[%c0_169, %c0_170] : memref<128x512xbf16, #tpu.memory_space<vmem>>, vector<128x512xbf16>
    %cst_171 = arith.constant dense<0.000000e+00> : vector<8x512xf32>
    %555 = tpu.matmul %553, %554, %cst_171 {dimension_numbers = #tpu.dot_dimension_numbers<[1], [0], [0], [1], [0, 0, 1, 1], [], []>} : vector<8x128xbf16>, vector<128x512xbf16>, vector<8x512xf32> -> vector<8x512xf32>
    %556 = arith.truncf %543 : vector<8x128xf32> to vector<8x128xbf16>
    %c0_172 = arith.constant 0 : index
    %c0_173 = arith.constant 0 : index
    %557 = vector.load %arg4[%c0_172, %c0_173] : memref<128x512xbf16, #tpu.memory_space<vmem>>, vector<128x512xbf16>
    %cst_174 = arith.constant dense<0.000000e+00> : vector<8x512xf32>
    %558 = tpu.matmul %556, %557, %cst_174 {dimension_numbers = #tpu.dot_dimension_numbers<[1], [0], [0], [1], [0, 0, 1, 1], [], []>} : vector<8x128xbf16>, vector<128x512xbf16>, vector<8x512xf32> -> vector<8x512xf32>
    %559 = arith.index_cast %c7_i32_168 : i32 to index
    %c0_175 = arith.constant 0 : index
    %c0_176 = arith.constant 0 : index
    %560 = vector.load %arg13[%559, %c0_175, %c0_176] : memref<8x8x512xbf16, #tpu.memory_space<vmem>>, vector<1x8x512xbf16>
    %561 = vector.shape_cast %560 : vector<1x8x512xbf16> to vector<8x512xbf16>
    %562 = arith.extf %561 : vector<8x512xbf16> to vector<8x512xf32>
    %563 = arith.addf %562, %555 : vector<8x512xf32>
    %c7_i32_177 = arith.constant 7 : i32
    %564 = arith.subi %c7_i32_177, %c7_i32_168 : i32
    %565 = arith.index_cast %564 : i32 to index
    %c0_178 = arith.constant 0 : index
    %c0_179 = arith.constant 0 : index
    %566 = vector.load %arg14[%565, %c0_178, %c0_179] : memref<8x8x512xbf16, #tpu.memory_space<vmem>>, vector<1x8x512xbf16>
    %567 = vector.shape_cast %566 : vector<1x8x512xbf16> to vector<8x512xbf16>
    %568 = arith.extf %567 : vector<8x512xbf16> to vector<8x512xf32>
    %569 = arith.addf %568, %558 : vector<8x512xf32>
    %570 = vector.extract_strided_slice %563 {offsets = [0, 0], sizes = [8, 128], strides = [1, 1]} : vector<8x512xf32> to vector<8x128xf32>
    %571 = arith.negf %570 : vector<8x128xf32>
    %572 = math.exp %571 : vector<8x128xf32>
    %cst_180 = arith.constant 1.000000e+00 : f32
    %573 = vector.broadcast %cst_180 : f32 to vector<8x128xf32>
    %574 = arith.addf %573, %572 : vector<8x128xf32>
    %575 = arith.divf %573, %574 : vector<8x128xf32>
    %576 = vector.extract_strided_slice %563 {offsets = [0, 128], sizes = [8, 128], strides = [1, 1]} : vector<8x512xf32> to vector<8x128xf32>
    %577 = arith.negf %576 : vector<8x128xf32>
    %578 = math.exp %577 : vector<8x128xf32>
    %cst_181 = arith.constant 1.000000e+00 : f32
    %579 = vector.broadcast %cst_181 : f32 to vector<8x128xf32>
    %580 = arith.addf %579, %578 : vector<8x128xf32>
    %581 = arith.divf %579, %580 : vector<8x128xf32>
    %582 = vector.extract_strided_slice %563 {offsets = [0, 256], sizes = [8, 128], strides = [1, 1]} : vector<8x512xf32> to vector<8x128xf32>
    %583 = math.tanh %582 : vector<8x128xf32>
    %584 = vector.extract_strided_slice %563 {offsets = [0, 384], sizes = [8, 128], strides = [1, 1]} : vector<8x512xf32> to vector<8x128xf32>
    %585 = arith.negf %584 : vector<8x128xf32>
    %586 = math.exp %585 : vector<8x128xf32>
    %cst_182 = arith.constant 1.000000e+00 : f32
    %587 = vector.broadcast %cst_182 : f32 to vector<8x128xf32>
    %588 = arith.addf %587, %586 : vector<8x128xf32>
    %589 = arith.divf %587, %588 : vector<8x128xf32>
    %590 = arith.mulf %581, %516 : vector<8x128xf32>
    %591 = arith.mulf %575, %583 : vector<8x128xf32>
    %592 = arith.addf %590, %591 : vector<8x128xf32>
    %593 = math.tanh %592 : vector<8x128xf32>
    %594 = arith.mulf %589, %593 : vector<8x128xf32>
    %595 = vector.extract_strided_slice %569 {offsets = [0, 0], sizes = [8, 128], strides = [1, 1]} : vector<8x512xf32> to vector<8x128xf32>
    %596 = arith.negf %595 : vector<8x128xf32>
    %597 = math.exp %596 : vector<8x128xf32>
    %cst_183 = arith.constant 1.000000e+00 : f32
    %598 = vector.broadcast %cst_183 : f32 to vector<8x128xf32>
    %599 = arith.addf %598, %597 : vector<8x128xf32>
    %600 = arith.divf %598, %599 : vector<8x128xf32>
    %601 = vector.extract_strided_slice %569 {offsets = [0, 128], sizes = [8, 128], strides = [1, 1]} : vector<8x512xf32> to vector<8x128xf32>
    %602 = arith.negf %601 : vector<8x128xf32>
    %603 = math.exp %602 : vector<8x128xf32>
    %cst_184 = arith.constant 1.000000e+00 : f32
    %604 = vector.broadcast %cst_184 : f32 to vector<8x128xf32>
    %605 = arith.addf %604, %603 : vector<8x128xf32>
    %606 = arith.divf %604, %605 : vector<8x128xf32>
    %607 = vector.extract_strided_slice %569 {offsets = [0, 256], sizes = [8, 128], strides = [1, 1]} : vector<8x512xf32> to vector<8x128xf32>
    %608 = math.tanh %607 : vector<8x128xf32>
    %609 = vector.extract_strided_slice %569 {offsets = [0, 384], sizes = [8, 128], strides = [1, 1]} : vector<8x512xf32> to vector<8x128xf32>
    %610 = arith.negf %609 : vector<8x128xf32>
    %611 = math.exp %610 : vector<8x128xf32>
    %cst_185 = arith.constant 1.000000e+00 : f32
    %612 = vector.broadcast %cst_185 : f32 to vector<8x128xf32>
    %613 = arith.addf %612, %611 : vector<8x128xf32>
    %614 = arith.divf %612, %613 : vector<8x128xf32>
    %615 = arith.mulf %606, %541 : vector<8x128xf32>
    %616 = arith.mulf %600, %608 : vector<8x128xf32>
    %617 = arith.addf %615, %616 : vector<8x128xf32>
    %618 = math.tanh %617 : vector<8x128xf32>
    %619 = arith.mulf %614, %618 : vector<8x128xf32>
    %620 = arith.index_cast %c7_i32_168 : i32 to index
    %c0_186 = arith.constant 0 : index
    %c0_187 = arith.constant 0 : index
    %621 = vector.load %arg15[%620, %c0_186, %c0_187] : memref<8x8x128xf32, #tpu.memory_space<vmem>>, vector<1x8x128xf32>
    %622 = vector.shape_cast %621 : vector<1x8x128xf32> to vector<8x128xf32>
    %623 = vector.shape_cast %594 : vector<8x128xf32> to vector<1x8x128xf32>
    tpu.vector_store %arg15[%620, %c0_186, %c0_187], %623 {strides = array<i32>} : memref<8x8x128xf32, #tpu.memory_space<vmem>>, vector<1x8x128xf32>,
    %c7_i32_188 = arith.constant 7 : i32
    %624 = arith.subi %c7_i32_188, %c7_i32_168 : i32
    %625 = arith.index_cast %624 : i32 to index
    %c0_189 = arith.constant 0 : index
    %c0_190 = arith.constant 0 : index
    %626 = vector.load %arg16[%625, %c0_189, %c0_190] : memref<8x8x128xf32, #tpu.memory_space<vmem>>, vector<1x8x128xf32>
    %627 = vector.shape_cast %626 : vector<1x8x128xf32> to vector<8x128xf32>
    %628 = vector.shape_cast %619 : vector<8x128xf32> to vector<1x8x128xf32>
    tpu.vector_store %arg16[%625, %c0_189, %c0_190], %628 {strides = array<i32>} : memref<8x8x128xf32, #tpu.memory_space<vmem>>, vector<1x8x128xf32>,
    %c8_i32 = arith.constant 8 : i32
    %c0_191 = arith.constant 0 : index
    %c0_192 = arith.constant 0 : index
    %c0_193 = arith.constant 0 : index
    %629 = vector.load %arg15[%c0_191, %c0_192, %c0_193] : memref<8x8x128xf32, #tpu.memory_space<vmem>>, vector<8x8x128xf32>
    %c0_194 = arith.constant 0 : index
    %c0_195 = arith.constant 0 : index
    %c0_196 = arith.constant 0 : index
    %630 = vector.load %arg16[%c0_194, %c0_195, %c0_196] : memref<8x8x128xf32, #tpu.memory_space<vmem>>, vector<8x8x128xf32>
    %c0_197 = arith.constant 0 : index
    %c0_198 = arith.constant 0 : index
    %631 = vector.load %arg7[%c0_197, %c0_198] : memref<1x128xf32, #tpu.memory_space<vmem>>, vector<1x128xf32>
    %632 = vector.shape_cast %631 : vector<1x128xf32> to vector<1x1x128xf32>
    %633 = vector.broadcast %632 : vector<1x1x128xf32> to vector<8x8x128xf32>
    %634 = arith.mulf %629, %633 : vector<8x8x128xf32>
    %cst_199 = arith.constant dense<0.000000e+00> : vector<8x8xf32>
    %635 = vector.multi_reduction <add>, %634, %cst_199 [2] : vector<8x8x128xf32> to vector<8x8xf32>
    %636 = vector.shape_cast %635 : vector<8x8xf32> to vector<8x8x1xf32>
    %c0_200 = arith.constant 0 : index
    %c0_201 = arith.constant 0 : index
    %637 = vector.load %arg8[%c0_200, %c0_201] : memref<1x128xf32, #tpu.memory_space<vmem>>, vector<1x128xf32>
    %638 = vector.shape_cast %637 : vector<1x128xf32> to vector<1x1x128xf32>
    %639 = vector.broadcast %638 : vector<1x1x128xf32> to vector<8x8x128xf32>
    %640 = arith.mulf %630, %639 : vector<8x8x128xf32>
    %cst_202 = arith.constant dense<0.000000e+00> : vector<8x8xf32>
    %641 = vector.multi_reduction <add>, %640, %cst_202 [2] : vector<8x8x128xf32> to vector<8x8xf32>
    %642 = vector.shape_cast %641 : vector<8x8xf32> to vector<8x8x1xf32>
    %643 = arith.addf %636, %642 : vector<8x8x1xf32>
    %cst_203 = arith.constant dense<0xFF800000> : vector<8x1xf32>
    %644 = vector.multi_reduction <maximumf>, %643, %cst_203 [0] : vector<8x8x1xf32> to vector<8x1xf32>
    %645 = vector.shape_cast %644 : vector<8x1xf32> to vector<1x8x1xf32>
    %646 = vector.broadcast %645 : vector<1x8x1xf32> to vector<8x8x1xf32>
    %647 = arith.subf %643, %646 : vector<8x8x1xf32>
    %648 = math.exp %647 : vector<8x8x1xf32>
    %cst_204 = arith.constant dense<0.000000e+00> : vector<8x1xf32>
    %649 = vector.multi_reduction <add>, %648, %cst_204 [0] : vector<8x8x1xf32> to vector<8x1xf32>
    %650 = vector.shape_cast %649 : vector<8x1xf32> to vector<1x8x1xf32>
    %651 = vector.broadcast %650 : vector<1x8x1xf32> to vector<8x8x1xf32>
    %652 = arith.divf %648, %651 : vector<8x8x1xf32>
    %653 = vector.broadcast %652 : vector<8x8x1xf32> to vector<8x8x128xf32>
    %654 = arith.mulf %653, %629 : vector<8x8x128xf32>
    %cst_205 = arith.constant dense<0.000000e+00> : vector<8x128xf32>
    %655 = vector.multi_reduction <add>, %654, %cst_205 [0] : vector<8x8x128xf32> to vector<8x128xf32>
    %656 = vector.broadcast %652 : vector<8x8x1xf32> to vector<8x8x128xf32>
    %657 = arith.mulf %656, %630 : vector<8x8x128xf32>
    %cst_206 = arith.constant dense<0.000000e+00> : vector<8x128xf32>
    %658 = vector.multi_reduction <add>, %657, %cst_206 [0] : vector<8x8x128xf32> to vector<8x128xf32>
    %659 = arith.truncf %655 : vector<8x128xf32> to vector<8x128xbf16>
    %c0_207 = arith.constant 0 : index
    %c0_208 = arith.constant 0 : index
    %660 = vector.load %arg9[%c0_207, %c0_208] : memref<128x4xbf16, #tpu.memory_space<vmem>>, vector<128x4xbf16>
    %cst_209 = arith.constant dense<0.000000e+00> : vector<8x4xf32>
    %661 = tpu.matmul %659, %660, %cst_209 {dimension_numbers = #tpu.dot_dimension_numbers<[1], [0], [0], [1], [0, 0, 1, 1], [], []>} : vector<8x128xbf16>, vector<128x4xbf16>, vector<8x4xf32> -> vector<8x4xf32>
    %662 = arith.truncf %658 : vector<8x128xf32> to vector<8x128xbf16>
    %c0_210 = arith.constant 0 : index
    %c0_211 = arith.constant 0 : index
    %663 = vector.load %arg10[%c0_210, %c0_211] : memref<128x4xbf16, #tpu.memory_space<vmem>>, vector<128x4xbf16>
    %cst_212 = arith.constant dense<0.000000e+00> : vector<8x4xf32>
    %664 = tpu.matmul %662, %663, %cst_212 {dimension_numbers = #tpu.dot_dimension_numbers<[1], [0], [0], [1], [0, 0, 1, 1], [], []>} : vector<8x128xbf16>, vector<128x4xbf16>, vector<8x4xf32> -> vector<8x4xf32>
    %665 = arith.addf %661, %664 : vector<8x4xf32>
    %c0_213 = arith.constant 0 : index
    %c0_214 = arith.constant 0 : index
    %666 = vector.load %arg11[%c0_213, %c0_214] : memref<1x4xf32, #tpu.memory_space<vmem>>, vector<1x4xf32>
    %667 = vector.broadcast %666 : vector<1x4xf32> to vector<8x4xf32>
    %668 = arith.addf %665, %667 : vector<8x4xf32>
    %c0_215 = arith.constant 0 : index
    %c0_216 = arith.constant 0 : index
    %669 = vector.load %arg12[%c0_215, %c0_216] : memref<8x4xf32, #tpu.memory_space<vmem>>, vector<8x4xf32>
    tpu.vector_store %arg12[%c0_215, %c0_216], %668 {strides = array<i32>} : memref<8x4xf32, #tpu.memory_space<vmem>>, vector<8x4xf32>,
    return
  }
  func.func @transform_0(%arg0: i32) -> (i32, i32, i32) {
    %c0_i32 = arith.constant 0 : i32
    %c0_i32_0 = arith.constant 0 : i32
    %c0_i32_1 = arith.constant 0 : i32
    return %c0_i32, %arg0, %c0_i32_0 : i32, i32, i32
  }
  func.func @transform_1(%arg0: i32) -> (i32, i32) {
    %c0_i32 = arith.constant 0 : i32
    %c0_i32_0 = arith.constant 0 : i32
    %c0_i32_1 = arith.constant 0 : i32
    return %c0_i32, %c0_i32_0 : i32, i32
  }
  func.func @transform_2(%arg0: i32) -> (i32, i32) {
    %c0_i32 = arith.constant 0 : i32
    %c0_i32_0 = arith.constant 0 : i32
    %c0_i32_1 = arith.constant 0 : i32
    return %c0_i32, %c0_i32_0 : i32, i32
  }
  func.func @transform_3(%arg0: i32) -> (i32, i32) {
    %c0_i32 = arith.constant 0 : i32
    %c0_i32_0 = arith.constant 0 : i32
    %c0_i32_1 = arith.constant 0 : i32
    return %c0_i32, %c0_i32_0 : i32, i32
  }
  func.func @transform_4(%arg0: i32) -> (i32, i32) {
    %c0_i32 = arith.constant 0 : i32
    %c0_i32_0 = arith.constant 0 : i32
    %c0_i32_1 = arith.constant 0 : i32
    return %c0_i32, %c0_i32_0 : i32, i32
  }
  func.func @transform_5(%arg0: i32) -> (i32, i32) {
    %c0_i32 = arith.constant 0 : i32
    %c0_i32_0 = arith.constant 0 : i32
    %c0_i32_1 = arith.constant 0 : i32
    return %c0_i32, %c0_i32_0 : i32, i32
  }
  func.func @transform_6(%arg0: i32) -> (i32, i32) {
    %c0_i32 = arith.constant 0 : i32
    %c0_i32_0 = arith.constant 0 : i32
    %c0_i32_1 = arith.constant 0 : i32
    return %c0_i32, %c0_i32_0 : i32, i32
  }
  func.func @transform_7(%arg0: i32) -> (i32, i32) {
    %c0_i32 = arith.constant 0 : i32
    %c0_i32_0 = arith.constant 0 : i32
    %c0_i32_1 = arith.constant 0 : i32
    return %c0_i32, %c0_i32_0 : i32, i32
  }
  func.func @transform_8(%arg0: i32) -> (i32, i32) {
    %c0_i32 = arith.constant 0 : i32
    %c0_i32_0 = arith.constant 0 : i32
    %c0_i32_1 = arith.constant 0 : i32
    return %c0_i32, %c0_i32_0 : i32, i32
  }
  func.func @transform_9(%arg0: i32) -> (i32, i32) {
    %c0_i32 = arith.constant 0 : i32
    %c0_i32_0 = arith.constant 0 : i32
    %c0_i32_1 = arith.constant 0 : i32
    return %c0_i32, %c0_i32_0 : i32, i32
  }
  func.func @transform_10(%arg0: i32) -> (i32, i32) {
    %c0_i32 = arith.constant 0 : i32
    %c0_i32_0 = arith.constant 0 : i32
    %c0_i32_1 = arith.constant 0 : i32
    return %c0_i32, %c0_i32_0 : i32, i32
  }
  func.func @transform_11(%arg0: i32) -> (i32, i32) {
    %c0_i32 = arith.constant 0 : i32
    %c0_i32_0 = arith.constant 0 : i32
    return %arg0, %c0_i32 : i32, i32
  }
}

</mosaic_0001>

<bundles_post_ra>
// kernel: tpu_custom_call.1
= control target key start
LH: loop header
LB: loop body
LE: loop exit
PB: predicated region body
PF: predicated region fallthrough
CT: control target
= control target key end

     0   :  { %16 = vsyncpa [#allocation7], 0  ;;  %s9353_s0 = inlined_call_operand.vmem [shape: f32[8,8,16], index: 0, kind: input, shape index: {}]   ;;  %s9354_s1 = inlined_call_operand.vmem [shape: bf16[16,1024], index: 1, kind: input, shape index: {}]   ;;  %s9355_s2 = inlined_call_operand.hbm [shape: bf16[128,512], index: 2, kind: input, shape index: {}]   ;;  %s9356_s3 = inlined_call_operand.hbm [shape: bf16[128,512], index: 3, kind: input, shape index: {}]   ;;  %s9357_s4 = inlined_call_operand.vmem [shape: f32[1,512], index: 4, kind: input, shape index: {}]   ;;  %s9358_s5 = inlined_call_operand.vmem [shape: f32[1,512], index: 5, kind: input, shape index: {}]   ;;  %s9359_s6 = inlined_call_operand.vmem [shape: f32[1,128], index: 6, kind: input, shape index: {}]   ;;  %s9360_s7 = inlined_call_operand.vmem [shape: f32[1,128], index: 7, kind: input, shape index: {}]   ;;  %s9361_s8 = inlined_call_operand.vmem [shape: bf16[128,4], index: 8, kind: input, shape index: {}]   ;;  %s9362_s9 = inlined_call_operand.vmem [shape: bf16[128,4], index: 9, kind: input, shape index: {}]   ;;  %s9363_s10 = inlined_call_operand.vmem [shape: f32[1,4], index: 10, kind: input, shape index: {}]   ;;  %s9364_s11 = inlined_call_operand.vmem [shape: f32[8,4], index: 11, kind: output, shape index: {}]  }
   0x1   :  { %17 = vsyncpa [#allocation9], 0  ;;  %s7665_s17 = smov [#allocation6]   ;;  %s7617_s21 = scalar_lea.hbm %s9355_s2, 4096 }
   0x2   :  { %s27_s18 = sshll.u32 %s7665_s17, 4  ;;  %p7618_p0 = scmp.ne.s32.totalorder %s9355_s2, %s7617_s21  ;;  %s28_s18 = int_to_ptr.vmem [resolvable:$true] %s27_s18 }
   0x3   :  { %p7621_p1 = scmp.lt.u32.totalorder %s7617_s21, %s9355_s2 }
   0x5   :  { %p7623_p2 = pnand %p7621_p1, %p7618_p0 }
   0x7   :  { %7626 = shalt.err (!%p7623_p2)
}
   0x8   :  { %s7627_s26 = scalar_lea.vmem %s28_s18, 4096  ;;  %p7632_p4 = scmp.lt.s32.totalorder %s28_s18, %s28_s18 }
   0x9   :  { %p7628_p3 = scmp.ne.s32.totalorder %s28_s18, %s7627_s26  ;;  %p7633_p5 = scmp.lt.s32.totalorder %s7627_s26, %s7627_s26 }
   0xb   :  { %p7634_p6 = por %p7633_p5, %p7632_p4 }
   0xd   :  { %p7635_p7 = pnand %p7634_p6, %p7628_p3 }
   0xf   :  { %7638 = shalt.err (!%p7635_p7)
}
  0x10   :  { %s7666_s27 = smov 256   ;;  %s7667_s28 = smov 16  }
  0x11   :  { %33 = dma.hbm_to_vmem [thread:$0]  %s9355_s2, 4096, %s28_s18, [#allocation7], %s7666_s27, %s7666_s27, %s7667_s28  }
  0x12   :  { %s7668_s12 = smov [#allocation8]   ;;  %s7639_s16 = scalar_lea.hbm %s9356_s3, 4096 }
  0x13   :  { %s39_s13 = sshll.u32 %s7668_s12, 4  ;;  %p7640_p8 = scmp.ne.s32.totalorder %s9356_s3, %s7639_s16  ;;  %s40_s13 = int_to_ptr.vmem [resolvable:$true] %s39_s13 }
  0x14   :  { %p7643_p9 = scmp.lt.u32.totalorder %s7639_s16, %s9356_s3 }
  0x16   :  { %p7645_p10 = pnand %p7643_p9, %p7640_p8 }
  0x18   :  { %7648 = shalt.err (!%p7645_p10)
}
  0x19   :  { %s7649_s22 = scalar_lea.vmem %s40_s13, 4096  ;;  %p7654_p12 = scmp.lt.s32.totalorder %s40_s13, %s40_s13 }
  0x1a   :  { %p7650_p11 = scmp.ne.s32.totalorder %s40_s13, %s7649_s22  ;;  %p7655_p13 = scmp.lt.s32.totalorder %s7649_s22, %s7649_s22 }
  0x1c   :  { %p7656_p0 = por %p7655_p13, %p7654_p12 }
  0x1e   :  { %p7657_p1 = pnand %p7656_p0, %p7650_p11 }
  0x20   :  { %7660 = shalt.err (!%p7657_p1)
}
  0x21   :  { %45 = dma.hbm_to_vmem [thread:$0]  %s9356_s3, 4096, %s40_s13, [#allocation9], %s7666_s27, %s7666_s27, %s7667_s28  }
  0x22   :  { %7661 = dma.done.wait [#allocation7], 4096  }
  0x23   :  { %7662 = vsyncadd [#allocation7], 4294963200 }
  0x24   :  { %7663 = dma.done.wait [#allocation9], 4096  }
  0x25   :  { %7664 = vsyncadd [#allocation9], 4294963200  ;;  %v9365_v0 = vmov 0   ;;  %v79_v1 = vld [vmem:[%s9354_s1] sm:$0xff]  ;;  %v80_v3 = vld [vmem:[%s9354_s1 + $0x8] sm:$0xff]  ;;  %vm127_vm0 = vcmask 130048  }
  0x26   :  { %172 = vmatprep.mubr.bf16.mxu0 %v9365_v0  ;;  %245 = vmatprep.mubr.bf16.mxu1 %v9365_v0  ;;  %v83_v2 = vld [vmem:[%s9354_s1 + $0x20] sm:$0xff]  ;;  %v84_v5 = vld [vmem:[%s9354_s1 + $0x28] sm:$0xff]  ;;  %v81_v11 = vld [vmem:[%s9354_s1 + $0x10] sm:$0xff]  ;;  %vm7671_vm1 = vmmov 0   ;;  %vm6195_vm2 = vcmask 31744  }
  0x27   :  { %v6204_v4 = vcombine.high %v79_v1, %v83_v2  ;;  %v6203_v6 = vcombine.low %v79_v1, %v83_v2  ;;  %v67_v7 = vld [vmem:[%s9353_s0] sm:$0xff]  ;;  %v68_v8 = vld [vmem:[%s9353_s0 + $0x8] sm:$0xff]  ;;  %v6206_v9 = vcombine.high %v80_v3, %v84_v5  ;;  %v6205_v10 = vcombine.low %v80_v3, %v84_v5  ;;  %v85_v12 = vld [vmem:[%s9354_s1 + $0x30] sm:$0xff] }
  0x28   :  { %v75_v13 = vpack.c.bf16 %v68_v8, %v67_v7  ;;  %v6208_v14 = vcombine.high %v81_v11, %v85_v12  ;;  %v82_v15 = vld [vmem:[%s9354_s1 + $0x18] sm:$0xff]  ;;  %v6207_v17 = vcombine.low %v81_v11, %v85_v12  ;;  %v7788_v20 = vld [vmem:[#allocation6 + $0x4] ss:$16 sps:$4 sm:$0xff]   ;;  %v72_v26 = vld [vmem:[%s9353_s0 + $0x28] sm:$0xff] }
  0x29   :  { %140 = vmatprep.subr.bf16.mxu0 %v6204_v4  ;;  %v86_v16 = vld [vmem:[%s9354_s1 + $0x38] sm:$0xff]  ;;  %213 = vmatprep.subr.bf16.mxu1 %v6206_v9  ;;  %v69_v21 = vld [vmem:[%s9353_s0 + $0x10] sm:$0xff]  ;;  %v71_v25 = vld [vmem:[%s9353_s0 + $0x20] sm:$0xff] }
  0x2a   :  { %141 = vmatpush1.bf16.msra.mxu0 %v6203_v6  ;;  %v6210_v18 = vcombine.high %v82_v15, %v86_v16  ;;  %214 = vmatpush1.bf16.msra.mxu1 %v6205_v10  ;;  %v6209_v19 = vcombine.low %v82_v15, %v86_v16  ;;  %v7794_v22 = vld [vmem:[#allocation6 + $0xc] ss:$16 sps:$4 sm:$0xff]   ;;  %v77_v27 = vpack.c.bf16 %v72_v26, %v71_v25  ;;  %v73_v28 = vld [vmem:[%s9353_s0 + $0x30] sm:$0xff]  ;;  %v7834_v32 = vld [vmem:[#allocation6 + $0x8] ss:$16 sps:$4 sm:$0xff]  }
  0x2b   :  { %286 = vmatprep.subr.bf16.mxu0 %v6208_v14  ;;  %v70_v23 = vld [vmem:[%s9353_s0 + $0x18] sm:$0xff]  ;;  %v7832_v31 = vld [vmem:[#allocation6] ss:$16 sps:$4 sm:$0xff]   ;;  %v7836_v33 = vld [vmem:[#allocation6 + $0x24] ss:$16 sps:$4 sm:$0xff]  }
  0x2c   :  { %359 = vmatprep.subr.bf16.mxu1 %v6210_v18  ;;  %v76_v24 = vpack.c.bf16 %v70_v23, %v69_v21  ;;  %v74_v29 = vld [vmem:[%s9353_s0 + $0x38] sm:$0xff]  ;;  %v7841_v35 = vld [vmem:[#allocation6 + $0x20] ss:$16 sps:$4 sm:$0xff]   ;;  %v7849_v37 = vld [vmem:[#allocation6 + $0x44] ss:$16 sps:$4 sm:$0xff]  }
  0x2d   :  { %6211 = vmatmul.mubr.msk.bf16.vlgmr.msra.gmra.mrb[0].mxu0 %vm127_vm0, %v75_v13  ;;  %6215 = vmatmul.mubr.msk.bf16.vlgmr.msra.gmra.mrb[0].mxu1 %vm127_vm0, %v75_v13  ;;  %v7824_v30 = vpack.c.bf16 %v74_v29, %v73_v28  ;;  %v7838_v34 = vld [vmem:[#allocation6 + $0x2c] ss:$16 sps:$4 sm:$0xff]   ;;  %v7845_v36 = vld [vmem:[#allocation6 + $0x28] ss:$16 sps:$4 sm:$0xff]   ;;  %v7856_v39 = vld [vmem:[#allocation6 + $0x40] ss:$16 sps:$4 sm:$0xff]  }
  0x2e   :  { %287 = vmatpush1.bf16.msra.mxu0 %v6207_v17  ;;  %182 = vmatprep.mubr.bf16.mxu0 %v9365_v0  ;;  %v7853_v38 = vld [vmem:[#allocation6 + $0x4c] ss:$16 sps:$4 sm:$0xff]   ;;  %v7859_v40 = vld [vmem:[#allocation6 + $0x48] ss:$16 sps:$4 sm:$0xff]   ;;  %v7863_v41 = vld [vmem:[#allocation6 + $0x64] ss:$16 sps:$4 sm:$0xff]  }
  0x2f   :  { %255 = vmatprep.mubr.bf16.mxu1 %v9365_v0  ;;  %360 = vmatpush1.bf16.msra.mxu1 %v6209_v19  ;;  %v7866_v42 = vld [vmem:[#allocation6 + $0x60] ss:$16 sps:$4 sm:$0xff]   ;;  %v7868_v43 = vld [vmem:[#allocation6 + $0x6c] ss:$16 sps:$4 sm:$0xff]   ;;  %v7871_v44 = vld [vmem:[#allocation6 + $0x68] ss:$16 sps:$4 sm:$0xff]  }
  0x30   :  { %1020 = vmatprep.subr.bf16.mxu0 %v7788_v20  ;;  %1061 = vmatprep.subr.bf16.mxu1 %v7794_v22  ;;  %v7873_v45 = vld [vmem:[#allocation6 + $0x84] ss:$16 sps:$4 sm:$0xff]   ;;  %v7877_v46 = vld [vmem:[#allocation6 + $0x8c] ss:$16 sps:$4 sm:$0xff]   ;;  %v7883_v47 = vld [vmem:[#allocation6 + $0x80] ss:$16 sps:$4 sm:$0xff]  }
  0x31   :  { %v7886_v48 = vld [vmem:[#allocation6 + $0x88] ss:$16 sps:$4 sm:$0xff]   ;;  %v7888_v49 = vld [vmem:[#allocation6 + $0xa4] ss:$16 sps:$4 sm:$0xff]   ;;  %v7891_v50 = vld [vmem:[#allocation6 + $0xac] ss:$16 sps:$4 sm:$0xff]  }
  0x32   :  { %v7896_v51 = vld [vmem:[#allocation6 + $0xa0] ss:$16 sps:$4 sm:$0xff]   ;;  %v7899_v52 = vld [vmem:[#allocation6 + $0xa8] ss:$16 sps:$4 sm:$0xff]   ;;  %v7901_v53 = vld [vmem:[#allocation6 + $0xc4] ss:$16 sps:$4 sm:$0xff]  }
  0x33   :  { %v7905_v54 = vld [vmem:[#allocation6 + $0xcc] ss:$16 sps:$4 sm:$0xff]   ;;  %v7911_v55 = vld [vmem:[#allocation6 + $0xc0] ss:$16 sps:$4 sm:$0xff]   ;;  %v7914_v56 = vld [vmem:[#allocation6 + $0xc8] ss:$16 sps:$4 sm:$0xff]  }
  0x34   :  { %v7916_v57 = vld [vmem:[#allocation6 + $0xe4] ss:$16 sps:$4 sm:$0xff]   ;;  %v7919_v58 = vld [vmem:[#allocation6 + $0xec] ss:$16 sps:$4 sm:$0xff]   ;;  %v7924_v59 = vld [vmem:[#allocation6 + $0xe0] ss:$16 sps:$4 sm:$0xff]  }
  0x35   :  { %6212 = vmatmul.mubr.msk.bf16.gmra.mrb[4].mxu0 %vm127_vm0, %v76_v24  ;;  %6216 = vmatmul.mubr.msk.bf16.gmra.mrb[4].mxu1 %vm127_vm0, %v76_v24  ;;  %v7928_v60 = vld [vmem:[#allocation6 + $0xe8] ss:$16 sps:$4 sm:$0xff]   ;;  %v7930_v61 = vld [vmem:[#allocation8 + $0x4] ss:$16 sps:$4 sm:$0xff]   ;;  %v7935_v62 = vld [vmem:[#allocation8 + $0xc] ss:$16 sps:$4 sm:$0xff]  }
  0x36   :  { %192 = vmatprep.mubr.bf16.mxu0 %v9365_v0  ;;  %265 = vmatprep.mubr.bf16.mxu1 %v9365_v0  ;;  %v6983_v63 = vld [vmem:[#allocation8] ss:$16 sps:$4 sm:$0xff]   ;;  %v6986_v1 = vld [vmem:[#allocation8 + $0x8] ss:$16 sps:$4 sm:$0xff]   ;;  %v6991_v2 = vld [vmem:[#allocation8 + $0x24] ss:$16 sps:$4 sm:$0xff]  }
  0x37   :  { %v6994_v3 = vld [vmem:[#allocation8 + $0x2c] ss:$16 sps:$4 sm:$0xff]   ;;  %v6989_v4 = vld [vmem:[#allocation8 + $0x20] ss:$16 sps:$4 sm:$0xff]   ;;  %v7947_v5 = vld [vmem:[#allocation8 + $0x28] ss:$16 sps:$4 sm:$0xff]  }
  0x38   :  { %v7949_v6 = vld [vmem:[#allocation8 + $0x44] ss:$16 sps:$4 sm:$0xff]   ;;  %v7952_v7 = vld [vmem:[#allocation8 + $0x4c] ss:$16 sps:$4 sm:$0xff]   ;;  %v7954_v8 = vld [vmem:[#allocation8 + $0x40] ss:$16 sps:$4 sm:$0xff]  }
  0x39   :  { %v7957_v9 = vld [vmem:[#allocation8 + $0x48] ss:$16 sps:$4 sm:$0xff]   ;;  %v7959_v10 = vld [vmem:[#allocation8 + $0x64] ss:$16 sps:$4 sm:$0xff]   ;;  %v7962_v11 = vld [vmem:[#allocation8 + $0x6c] ss:$16 sps:$4 sm:$0xff]  }
  0x3a   :  { %v7967_v12 = vld [vmem:[#allocation8 + $0x60] ss:$16 sps:$4 sm:$0xff]   ;;  %v7971_v14 = vld [vmem:[#allocation8 + $0x84] ss:$16 sps:$4 sm:$0xff]   ;;  %v7974_v15 = vld [vmem:[#allocation8 + $0x8c] ss:$16 sps:$4 sm:$0xff]  }
  0x3b   :  { %v7979_v16 = vld [vmem:[#allocation8 + $0x80] ss:$16 sps:$4 sm:$0xff]   ;;  %v7981_v17 = vld [vmem:[#allocation8 + $0x88] ss:$16 sps:$4 sm:$0xff]   ;;  %v7983_v18 = vld [vmem:[#allocation8 + $0xa4] ss:$16 sps:$4 sm:$0xff]  }
  0x3c   :  { %v7986_v19 = vld [vmem:[#allocation8 + $0xac] ss:$16 sps:$4 sm:$0xff]   ;;  %v7991_v21 = vld [vmem:[#allocation8 + $0xa0] ss:$16 sps:$4 sm:$0xff]   ;;  %v7993_v23 = vld [vmem:[#allocation8 + $0xa8] ss:$16 sps:$4 sm:$0xff]  }
  0x3d   :  { %6213 = vmatmul.mubr.msk.bf16.gmra.mrb[8].mxu0 %vm127_vm0, %v77_v27  ;;  %6217 = vmatmul.mubr.msk.bf16.gmra.mrb[8].mxu1 %vm127_vm0, %v77_v27  ;;  %v8001_v25 = vld [vmem:[#allocation8 + $0xc0] ss:$16 sps:$4 sm:$0xff]   ;;  %v8003_v26 = vld [vmem:[#allocation8 + $0xcc] ss:$16 sps:$4 sm:$0xff]   ;;  %v8007_v28 = vld [vmem:[#allocation8 + $0xe4] ss:$16 sps:$4 sm:$0xff]  }
  0x3e   :  { %202 = vmatprep.mubr.bf16.mxu0 %v9365_v0  ;;  %275 = vmatprep.mubr.bf16.mxu1 %v9365_v0  ;;  %v8010_v29 = vld [vmem:[#allocation8 + $0xec] ss:$16 sps:$4 sm:$0xff]  }
  0x45   :  { %6214 = vmatmul.mubr.msk.bf16.gmra.mrb[12].mxu0 %vm127_vm0, %v7824_v30  ;;  %6218 = vmatmul.mubr.msk.bf16.gmra.mrb[12].mxu1 %vm127_vm0, %v7824_v30 }
  0x46   :  { %318 = vmatprep.mubr.bf16.mxu0 %v9365_v0  ;;  %391 = vmatprep.mubr.bf16.mxu1 %v9365_v0 }
  0x4d   :  { %6219 = vmatmul.mubr.msk.bf16.vlgmr.msra.gmra.mrb[16].mxu0 %vm127_vm0, %v75_v13  ;;  %6223 = vmatmul.mubr.msk.bf16.vlgmr.msra.gmra.mrb[16].mxu1 %vm127_vm0, %v75_v13  ;;  %v7969_v13 = vld [vmem:[#allocation8 + $0x68] ss:$16 sps:$4 sm:$0xff]  }
  0x4e   :  { %1021 = vmatpush1.bf16.msra.mxu0 %v7832_v31  ;;  %1062 = vmatpush1.bf16.msra.mxu1 %v7834_v32 }
  0x4f   :  { %1022 = vmatprep.subr.bf16.mxu0 %v7836_v33  ;;  %1063 = vmatprep.subr.bf16.mxu1 %v7838_v34 }
  0x50   :  { %328 = vmatprep.mubr.bf16.mxu0 %v9365_v0  ;;  %401 = vmatprep.mubr.bf16.mxu1 %v9365_v0 }
  0x52   :  { %1023 = vmatpush1.bf16.msra.mxu0 %v7841_v35  ;;  %1064 = vmatpush1.bf16.msra.mxu1 %v7845_v36 }
  0x53   :  { %1024 = vmatprep.subr.bf16.mxu0 %v7849_v37  ;;  %1065 = vmatprep.subr.bf16.mxu1 %v7853_v38 }
  0x55   :  { %6220 = vmatmul.mubr.msk.bf16.gmra.mrb[20].mxu0 %vm127_vm0, %v76_v24  ;;  %6224 = vmatmul.mubr.msk.bf16.gmra.mrb[20].mxu1 %vm127_vm0, %v76_v24  ;;  %v7995_v24 = vld [vmem:[#allocation8 + $0xc4] ss:$16 sps:$4 sm:$0xff]  }
  0x56   :  { %1025 = vmatpush1.bf16.msra.mxu0 %v7856_v39  ;;  %1066 = vmatpush1.bf16.msra.mxu1 %v7859_v40 }
  0x57   :  { %1026 = vmatprep.subr.bf16.mxu0 %v7863_v41  ;;  %1067 = vmatprep.subr.bf16.mxu1 %v7868_v43 }
  0x58   :  { %338 = vmatprep.mubr.bf16.mxu0 %v9365_v0  ;;  %411 = vmatprep.mubr.bf16.mxu1 %v9365_v0 }
  0x5a   :  { %1027 = vmatpush1.bf16.msra.mxu0 %v7866_v42  ;;  %1068 = vmatpush1.bf16.msra.mxu1 %v7871_v44 }
  0x5b   :  { %1028 = vmatprep.subr.bf16.mxu0 %v7873_v45  ;;  %1069 = vmatprep.subr.bf16.mxu1 %v7877_v46 }
  0x5d   :  { %6221 = vmatmul.mubr.msk.bf16.gmra.mrb[24].mxu0 %vm127_vm0, %v77_v27  ;;  %6225 = vmatmul.mubr.msk.bf16.gmra.mrb[24].mxu1 %vm127_vm0, %v77_v27  ;;  %v8005_v27 = vld [vmem:[#allocation8 + $0xc8] ss:$16 sps:$4 sm:$0xff]  }
  0x5e   :  { %1029 = vmatpush1.bf16.msra.mxu0 %v7883_v47  ;;  %1070 = vmatpush1.bf16.msra.mxu1 %v7886_v48 }
  0x5f   :  { %1030 = vmatprep.subr.bf16.mxu0 %v7888_v49  ;;  %1071 = vmatprep.subr.bf16.mxu1 %v7891_v50 }
  0x60   :  { %348 = vmatprep.mubr.bf16.mxu0 %v9365_v0  ;;  %421 = vmatprep.mubr.bf16.mxu1 %v9365_v0 }
  0x62   :  { %1031 = vmatpush1.bf16.msra.mxu0 %v7896_v51  ;;  %1072 = vmatpush1.bf16.msra.mxu1 %v7899_v52 }
  0x63   :  { %1032 = vmatprep.subr.bf16.mxu0 %v7901_v53  ;;  %1073 = vmatprep.subr.bf16.mxu1 %v7905_v54 }
  0x65   :  { %6222 = vmatmul.mubr.msk.bf16.gmra.mrb[28].mxu0 %vm127_vm0, %v7824_v30  ;;  %6226 = vmatmul.mubr.msk.bf16.gmra.mrb[28].mxu1 %vm127_vm0, %v7824_v30  ;;  %v8015_v30 = vld [vmem:[#allocation8 + $0xe0] ss:$16 sps:$4 sm:$0xff]  }
  0x66   :  { %1033 = vmatpush1.bf16.msra.mxu0 %v7911_v55  ;;  %1074 = vmatpush1.bf16.msra.mxu1 %v7914_v56 }
  0x67   :  { %1034 = vmatprep.subr.bf16.mxu0 %v7916_v57  ;;  %1075 = vmatprep.subr.bf16.mxu1 %v7919_v58 }
  0x68   :  { %1052 = vmatprep.mubr.bf16.mxu0 %v9365_v0  ;;  %1093 = vmatprep.mubr.bf16.mxu1 %v9365_v0 }
  0x6a   :  { %1035 = vmatpush1.bf16.msra.mxu0 %v7924_v59  ;;  %1076 = vmatpush1.bf16.msra.mxu1 %v7928_v60 }
  0x6b   :  { %1294 = vmatprep.subr.bf16.mxu0 %v7930_v61  ;;  %1335 = vmatprep.subr.bf16.mxu1 %v7935_v62 }
  0x6d   :  { %1053 = vmatmul.mubr.bf16.vlgmr.msra.gmra.mrb[32].mxu0 %v9365_v0  ;;  %1094 = vmatmul.mubr.bf16.vlgmr.msra.gmra.mrb[32].mxu1 %v9365_v0 }
  0x6e   :  { %1295 = vmatpush1.bf16.msra.mxu0 %v6983_v63  ;;  %1336 = vmatpush1.bf16.msra.mxu1 %v6986_v1  ;;  %v8017_v63 = vld [vmem:[#allocation8 + $0xe8] ss:$16 sps:$4 sm:$0xff]  }
  0x6f   :  { %1296 = vmatprep.subr.bf16.mxu0 %v6991_v2  ;;  %1337 = vmatprep.subr.bf16.mxu1 %v6994_v3 }
  0x70   :  { %1326 = vmatprep.mubr.bf16.mxu0 %v9365_v0  ;;  %1367 = vmatprep.mubr.bf16.mxu1 %v9365_v0 }
  0x72   :  { %1297 = vmatpush1.bf16.msra.mxu0 %v6989_v4  ;;  %1338 = vmatpush1.bf16.msra.mxu1 %v7947_v5 }
  0x73   :  { %1298 = vmatprep.subr.bf16.mxu0 %v7949_v6  ;;  %1339 = vmatprep.subr.bf16.mxu1 %v7952_v7 }
  0x76   :  { %1299 = vmatpush1.bf16.msra.mxu0 %v7954_v8  ;;  %1340 = vmatpush1.bf16.msra.mxu1 %v7957_v9 }
  0x77   :  { %1300 = vmatprep.subr.bf16.mxu0 %v7959_v10  ;;  %1341 = vmatprep.subr.bf16.mxu1 %v7962_v11 }
  0x7a   :  { %1301 = vmatpush1.bf16.msra.mxu0 %v7967_v12  ;;  %1342 = vmatpush1.bf16.msra.mxu1 %v7969_v13 }
  0x7b   :  { %1302 = vmatprep.subr.bf16.mxu0 %v7971_v14  ;;  %1343 = vmatprep.subr.bf16.mxu1 %v7974_v15 }
  0x7e   :  { %1303 = vmatpush1.bf16.msra.mxu0 %v7979_v16  ;;  %1344 = vmatpush1.bf16.msra.mxu1 %v7981_v17 }
  0x7f   :  { %1304 = vmatprep.subr.bf16.mxu0 %v7983_v18  ;;  %1345 = vmatprep.subr.bf16.mxu1 %v7986_v19 }
  0x82   :  { %1305 = vmatpush1.bf16.msra.mxu0 %v7991_v21  ;;  %1346 = vmatpush1.bf16.msra.mxu1 %v7993_v23 }
  0x83   :  { %1306 = vmatprep.subr.bf16.mxu0 %v7995_v24  ;;  %1347 = vmatprep.subr.bf16.mxu1 %v8003_v26 }
  0x86   :  { %1307 = vmatpush1.bf16.msra.mxu0 %v8001_v25  ;;  %1348 = vmatpush1.bf16.msra.mxu1 %v8005_v27 }
  0x87   :  { %1308 = vmatprep.subr.bf16.mxu0 %v8007_v28  ;;  %1349 = vmatprep.subr.bf16.mxu1 %v8010_v29 }
  0x8a   :  { %1309 = vmatpush1.bf16.msra.mxu0 %v8015_v30  ;;  %1350 = vmatpush1.bf16.msra.mxu1 %v8017_v63 }
  0x8b   :  { %1641 = vmatprep.subr.bf16.mxu0 %v7788_v20  ;;  %1682 = vmatprep.subr.bf16.mxu1 %v7794_v22  ;;  %v434_v20 = vlaneseq }
  0x8d   :  { %1327 = vmatmul.mubr.bf16.vlgmr.msra.gmra.mrb[36].mxu0 %v9365_v0  ;;  %1368 = vmatmul.mubr.bf16.vlgmr.msra.gmra.mrb[36].mxu1 %v9365_v0  ;;  %v8063_v22 = vshrl.u32 %v434_v20, 7 }
  0x8e   :  { %1642 = vmatpush1.bf16.msra.mxu0 %v7832_v31  ;;  %1683 = vmatpush1.bf16.msra.mxu1 %v7834_v32  ;;  %v432_v32 = vld [vmem:[%s9357_s4] sm:$0xf] }
  0x8f   :  { %1643 = vmatprep.subr.bf16.mxu0 %v7836_v33  ;;  %1684 = vmatprep.subr.bf16.mxu1 %v7838_v34  ;;  %v436_v31 = vsub.s32 0, %v8063_v22  ;;  %v440_v33 = vsub.s32 1, %v8063_v22  ;;  %v444_v34 = vsub.s32 2, %v8063_v22 }
  0x90   :  { %1673 = vmatprep.mubr.bf16.mxu0 %v9365_v0  ;;  %1714 = vmatprep.mubr.bf16.mxu1 %v9365_v0 }
  0x92   :  { %1644 = vmatpush1.bf16.msra.mxu0 %v7841_v35  ;;  %1685 = vmatpush1.bf16.msra.mxu1 %v7845_v36  ;;  %v448_v35 = vsub.s32 3, %v8063_v22  ;;  %v8074_v36 = vrot.slane %v432_v32, %v436_v31 }
  0x93   :  { %1645 = vmatprep.subr.bf16.mxu0 %v7849_v37  ;;  %1686 = vmatprep.subr.bf16.mxu1 %v7853_v38  ;;  %v8078_v37 = vrot.slane %v432_v32, %v440_v33  ;;  %v8082_v38 = vrot.slane %v432_v32, %v444_v34 }
  0x96   :  { %1646 = vmatpush1.bf16.msra.mxu0 %v7856_v39  ;;  %1687 = vmatpush1.bf16.msra.mxu1 %v7859_v40  ;;  %v8086_v39 = vrot.slane %v432_v32, %v448_v35 }
  0x97   :  { %1647 = vmatprep.subr.bf16.mxu0 %v7863_v41  ;;  %1688 = vmatprep.subr.bf16.mxu1 %v7868_v43 }
  0x9a   :  { %1648 = vmatpush1.bf16.msra.mxu0 %v7866_v42  ;;  %1689 = vmatpush1.bf16.msra.mxu1 %v7871_v44 }
  0x9b   :  { %1649 = vmatprep.subr.bf16.mxu0 %v7873_v45  ;;  %1690 = vmatprep.subr.bf16.mxu1 %v7877_v46 }
  0x9e   :  { %1650 = vmatpush1.bf16.msra.mxu0 %v7883_v47  ;;  %1691 = vmatpush1.bf16.msra.mxu1 %v7886_v48 }
  0x9f   :  { %1651 = vmatprep.subr.bf16.mxu0 %v7888_v49  ;;  %1692 = vmatprep.subr.bf16.mxu1 %v7891_v50 }
  0xa2   :  { %1652 = vmatpush1.bf16.msra.mxu0 %v7896_v51  ;;  %1693 = vmatpush1.bf16.msra.mxu1 %v7899_v52 }
  0xa3   :  { %1653 = vmatprep.subr.bf16.mxu0 %v7901_v53  ;;  %1694 = vmatprep.subr.bf16.mxu1 %v7905_v54 }
  0xa6   :  { %1654 = vmatpush1.bf16.msra.mxu0 %v7911_v55  ;;  %1695 = vmatpush1.bf16.msra.mxu1 %v7914_v56 }
  0xa7   :  { %1655 = vmatprep.subr.bf16.mxu0 %v7916_v57  ;;  %1696 = vmatprep.subr.bf16.mxu1 %v7919_v58 }
  0xaa   :  { %1656 = vmatpush1.bf16.msra.mxu0 %v7924_v59  ;;  %1697 = vmatpush1.bf16.msra.mxu1 %v7928_v60 }
  0xab   :  { %1916 = vmatprep.subr.bf16.mxu0 %v7930_v61  ;;  %1957 = vmatprep.subr.bf16.mxu1 %v7935_v62 }
 0x100   :  { %v174_v40 = vpop.f32.mrb[0].mxu0  ;;  %v247_v43 = vpop.f32.mrb[0].mxu1 }
 0x101   :  { %v454_v41 = vadd.f32 %v8074_v36, %v174_v40  ;;  %v176_v42 = vpop.f32.mrb[1].mxu0  ;;  %v456_v46 = vadd.f32 %v8082_v38, %v247_v43  ;;  %v249_v47 = vpop.f32.mrb[1].mxu1 }
 0x102   :  { %v455_v44 = vadd.f32 %v8078_v37, %v176_v42  ;;  %v178_v45 = vpop.f32.mrb[2].mxu0  ;;  %v457_v50 = vadd.f32 %v8086_v39, %v249_v47  ;;  %v251_v51 = vpop.f32.mrb[2].mxu1 }
 0x103   :  { %v458_v48 = vadd.f32 %v8074_v36, %v178_v45  ;;  %v180_v49 = vpop.f32.mrb[3].mxu0  ;;  %v460_v54 = vadd.f32 %v8082_v38, %v251_v51  ;;  %v253_v55 = vpop.f32.mrb[3].mxu1 }
 0x104   :  { %v8093_v52 = vpack.c.bf16 %v455_v44, %v454_v41  ;;  %v459_v53 = vadd.f32 %v8078_v37, %v180_v49  ;;  %v8097_v56 = vpack.c.bf16 %v457_v50, %v456_v46  ;;  %v461_v57 = vadd.f32 %v8086_v39, %v253_v55 }
 0x106   :  { %v8100_v58 = vpack.c.bf16 %v459_v53, %v458_v48  ;;  %v8102_v59 = vpack.c.bf16 %v461_v57, %v460_v54 }
 0x108   :  { %v184_v60 = vpop.f32.mrb[4].mxu0  ;;  %v257_v1 = vpop.f32.mrb[4].mxu1 }
 0x109   :  { %v462_v61 = vadd.f32 %v8074_v36, %v184_v60  ;;  %v186_v62 = vpop.f32.mrb[5].mxu0  ;;  %v464_v4 = vadd.f32 %v8082_v38, %v257_v1  ;;  %v259_v20 = vpop.f32.mrb[5].mxu1 }
 0x10a   :  { %v463_v2 = vadd.f32 %v8078_v37, %v186_v62  ;;  %v188_v3 = vpop.f32.mrb[6].mxu0  ;;  %v465_v41 = vadd.f32 %v8086_v39, %v259_v20  ;;  %v261_v42 = vpop.f32.mrb[6].mxu1 }
 0x10b   :  { %v466_v32 = vadd.f32 %v8074_v36, %v188_v3  ;;  %v190_v40 = vpop.f32.mrb[7].mxu0  ;;  %v468_v45 = vadd.f32 %v8082_v38, %v261_v42  ;;  %v263_v46 = vpop.f32.mrb[7].mxu1 }
 0x10c   :  { %v8109_v43 = vpack.c.bf16 %v463_v2, %v462_v61  ;;  %v467_v44 = vadd.f32 %v8078_v37, %v190_v40  ;;  %v8113_v47 = vpack.c.bf16 %v465_v41, %v464_v4  ;;  %v469_v48 = vadd.f32 %v8086_v39, %v263_v46 }
 0x10e   :  { %v8116_v49 = vpack.c.bf16 %v467_v44, %v466_v32  ;;  %v8118_v50 = vpack.c.bf16 %v469_v48, %v468_v45 }
 0x110   :  { %9431 = vst [vmem:[#allocation12_spill] sm:$0xff] %v8116_v49  ;;  %9432 = vst [vmem:[#allocation13_spill] sm:$0xff] %v8118_v50  ;;  %v194_v51 = vpop.f32.mrb[8].mxu0  ;;  %v267_v55 = vpop.f32.mrb[8].mxu1 }
 0x111   :  { %v470_v53 = vadd.f32 %v8074_v36, %v194_v51  ;;  %v196_v54 = vpop.f32.mrb[9].mxu0  ;;  %v472_v61 = vadd.f32 %v8082_v38, %v267_v55  ;;  %v269_v62 = vpop.f32.mrb[9].mxu1 }
 0x112   :  { %v471_v57 = vadd.f32 %v8078_v37, %v196_v54  ;;  %v198_v60 = vpop.f32.mrb[10].mxu0  ;;  %v473_v3 = vadd.f32 %v8086_v39, %v269_v62  ;;  %v271_v4 = vpop.f32.mrb[10].mxu1 }
 0x113   :  { %v474_v1 = vadd.f32 %v8074_v36, %v198_v60  ;;  %v200_v2 = vpop.f32.mrb[11].mxu0  ;;  %v476_v40 = vadd.f32 %v8082_v38, %v271_v4  ;;  %v273_v41 = vpop.f32.mrb[11].mxu1  ;;  %v630_v60 = vld [vmem:[%s9358_s5] sm:$0xf] }
 0x114   :  { %v8125_v20 = vpack.c.bf16 %v471_v57, %v470_v53  ;;  %v475_v32 = vadd.f32 %v8078_v37, %v200_v2  ;;  %v8129_v42 = vpack.c.bf16 %v473_v3, %v472_v61  ;;  %v477_v44 = vadd.f32 %v8086_v39, %v273_v41 }
 0x116   :  { %9433 = vst [vmem:[#allocation14_spill] sm:$0xff] %v8125_v20  ;;  %9434 = vst [vmem:[#allocation15_spill] sm:$0xff] %v8129_v42  ;;  %v8132_v45 = vpack.c.bf16 %v475_v32, %v474_v1  ;;  %v8134_v46 = vpack.c.bf16 %v477_v44, %v476_v40 }
 0x118   :  { %9435 = vst [vmem:[#allocation16_spill] sm:$0xff] %v8132_v45  ;;  %9436 = vst [vmem:[#allocation17_spill] sm:$0xff] %v8134_v46  ;;  %v204_v48 = vpop.f32.mrb[12].mxu0  ;;  %v277_v55 = vpop.f32.mrb[12].mxu1  ;;  %v1378_v46 = vunpack.c.l.bf16 %v8093_v52 }
 0x119   :  { %v478_v51 = vadd.f32 %v8074_v36, %v204_v48  ;;  %v206_v54 = vpop.f32.mrb[13].mxu0  ;;  %v480_v61 = vadd.f32 %v8082_v38, %v277_v55  ;;  %v279_v62 = vpop.f32.mrb[13].mxu1  ;;  %v8150_v48 = vrot.slane %v630_v60, %v436_v31  ;;  %v8169_v31 = vrot.slane %v630_v60, %v448_v35 }
 0x11a   :  { %v479_v53 = vadd.f32 %v8078_v37, %v206_v54  ;;  %v208_v57 = vpop.f32.mrb[14].mxu0  ;;  %v481_v3 = vadd.f32 %v8086_v39, %v279_v62  ;;  %v281_v4 = vpop.f32.mrb[14].mxu1 }
 0x11b   :  { %v482_v1 = vadd.f32 %v8074_v36, %v208_v57  ;;  %v210_v2 = vpop.f32.mrb[15].mxu0  ;;  %v484_v41 = vadd.f32 %v8082_v38, %v281_v4  ;;  %v283_v44 = vpop.f32.mrb[15].mxu1  ;;  %v8159_v57 = vrot.slane %v630_v60, %v440_v33 }
 0x11c   :  { %v8144_v32 = vpack.c.bf16 %v479_v53, %v478_v51  ;;  %v483_v40 = vadd.f32 %v8078_v37, %v210_v2  ;;  %v8152_v54 = vpack.c.bf16 %v481_v3, %v480_v61  ;;  %v485_v55 = vadd.f32 %v8086_v39, %v283_v44 }
 0x11d   :  { %v8163_v37 = vrot.slane %v630_v60, %v444_v34 }
 0x11e   :  { %9437 = vst [vmem:[#allocation18_spill] sm:$0xff] %v8144_v32  ;;  %9438 = vst [vmem:[#allocation19_spill] sm:$0xff] %v8152_v54  ;;  %v8155_v36 = vpack.c.bf16 %v483_v40, %v482_v1  ;;  %v8165_v38 = vpack.c.bf16 %v485_v55, %v484_v41 }
 0x120   :  { %9439 = vst [vmem:[#allocation20_spill] sm:$0xff] %v8155_v36  ;;  %9440 = vst [vmem:[#allocation21_spill] sm:$0xff] %v8165_v38  ;;  %v320_v51 = vpop.f32.mrb[16].mxu0  ;;  %v393_v61 = vpop.f32.mrb[16].mxu1 }
 0x121   :  { %v652_v53 = vadd.f32 %v8150_v48, %v320_v51  ;;  %v322_v39 = vpop.f32.mrb[17].mxu0  ;;  %v654_v33 = vadd.f32 %v8163_v37, %v393_v61  ;;  %v395_v2 = vpop.f32.mrb[17].mxu1 }
 0x122   :  { %v653_v62 = vadd.f32 %v8159_v57, %v322_v39  ;;  %v324_v1 = vpop.f32.mrb[18].mxu0  ;;  %v655_v4 = vadd.f32 %v8169_v31, %v395_v2  ;;  %v397_v40 = vpop.f32.mrb[18].mxu1 }
 0x123   :  { %v656_v34 = vadd.f32 %v8150_v48, %v324_v1  ;;  %v326_v3 = vpop.f32.mrb[19].mxu0  ;;  %v658_v60 = vadd.f32 %v8163_v37, %v397_v40  ;;  %v399_v41 = vpop.f32.mrb[19].mxu1 }
 0x124   :  { %v8176_v22 = vpack.c.bf16 %v653_v62, %v652_v53  ;;  %v657_v35 = vadd.f32 %v8159_v57, %v326_v3  ;;  %v8180_v44 = vpack.c.bf16 %v655_v4, %v654_v33  ;;  %v659_v55 = vadd.f32 %v8169_v31, %v399_v41 }
 0x126   :  { %9441 = vst [vmem:[#allocation22_spill] sm:$0xff] %v8176_v22  ;;  %9442 = vst [vmem:[#allocation23_spill] sm:$0xff] %v8180_v44  ;;  %v8183_v51 = vpack.c.bf16 %v657_v35, %v656_v34  ;;  %v8185_v39 = vpack.c.bf16 %v659_v55, %v658_v60 }
 0x128   :  { %9443 = vst [vmem:[#allocation24_spill] sm:$0xff] %v8183_v51  ;;  %9444 = vst [vmem:[#allocation25_spill] sm:$0xff] %v8185_v39  ;;  %v330_v61 = vpop.f32.mrb[20].mxu0  ;;  %v403_v0 = vpop.f32.mrb[20].mxu1 }
 0x129   :  { %v660_v1 = vadd.f32 %v8150_v48, %v330_v61  ;;  %v332_v2 = vpop.f32.mrb[21].mxu0  ;;  %v662_v3 = vadd.f32 %v8163_v37, %v403_v0  ;;  %v405_v40 = vpop.f32.mrb[21].mxu1 }
 0x12a   :  { %v661_v53 = vadd.f32 %v8159_v57, %v332_v2  ;;  %v334_v62 = vpop.f32.mrb[22].mxu0  ;;  %v663_v41 = vadd.f32 %v8169_v31, %v405_v40  ;;  %v407_v34 = vpop.f32.mrb[22].mxu1 }
 0x12b   :  { %v664_v33 = vadd.f32 %v8150_v48, %v334_v62  ;;  %v336_v4 = vpop.f32.mrb[23].mxu0  ;;  %v666_v55 = vadd.f32 %v8163_v37, %v407_v34  ;;  %v409_v61 = vpop.f32.mrb[23].mxu1 }
 0x12c   :  { %v8192_v35 = vpack.c.bf16 %v661_v53, %v660_v1  ;;  %v665_v60 = vadd.f32 %v8159_v57, %v336_v4  ;;  %v8196_v44 = vpack.c.bf16 %v663_v41, %v662_v3  ;;  %v667_v2 = vadd.f32 %v8169_v31, %v409_v61 }
 0x12e   :  { %9445 = vst [vmem:[#allocation26_spill] sm:$0xff] %v8192_v35  ;;  %9446 = vst [vmem:[#allocation27_spill] sm:$0xff] %v8196_v44  ;;  %v8199_v22 = vpack.c.bf16 %v665_v60, %v664_v33  ;;  %v8201_v0 = vpack.c.bf16 %v667_v2, %v666_v55 }
 0x130   :  { %9447 = vst [vmem:[#allocation28_spill] sm:$0xff] %v8199_v22  ;;  %9448 = vst [vmem:[#allocation29_spill] sm:$0xff] %v8201_v0  ;;  %v340_v62 = vpop.f32.mrb[24].mxu0  ;;  %v413_v36 = vpop.f32.mrb[24].mxu1 }
 0x131   :  { %v668_v38 = vadd.f32 %v8150_v48, %v340_v62  ;;  %v342_v40 = vpop.f32.mrb[25].mxu0  ;;  %v670_v4 = vadd.f32 %v8163_v37, %v413_v36  ;;  %v415_v34 = vpop.f32.mrb[25].mxu1 }
 0x132   :  { %v669_v1 = vadd.f32 %v8159_v57, %v342_v40  ;;  %v344_v53 = vpop.f32.mrb[26].mxu0  ;;  %v671_v61 = vadd.f32 %v8169_v31, %v415_v34  ;;  %v417_v33 = vpop.f32.mrb[26].mxu1 }
 0x133   :  { %v672_v3 = vadd.f32 %v8150_v48, %v344_v53  ;;  %v346_v41 = vpop.f32.mrb[27].mxu0  ;;  %v674_v2 = vadd.f32 %v8163_v37, %v417_v33  ;;  %v419_v62 = vpop.f32.mrb[27].mxu1 }
 0x134   :  { %v8208_v60 = vpack.c.bf16 %v669_v1, %v668_v38  ;;  %v673_v55 = vadd.f32 %v8159_v57, %v346_v41  ;;  %v8212_v39 = vpack.c.bf16 %v671_v61, %v670_v4  ;;  %v675_v40 = vadd.f32 %v8169_v31, %v419_v62 }
 0x136   :  { %9449 = vst [vmem:[#allocation30_spill] sm:$0xff] %v8208_v60  ;;  %9450 = vst [vmem:[#allocation31_spill] sm:$0xff] %v8212_v39  ;;  %v8215_v51 = vpack.c.bf16 %v673_v55, %v672_v3  ;;  %v8217_v36 = vpack.c.bf16 %v675_v40, %v674_v2 }
 0x138   :  { %9451 = vst [vmem:[#allocation32_spill] sm:$0xff] %v8215_v51  ;;  %9452 = vst [vmem:[#allocation33_spill] sm:$0xff] %v8217_v36  ;;  %v350_v53 = vpop.f32.mrb[28].mxu0  ;;  %v423_v32 = vpop.f32.mrb[28].mxu1 }
 0x139   :  { %v676_v54 = vadd.f32 %v8150_v48, %v350_v53  ;;  %v352_v34 = vpop.f32.mrb[29].mxu0  ;;  %v678_v41 = vadd.f32 %v8163_v37, %v423_v32  ;;  %v425_v33 = vpop.f32.mrb[29].mxu1 }
 0x13a   :  { %v677_v38 = vadd.f32 %v8159_v57, %v352_v34  ;;  %v354_v1 = vpop.f32.mrb[30].mxu0  ;;  %v679_v62 = vadd.f32 %v8169_v31, %v425_v33  ;;  %v427_v3 = vpop.f32.mrb[30].mxu1  ;;  %v1379_v33 = vunpack.c.h.bf16 %v8093_v52 }
 0x13b   :  { %v680_v4 = vadd.f32 %v8150_v48, %v354_v1  ;;  %v356_v61 = vpop.f32.mrb[31].mxu0  ;;  %v682_v40 = vadd.f32 %v8163_v37, %v427_v3  ;;  %v429_v53 = vpop.f32.mrb[31].mxu1  ;;  %v1380_v1 = vunpack.c.l.bf16 %v8097_v56 }
 0x13c   :  { %v8224_v55 = vpack.c.bf16 %v677_v38, %v676_v54  ;;  %v681_v2 = vadd.f32 %v8159_v57, %v356_v61  ;;  %v8228_v44 = vpack.c.bf16 %v679_v62, %v678_v41  ;;  %v683_v34 = vadd.f32 %v8169_v31, %v429_v53 }
 0x13d   :  { %v1381_v57 = vunpack.c.h.bf16 %v8097_v56 }
 0x13e   :  { %v6868_v35 = vpack.c.bf16 %v681_v2, %v680_v4  ;;  %v6869_v32 = vpack.c.bf16 %v683_v34, %v682_v40 }
 0x140   :  { %v1054_v48 = vpop.f32.mrb[32].mxu0  ;;  %v1095_v38 = vpop.f32.mrb[32].mxu1 }
 0x141   :  { %v1382_v54 = vadd.f32 %v1378_v46, %v1054_v48  ;;  %v1056_v45 = vpop.f32.mrb[33].mxu0  ;;  %v1384_v37 = vadd.f32 %v1380_v1, %v1095_v38  ;;  %v1097_v41 = vpop.f32.mrb[33].mxu1 }
 0x142   :  { %v1383_v61 = vadd.f32 %v1379_v33, %v1056_v45  ;;  %v1058_v62 = vpop.f32.mrb[34].mxu0  ;;  %v1385_v31 = vadd.f32 %v1381_v57, %v1097_v41  ;;  %v1099_v2 = vpop.f32.mrb[34].mxu1 }
 0x143   :  { %v6323_v3 = vmul.f32 -1.442695, %v1382_v54  ;;  %v1059_v4 = vpop.f32.mrb[35].mxu0  ;;  %v1100_v53 = vpop.f32.mrb[35].mxu1  ;;  %v1392_v2 = vunpack.c.h.bf16 %v6869_v32 }
 0x144   :  { %v6324_v40 = vmul.f32 -1.442695, %v1383_v61  ;;  %v6325_v34 = vmul.f32 -1.442695, %v1385_v31  ;;  %v1389_v61 = vunpack.c.l.bf16 %v6868_v35  ;;  %v1390_v31 = vunpack.c.h.bf16 %v6868_v35 }
 0x145   :  { %7335 = vpow2.f32 %v6323_v3  ;;  %v1391_v3 = vunpack.c.l.bf16 %v6869_v32  ;;  %v8241_v32 = vld [vmem:[%s9359_s6] ss:$0 sm:$0xff] }
 0x146   :  { %7337 = vpow2.f32 %v6324_v40 }
 0x147   :  { %7339 = vpow2.f32 %v6325_v34 }
 0x148   :  { %7341 = vtanh.f32 %v1384_v37 }
 0x14f   :  { %v7336_v0 = vpop.eup %7335 }
 0x150   :  { %v7338_v52 = vpop.eup %7337  ;;  %v1400_v46 = vadd.f32 1.0, %v7336_v0 }
 0x151   :  { %v1406_v48 = vadd.f32 1.0, %v7338_v52  ;;  %v7340_v56 = vpop.eup %7339 }
 0x152   :  { %7343 = vrcp.f32 %v1400_v46  ;;  %v7342_v45 = vpop.eup %7341  ;;  %v1413_v38 = vadd.f32 1.0, %v7340_v56 }
 0x153   :  { %7345 = vrcp.f32 %v1406_v48 }
 0x154   :  { %7347 = vrcp.f32 %v1413_v38 }
 0x15c   :  { %v7344_v1 = vpop.eup %7343 }
 0x15d   :  { %v7346_v33 = vpop.eup %7345  ;;  %v1417_v54 = vmul.f32 %v7344_v1, %v7342_v45 }
 0x15e   :  { %v1416_v57 = vmul.f32 0.0, %v7346_v33  ;;  %v7348_v35 = vpop.eup %7347 }
 0x160   :  { %v8235_v41 = vadd.f32 %v1417_v54, %v1416_v57  ;;  %v1328_v62 = vpop.f32.mrb[36].mxu0  ;;  %v1369_v4 = vpop.f32.mrb[36].mxu1 }
 0x161   :  { %v1393_v0 = vadd.f32 %v1389_v61, %v1328_v62  ;;  %v1330_v37 = vpop.f32.mrb[37].mxu0  ;;  %v1395_v40 = vadd.f32 %v1391_v3, %v1369_v4  ;;  %v1371_v34 = vpop.f32.mrb[37].mxu1 }
 0x162   :  { %7349 = vtanh.f32 %v8235_v41  ;;  %v1394_v53 = vadd.f32 %v1390_v31, %v1330_v37  ;;  %v1332_v52 = vpop.f32.mrb[38].mxu0  ;;  %v1396_v48 = vadd.f32 %v1392_v2, %v1371_v34  ;;  %v1373_v45 = vpop.f32.mrb[38].mxu1  ;;  %v7609_v37 = vld [vmem:[#allocation8] ss:$16 sps:$4 sm:$0xff]   ;;  %v7610_v2 = vld [vmem:[#allocation8 + $0x8] ss:$16 sps:$4 sm:$0xff]  }
 0x163   :  { %v6326_v46 = vmul.f32 -1.442695, %v1393_v0  ;;  %v1333_v56 = vpop.f32.mrb[39].mxu0  ;;  %v1374_v33 = vpop.f32.mrb[39].mxu1  ;;  %v7612_v34 = vld [vmem:[#allocation8 + $0x2c] ss:$16 sps:$4 sm:$0xff]  }
 0x164   :  { %v6327_v1 = vmul.f32 -1.442695, %v1394_v53  ;;  %v6328_v38 = vmul.f32 -1.442695, %v1396_v48  ;;  %v7611_v53 = vld [vmem:[#allocation8 + $0x24] ss:$16 sps:$4 sm:$0xff]  }
 0x165   :  { %7351 = vpow2.f32 %v6326_v46  ;;  %v9454_v52 = vmov 0   ;;  %v7613_v46 = vld [vmem:[#allocation8 + $0x20] ss:$16 sps:$4 sm:$0xff]  }
 0x166   :  { %7353 = vpow2.f32 %v6327_v1 }
 0x167   :  { %7355 = vpow2.f32 %v6328_v38  ;;  %v8347_v38 = vld [vmem:[#allocation6 + $0xac] ss:$16 sps:$4 sm:$0xff]  }
 0x168   :  { %7357 = vtanh.f32 %v1395_v40 }
 0x16c   :  { %v7350_v54 = vpop.eup %7349 }
 0x16d   :  { %v8243_v57 = vmul.f32 %v7350_v54, %v7348_v35  ;;  %v8345_v54 = vld [vmem:[#allocation6 + $0xa4] ss:$16 sps:$4 sm:$0xff]  }
 0x16f   :  { %9453 = vst [vmem:[#allocation34_spill] sm:$0xff] %v8243_v57  ;;  %v7352_v61 = vpop.eup %7351  ;;  %v5837_v62 = vmul.f32 %v8241_v32, %v8243_v57  ;;  %v1448_v3 = vpack.c.bf16 %v8243_v57, %v8243_v57 }
 0x170   :  { %v7354_v31 = vpop.eup %7353  ;;  %v1424_v0 = vadd.f32 1.0, %v7352_v61  ;;  %v8349_v61 = vld [vmem:[#allocation6 + $0xa0] ss:$16 sps:$4 sm:$0xff]  }
 0x171   :  { %v1430_v4 = vadd.f32 1.0, %v7354_v31  ;;  %5845 = vadd.xlane.f32.xlu0 %v5837_v62  ;;  %1674 = vmatmul.mubr.bf16.vlgmr.msra.gmra.mrb[40].mxu0 %v1448_v3  ;;  %v7356_v40 = vpop.eup %7355  ;;  %v8351_v62 = vld [vmem:[#allocation6 + $0xa8] ss:$16 sps:$4 sm:$0xff]   ;;  %v8359_v31 = vld [vmem:[#allocation6 + $0xcc] ss:$16 sps:$4 sm:$0xff]  }
 0x172   :  { %7359 = vrcp.f32 %v1424_v0  ;;  %1715 = vmatmul.mubr.bf16.vlgmr.msra.gmra.mrb[40].mxu1 %v1448_v3  ;;  %1917 = vmatpush1.bf16.msra.mxu0 %v7609_v37  ;;  %v7358_v48 = vpop.eup %7357  ;;  %v1437_v33 = vadd.f32 1.0, %v7356_v40  ;;  %v8357_v3 = vld [vmem:[#allocation6 + $0xc4] ss:$16 sps:$4 sm:$0xff]   ;;  %v8361_v0 = vld [vmem:[#allocation6 + $0xc0] ss:$16 sps:$4 sm:$0xff]  }
 0x173   :  { %7361 = vrcp.f32 %v1430_v4  ;;  %1958 = vmatpush1.bf16.msra.mxu1 %v7610_v2  ;;  %1918 = vmatprep.subr.bf16.mxu0 %v7611_v53  ;;  %v8363_v4 = vld [vmem:[#allocation6 + $0xc8] ss:$16 sps:$4 sm:$0xff]   ;;  %v8369_v37 = vld [vmem:[#allocation6 + $0xe4] ss:$16 sps:$4 sm:$0xff]   ;;  %v8371_v2 = vld [vmem:[#allocation6 + $0xec] ss:$16 sps:$4 sm:$0xff]  }
 0x174   :  { %1959 = vmatprep.subr.bf16.mxu1 %v7612_v34  ;;  %1948 = vmatprep.mubr.bf16.mxu0 %v9454_v52  ;;  %7363 = vrcp.f32 %v1437_v33  ;;  %v8373_v53 = vld [vmem:[#allocation6 + $0xe0] ss:$16 sps:$4 sm:$0xff]   ;;  %v8375_v34 = vld [vmem:[#allocation6 + $0xe8] ss:$16 sps:$4 sm:$0xff]   ;;  %v8383_v40 = vld [vmem:[#allocation8 + $0xc] ss:$16 sps:$4 sm:$0xff]  }
 0x175   :  { %1989 = vmatprep.mubr.bf16.mxu1 %v9454_v52 }
 0x176   :  { %1919 = vmatpush1.bf16.msra.mxu0 %v7613_v46  ;;  %v8381_v46 = vld [vmem:[#allocation8 + $0x4] ss:$16 sps:$4 sm:$0xff]  }
 0x177   :  { %1960 = vmatpush1.bf16.msra.mxu1 %v7947_v5  ;;  %1920 = vmatprep.subr.bf16.mxu0 %v7949_v6 }
 0x178   :  { %1961 = vmatprep.subr.bf16.mxu1 %v7952_v7 }
 0x17a   :  { %1921 = vmatpush1.bf16.msra.mxu0 %v7954_v8 }
 0x17b   :  { %1962 = vmatpush1.bf16.msra.mxu1 %v7957_v9  ;;  %1922 = vmatprep.subr.bf16.mxu0 %v7959_v10  ;;  %v8285_v10 = vld [vmem:[#allocation6 + $0x4] ss:$16 sps:$4 sm:$0xff]  }
 0x17c   :  { %v7360_v56 = vpop.eup %7359  ;;  %1963 = vmatprep.subr.bf16.mxu1 %v7962_v11  ;;  %v8287_v11 = vld [vmem:[#allocation6 + $0xc] ss:$16 sps:$4 sm:$0xff]  }
 0x17d   :  { %v7362_v45 = vpop.eup %7361  ;;  %v1441_v1 = vmul.f32 %v7360_v56, %v7358_v48  ;;  %v2001_v48 = vunpack.c.l.bf16 %v8100_v58 }
 0x17e   :  { %v1440_v35 = vmul.f32 0.0, %v7362_v45  ;;  %1923 = vmatpush1.bf16.msra.mxu0 %v7967_v12  ;;  %v7364_v6 = vpop.eup %7363  ;;  %v8289_v12 = vld [vmem:[#allocation6] ss:$16 sps:$4 sm:$0xff]   ;;  %v2003_v45 = vunpack.c.l.bf16 %v8102_v59 }
 0x17f   :  { %1964 = vmatpush1.bf16.msra.mxu1 %v7969_v13  ;;  %1924 = vmatprep.subr.bf16.mxu0 %v7971_v14  ;;  %v8291_v13 = vld [vmem:[#allocation6 + $0x8] ss:$16 sps:$4 sm:$0xff]   ;;  %v8297_v14 = vld [vmem:[#allocation6 + $0x24] ss:$16 sps:$4 sm:$0xff]  }
 0x180   :  { %v8261_v5 = vadd.f32 %v1441_v1, %v1440_v35  ;;  %1965 = vmatprep.subr.bf16.mxu1 %v7974_v15  ;;  %v8299_v15 = vld [vmem:[#allocation6 + $0x2c] ss:$16 sps:$4 sm:$0xff]   ;;  %v2002_v1 = vunpack.c.h.bf16 %v8100_v58 }
 0x182   :  { %7365 = vtanh.f32 %v8261_v5  ;;  %1925 = vmatpush1.bf16.msra.mxu0 %v7979_v16  ;;  %v8301_v16 = vld [vmem:[#allocation6 + $0x20] ss:$16 sps:$4 sm:$0xff]  }
 0x183   :  { %1966 = vmatpush1.bf16.msra.mxu1 %v7981_v17  ;;  %1926 = vmatprep.subr.bf16.mxu0 %v7983_v18  ;;  %v8303_v17 = vld [vmem:[#allocation6 + $0x28] ss:$16 sps:$4 sm:$0xff]   ;;  %v8309_v18 = vld [vmem:[#allocation6 + $0x44] ss:$16 sps:$4 sm:$0xff]  }
 0x184   :  { %1967 = vmatprep.subr.bf16.mxu1 %v7986_v19  ;;  %v8311_v19 = vld [vmem:[#allocation6 + $0x4c] ss:$16 sps:$4 sm:$0xff]  }
 0x186   :  { %1927 = vmatpush1.bf16.msra.mxu0 %v7991_v21  ;;  %v8313_v21 = vld [vmem:[#allocation6 + $0x40] ss:$16 sps:$4 sm:$0xff]  }
 0x187   :  { %1968 = vmatpush1.bf16.msra.mxu1 %v7993_v23  ;;  %1928 = vmatprep.subr.bf16.mxu0 %v7995_v24  ;;  %v8315_v23 = vld [vmem:[#allocation6 + $0x48] ss:$16 sps:$4 sm:$0xff]   ;;  %v8321_v24 = vld [vmem:[#allocation6 + $0x64] ss:$16 sps:$4 sm:$0xff]  }
 0x188   :  { %1969 = vmatprep.subr.bf16.mxu1 %v8003_v26  ;;  %v8325_v26 = vld [vmem:[#allocation6 + $0x60] ss:$16 sps:$4 sm:$0xff]  }
 0x18a   :  { %1929 = vmatpush1.bf16.msra.mxu0 %v8001_v25  ;;  %v8323_v25 = vld [vmem:[#allocation6 + $0x6c] ss:$16 sps:$4 sm:$0xff]  }
 0x18b   :  { %1970 = vmatpush1.bf16.msra.mxu1 %v8005_v27  ;;  %1930 = vmatprep.subr.bf16.mxu0 %v8007_v28  ;;  %v8327_v27 = vld [vmem:[#allocation6 + $0x68] ss:$16 sps:$4 sm:$0xff]   ;;  %v8333_v28 = vld [vmem:[#allocation6 + $0x84] ss:$16 sps:$4 sm:$0xff]  }
 0x18c   :  { %v7366_v7 = vpop.eup %7365  ;;  %1971 = vmatprep.subr.bf16.mxu1 %v8010_v29  ;;  %v8335_v29 = vld [vmem:[#allocation6 + $0x8c] ss:$16 sps:$4 sm:$0xff]  }
 0x18d   :  { %v8277_v8 = vmul.f32 %v7366_v7, %v7364_v6  ;;  %v2004_v7 = vunpack.c.h.bf16 %v8102_v59 }
 0x18e   :  { %1931 = vmatpush1.bf16.msra.mxu0 %v8015_v30  ;;  %v8337_v30 = vld [vmem:[#allocation6 + $0x80] ss:$16 sps:$4 sm:$0xff]  }
 0x18f   :  { %9455 = vst [vmem:[#allocation35_spill] sm:$0xff] %v8277_v8  ;;  %1972 = vmatpush1.bf16.msra.mxu1 %v8017_v63  ;;  %v1723_v9 = vpack.c.bf16 %v8277_v8, %v8277_v8  ;;  %2265 = vmatprep.subr.bf16.mxu0 %v8285_v10  ;;  %v8339_v63 = vld [vmem:[#allocation6 + $0x88] ss:$16 sps:$4 sm:$0xff]  }
 0x190   :  { %2306 = vmatprep.subr.bf16.mxu1 %v8287_v11 }
 0x191   :  { %1949 = vmatmul.mubr.bf16.vlgmr.msra.gmra.mrb[44].mxu0 %v1723_v9 }
 0x192   :  { %1990 = vmatmul.mubr.bf16.vlgmr.msra.gmra.mrb[44].mxu1 %v1723_v9  ;;  %2297 = vmatprep.mubr.bf16.mxu0 %v9454_v52 }
 0x193   :  { %2338 = vmatprep.mubr.bf16.mxu1 %v9454_v52  ;;  %2266 = vmatpush1.bf16.msra.mxu0 %v8289_v12 }
 0x194   :  { %2307 = vmatpush1.bf16.msra.mxu1 %v8291_v13  ;;  %2267 = vmatprep.subr.bf16.mxu0 %v8297_v14 }
 0x195   :  { %2308 = vmatprep.subr.bf16.mxu1 %v8299_v15 }
 0x197   :  { %2268 = vmatpush1.bf16.msra.mxu0 %v8301_v16 }
 0x198   :  { %2309 = vmatpush1.bf16.msra.mxu1 %v8303_v17  ;;  %2269 = vmatprep.subr.bf16.mxu0 %v8309_v18 }
 0x199   :  { %2310 = vmatprep.subr.bf16.mxu1 %v8311_v19 }
 0x19b   :  { %2270 = vmatpush1.bf16.msra.mxu0 %v8313_v21 }
 0x19c   :  { %2311 = vmatpush1.bf16.msra.mxu1 %v8315_v23  ;;  %2271 = vmatprep.subr.bf16.mxu0 %v8321_v24 }
 0x19d   :  { %2312 = vmatprep.subr.bf16.mxu1 %v8323_v25 }
 0x19f   :  { %2272 = vmatpush1.bf16.msra.mxu0 %v8325_v26 }
 0x1a0   :  { %2313 = vmatpush1.bf16.msra.mxu1 %v8327_v27  ;;  %2273 = vmatprep.subr.bf16.mxu0 %v8333_v28 }
 0x1a1   :  { %2314 = vmatprep.subr.bf16.mxu1 %v8335_v29 }
 0x1a3   :  { %2274 = vmatpush1.bf16.msra.mxu0 %v8337_v30 }
 0x1a4   :  { %2315 = vmatpush1.bf16.msra.mxu1 %v8339_v63  ;;  %2275 = vmatprep.subr.bf16.mxu0 %v8345_v54 }
 0x1a5   :  { %2316 = vmatprep.subr.bf16.mxu1 %v8347_v38 }
 0x1a7   :  { %2276 = vmatpush1.bf16.msra.mxu0 %v8349_v61 }
 0x1a8   :  { %2317 = vmatpush1.bf16.msra.mxu1 %v8351_v62  ;;  %2277 = vmatprep.subr.bf16.mxu0 %v8357_v3 }
 0x1a9   :  { %2318 = vmatprep.subr.bf16.mxu1 %v8359_v31 }
 0x1ab   :  { %2278 = vmatpush1.bf16.msra.mxu0 %v8361_v0 }
 0x1ac   :  { %2319 = vmatpush1.bf16.msra.mxu1 %v8363_v4  ;;  %2279 = vmatprep.subr.bf16.mxu0 %v8369_v37 }
 0x1ad   :  { %2320 = vmatprep.subr.bf16.mxu1 %v8371_v2 }
 0x1af   :  { %2280 = vmatpush1.bf16.msra.mxu0 %v8373_v53 }
 0x1b0   :  { %2321 = vmatpush1.bf16.msra.mxu1 %v8375_v34  ;;  %2540 = vmatprep.subr.bf16.mxu0 %v8381_v46 }
 0x1b1   :  { %2581 = vmatprep.subr.bf16.mxu1 %v8383_v40 }
 0x244   :  { %v1675_v56 = vpop.f32.mrb[40].mxu0 }
 0x245   :  { %v2005_v33 = vadd.f32 %v2001_v48, %v1675_v56  ;;  %v1716_v35 = vpop.f32.mrb[40].mxu1  ;;  %v1677_v6 = vpop.f32.mrb[41].mxu0 }
 0x246   :  { %v2007_v9 = vadd.f32 %v2003_v45, %v1716_v35  ;;  %v2006_v57 = vadd.f32 %v2002_v1, %v1677_v6  ;;  %v1718_v8 = vpop.f32.mrb[41].mxu1  ;;  %v1679_v22 = vpop.f32.mrb[42].mxu0  ;;  %v2015_v35 = vunpack.c.h.bf16 %v8228_v44 }
 0x247   :  { %v6393_v42 = vmul.f32 -1.442695, %v2005_v33  ;;  %v2008_v20 = vadd.f32 %v2004_v7, %v1718_v8  ;;  %v1720_v39 = vpop.f32.mrb[42].mxu1  ;;  %v1680_v60 = vpop.f32.mrb[43].mxu0 }
 0x248   :  { %v6394_v50 = vmul.f32 -1.442695, %v2006_v57  ;;  %v1721_v49 = vpop.f32.mrb[43].mxu1 }
 0x249   :  { %7367 = vpow2.f32 %v6393_v42  ;;  %v6395_v36 = vmul.f32 -1.442695, %v2008_v20  ;;  %v2012_v49 = vunpack.c.l.bf16 %v8224_v55  ;;  %v2014_v42 = vunpack.c.l.bf16 %v8228_v44  ;;  %v8401_v44 = vld [vmem:[#allocation8] ss:$16 sps:$4 sm:$0xff]  }
 0x24a   :  { %7369 = vpow2.f32 %v6394_v50 }
 0x24b   :  { %7371 = vpow2.f32 %v6395_v36 }
 0x24c   :  { %7373 = vtanh.f32 %v2007_v9 }
 0x253   :  { %v7368_v51 = vpop.eup %7367 }
 0x254   :  { %v7370_v58 = vpop.eup %7369  ;;  %v2023_v48 = vadd.f32 1.0, %v7368_v51  ;;  %v2013_v51 = vunpack.c.h.bf16 %v8224_v55 }
 0x255   :  { %v2029_v56 = vadd.f32 1.0, %v7370_v58  ;;  %v7372_v59 = vpop.eup %7371 }
 0x256   :  { %7375 = vrcp.f32 %v2023_v48  ;;  %v7374_v45 = vpop.eup %7373  ;;  %v2036_v39 = vadd.f32 1.0, %v7372_v59 }
 0x257   :  { %7377 = vrcp.f32 %v2029_v56 }
 0x258   :  { %7379 = vrcp.f32 %v2036_v39 }
 0x260   :  { %v7376_v22 = vpop.eup %7375 }
 0x261   :  { %v7378_v1 = vpop.eup %7377  ;;  %v2040_v8 = vmul.f32 %v7376_v22, %v7374_v45 }
 0x262   :  { %v2039_v60 = vmul.f32 %v7378_v1, %v8235_v41  ;;  %v7380_v55 = vpop.eup %7379 }
 0x264   :  { %v8393_v50 = vadd.f32 %v2040_v8, %v2039_v60  ;;  %v1950_v20 = vpop.f32.mrb[44].mxu0 }
 0x265   :  { %v2016_v36 = vadd.f32 %v2012_v49, %v1950_v20  ;;  %v1991_v57 = vpop.f32.mrb[44].mxu1  ;;  %v1952_v33 = vpop.f32.mrb[45].mxu0  ;;  %v8403_v49 = vld [vmem:[#allocation8 + $0x8] ss:$16 sps:$4 sm:$0xff]  }
 0x266   :  { %v2018_v6 = vadd.f32 %v2014_v42, %v1991_v57  ;;  %v2017_v7 = vadd.f32 %v2013_v51, %v1952_v33  ;;  %v1993_v9 = vpop.f32.mrb[45].mxu1  ;;  %v1954_v58 = vpop.f32.mrb[46].mxu0  ;;  %7381 = vtanh.f32 %v8393_v50  ;;  %v8409_v51 = vld [vmem:[#allocation8 + $0x24] ss:$16 sps:$4 sm:$0xff]   ;;  %v8411_v33 = vld [vmem:[#allocation8 + $0x2c] ss:$16 sps:$4 sm:$0xff]  }
 0x267   :  { %v6396_v41 = vmul.f32 -1.442695, %v2016_v36  ;;  %v2019_v48 = vadd.f32 %v2015_v35, %v1993_v9  ;;  %v1995_v56 = vpop.f32.mrb[46].mxu1  ;;  %v1955_v59 = vpop.f32.mrb[47].mxu0  ;;  %v8418_v9 = vld [vmem:[#allocation8 + $0x28] ss:$16 sps:$4 sm:$0xff]  }
 0x268   :  { %v6397_v45 = vmul.f32 -1.442695, %v2017_v7  ;;  %v1996_v22 = vpop.f32.mrb[47].mxu1  ;;  %v8414_v7 = vld [vmem:[#allocation8 + $0x20] ss:$16 sps:$4 sm:$0xff]  }
 0x269   :  { %7383 = vpow2.f32 %v6396_v41  ;;  %v6398_v8 = vmul.f32 -1.442695, %v2019_v48  ;;  %v8420_v58 = vld [vmem:[#allocation8 + $0x44] ss:$16 sps:$4 sm:$0xff]   ;;  %v8428_v41 = vld [vmem:[#allocation8 + $0x40] ss:$16 sps:$4 sm:$0xff]  }
 0x26a   :  { %7385 = vpow2.f32 %v6397_v45  ;;  %v8432_v48 = vld [vmem:[#allocation8 + $0x48] ss:$16 sps:$4 sm:$0xff]   ;;  %v8434_v56 = vld [vmem:[#allocation8 + $0x64] ss:$16 sps:$4 sm:$0xff]   ;;  %v8437_v59 = vld [vmem:[#allocation8 + $0x6c] ss:$16 sps:$4 sm:$0xff]  }
 0x26b   :  { %7387 = vpow2.f32 %v6398_v8  ;;  %9457 = vst [vmem:[#allocation37_spill] sm:$0xff] %v8432_v48  ;;  %9458 = vst [vmem:[#allocation38_spill] sm:$0xff] %v8434_v56  ;;  %v8440_v22 = vld [vmem:[#allocation8 + $0x60] ss:$16 sps:$4 sm:$0xff]   ;;  %v8446_v8 = vld [vmem:[#allocation8 + $0x84] ss:$16 sps:$4 sm:$0xff]  }
 0x26c   :  { %7389 = vtanh.f32 %v2018_v6  ;;  %v8423_v6 = vld [vmem:[#allocation8 + $0x4c] ss:$16 sps:$4 sm:$0xff]   ;;  %9459 = vst [vmem:[#allocation39_spill] sm:$0xff] %v8437_v59 }
 0x270   :  { %v7382_v1 = vpop.eup %7381 }
 0x271   :  { %v8399_v39 = vmul.f32 %v7382_v1, %v7380_v55  ;;  %v8444_v1 = vld [vmem:[#allocation8 + $0x68] ss:$16 sps:$4 sm:$0xff]  }
 0x273   :  { %9456 = vst [vmem:[#allocation36_spill] sm:$0xff] %v8399_v39  ;;  %v7384_v60 = vpop.eup %7383  ;;  %v5838_v20 = vmul.f32 %v8241_v32, %v8399_v39  ;;  %v2072_v42 = vpack.c.bf16 %v8399_v39, %v8399_v39  ;;  %v8453_v39 = vld [vmem:[#allocation8 + $0x80] ss:$16 sps:$4 sm:$0xff]  }
 0x274   :  { %v7386_v36 = vpop.eup %7385  ;;  %v2047_v57 = vadd.f32 1.0, %v7384_v60 }
 0x275   :  { %v2053_v35 = vadd.f32 1.0, %v7386_v36  ;;  %5847 = vadd.xlane.f32.xlu0 %v5838_v20  ;;  %2298 = vmatmul.mubr.bf16.vlgmr.msra.gmra.mrb[48].mxu0 %v2072_v42  ;;  %v7388_v45 = vpop.eup %7387  ;;  %v8449_v20 = vld [vmem:[#allocation8 + $0x8c] ss:$16 sps:$4 sm:$0xff]  }
 0x276   :  { %7391 = vrcp.f32 %v2047_v57  ;;  %2339 = vmatmul.mubr.bf16.vlgmr.msra.gmra.mrb[48].mxu1 %v2072_v42  ;;  %2541 = vmatpush1.bf16.msra.mxu0 %v8401_v44  ;;  %v7390_v55 = vpop.eup %7389  ;;  %v2060_v57 = vadd.f32 1.0, %v7388_v45  ;;  %v8472_v45 = vld [vmem:[#allocation8 + $0xa8] ss:$16 sps:$4 sm:$0xff]  }
 0x277   :  { %7393 = vrcp.f32 %v2053_v35  ;;  %2582 = vmatpush1.bf16.msra.mxu1 %v8403_v49  ;;  %2542 = vmatprep.subr.bf16.mxu0 %v8409_v51  ;;  %9464 = vst [vmem:[#allocation44_spill] sm:$0xff] %v8472_v45 }
 0x278   :  { %2583 = vmatprep.subr.bf16.mxu1 %v8411_v33  ;;  %2572 = vmatprep.mubr.bf16.mxu0 %v9454_v52  ;;  %7395 = vrcp.f32 %v2060_v57  ;;  %v8484_v57 = vld [vmem:[#allocation8 + $0xc8] ss:$16 sps:$4 sm:$0xff]  }
 0x279   :  { %2613 = vmatprep.mubr.bf16.mxu1 %v9454_v52 }
 0x27a   :  { %2543 = vmatpush1.bf16.msra.mxu0 %v8414_v7 }
 0x27b   :  { %2584 = vmatpush1.bf16.msra.mxu1 %v8418_v9  ;;  %2544 = vmatprep.subr.bf16.mxu0 %v8420_v58 }
 0x27c   :  { %2585 = vmatprep.subr.bf16.mxu1 %v8423_v6 }
 0x27e   :  { %2545 = vmatpush1.bf16.msra.mxu0 %v8428_v41 }
 0x27f   :  { %2586 = vmatpush1.bf16.msra.mxu1 %v8432_v48  ;;  %2546 = vmatprep.subr.bf16.mxu0 %v8434_v56  ;;  %v8457_v56 = vld [vmem:[#allocation8 + $0x88] ss:$16 sps:$4 sm:$0xff]   ;;  %v8459_v48 = vld [vmem:[#allocation8 + $0xa4] ss:$16 sps:$4 sm:$0xff]  }
 0x280   :  { %v7392_v60 = vpop.eup %7391  ;;  %2587 = vmatprep.subr.bf16.mxu1 %v8437_v59  ;;  %9460 = vst [vmem:[#allocation40_spill] sm:$0xff] %v8457_v56  ;;  %9461 = vst [vmem:[#allocation41_spill] sm:$0xff] %v8459_v48 }
 0x281   :  { %v7394_v42 = vpop.eup %7393  ;;  %v2064_v36 = vmul.f32 %v7392_v60, %v7390_v55  ;;  %v8464_v55 = vld [vmem:[#allocation8 + $0xac] ss:$16 sps:$4 sm:$0xff]   ;;  %v8474_v60 = vld [vmem:[#allocation8 + $0xc4] ss:$16 sps:$4 sm:$0xff]  }
 0x282   :  { %v2063_v35 = vmul.f32 %v7394_v42, %v8261_v5  ;;  %2547 = vmatpush1.bf16.msra.mxu0 %v8440_v22  ;;  %9462 = vst [vmem:[#allocation42_spill] sm:$0xff] %v8464_v55  ;;  %v8468_v5 = vld [vmem:[#allocation8 + $0xa0] ss:$16 sps:$4 sm:$0xff]   ;;  %9465 = vst [vmem:[#allocation45_spill] sm:$0xff] %v8474_v60  ;;  %v8477_v42 = vld [vmem:[#allocation8 + $0xcc] ss:$16 sps:$4 sm:$0xff]  }
 0x283   :  { %2588 = vmatpush1.bf16.msra.mxu1 %v8444_v1  ;;  %2548 = vmatprep.subr.bf16.mxu0 %v8446_v8  ;;  %9463 = vst [vmem:[#allocation43_spill] sm:$0xff] %v8468_v5 }
 0x284   :  { %v8461_v59 = vadd.f32 %v2064_v36, %v2063_v35  ;;  %2589 = vmatprep.subr.bf16.mxu1 %v8449_v20  ;;  %v8480_v36 = vld [vmem:[#allocation8 + $0xc0] ss:$16 sps:$4 sm:$0xff]   ;;  %v8486_v35 = vld [vmem:[#allocation8 + $0xe4] ss:$16 sps:$4 sm:$0xff]  }
 0x285   :  { %9466 = vst [vmem:[#allocation46_spill] sm:$0xff] %v8480_v36 }
 0x286   :  { %7397 = vtanh.f32 %v8461_v59  ;;  %2549 = vmatpush1.bf16.msra.mxu0 %v8453_v39 }
 0x287   :  { %2590 = vmatpush1.bf16.msra.mxu1 %v8457_v56  ;;  %2550 = vmatprep.subr.bf16.mxu0 %v8459_v48  ;;  %v8489_v48 = vld [vmem:[#allocation8 + $0xec] ss:$16 sps:$4 sm:$0xff]   ;;  %v7396_v56 = vpop.eup %7395 }
 0x288   :  { %2591 = vmatprep.subr.bf16.mxu1 %v8464_v55  ;;  %v8492_v55 = vld [vmem:[#allocation8 + $0xe0] ss:$16 sps:$4 sm:$0xff]  }
 0x28a   :  { %2551 = vmatpush1.bf16.msra.mxu0 %v8468_v5 }
 0x28b   :  { %2592 = vmatpush1.bf16.msra.mxu1 %v8472_v45  ;;  %2552 = vmatprep.subr.bf16.mxu0 %v8474_v60  ;;  %v8496_v45 = vld [vmem:[#allocation8 + $0xe8] ss:$16 sps:$4 sm:$0xff]  }
 0x28c   :  { %2593 = vmatprep.subr.bf16.mxu1 %v8477_v42 }
 0x28e   :  { %2553 = vmatpush1.bf16.msra.mxu0 %v8480_v36 }
 0x28f   :  { %2594 = vmatpush1.bf16.msra.mxu1 %v8484_v57  ;;  %2554 = vmatprep.subr.bf16.mxu0 %v8486_v35 }
 0x290   :  { %v7398_v60 = vpop.eup %7397  ;;  %2595 = vmatprep.subr.bf16.mxu1 %v8489_v48 }
 0x291   :  { %v8499_v5 = vmul.f32 %v7398_v60, %v7396_v56 }
 0x292   :  { %2555 = vmatpush1.bf16.msra.mxu0 %v8492_v55 }
 0x293   :  { %9467 = vst [vmem:[#allocation47_spill] sm:$0xff] %v8499_v5  ;;  %2596 = vmatpush1.bf16.msra.mxu1 %v8496_v45  ;;  %v2347_v36 = vpack.c.bf16 %v8499_v5, %v8499_v5  ;;  %2889 = vmatprep.subr.bf16.mxu0 %v8285_v10  ;;  %v2625_v10 = vunpack.c.l.bf16 %v8109_v43  ;;  %v8785_v5 = vld [vmem:[#allocation8 + $0x88] ss:$16 sps:$4 sm:$0xff]  }
 0x294   :  { %2930 = vmatprep.subr.bf16.mxu1 %v8287_v11 }
 0x295   :  { %2573 = vmatmul.mubr.bf16.vlgmr.msra.gmra.mrb[52].mxu0 %v2347_v36 }
 0x296   :  { %2614 = vmatmul.mubr.bf16.vlgmr.msra.gmra.mrb[52].mxu1 %v2347_v36  ;;  %2890 = vmatpush1.bf16.msra.mxu0 %v8289_v12  ;;  %v2627_v12 = vunpack.c.l.bf16 %v8113_v47 }
 0x297   :  { %2931 = vmatpush1.bf16.msra.mxu1 %v8291_v13  ;;  %2891 = vmatprep.subr.bf16.mxu0 %v8297_v14  ;;  %v2626_v13 = vunpack.c.h.bf16 %v8109_v43 }
 0x298   :  { %2932 = vmatprep.subr.bf16.mxu1 %v8299_v15  ;;  %2921 = vmatprep.mubr.bf16.mxu0 %v9454_v52 }
 0x299   :  { %2962 = vmatprep.mubr.bf16.mxu1 %v9454_v52 }
 0x29a   :  { %2892 = vmatpush1.bf16.msra.mxu0 %v8301_v16 }
 0x29b   :  { %2933 = vmatpush1.bf16.msra.mxu1 %v8303_v17  ;;  %2893 = vmatprep.subr.bf16.mxu0 %v8309_v18  ;;  %v2628_v17 = vunpack.c.h.bf16 %v8113_v47 }
 0x29c   :  { %2934 = vmatprep.subr.bf16.mxu1 %v8311_v19 }
 0x29e   :  { %2894 = vmatpush1.bf16.msra.mxu0 %v8313_v21 }
 0x29f   :  { %2935 = vmatpush1.bf16.msra.mxu1 %v8315_v23  ;;  %2895 = vmatprep.subr.bf16.mxu0 %v8321_v24 }
 0x2a0   :  { %2936 = vmatprep.subr.bf16.mxu1 %v8323_v25 }
 0x2a2   :  { %2896 = vmatpush1.bf16.msra.mxu0 %v8325_v26 }
 0x2a3   :  { %2937 = vmatpush1.bf16.msra.mxu1 %v8327_v27  ;;  %2897 = vmatprep.subr.bf16.mxu0 %v8333_v28 }
 0x2a4   :  { %2938 = vmatprep.subr.bf16.mxu1 %v8335_v29 }
 0x2a6   :  { %2898 = vmatpush1.bf16.msra.mxu0 %v8337_v30 }
 0x2a7   :  { %2939 = vmatpush1.bf16.msra.mxu1 %v8339_v63  ;;  %2899 = vmatprep.subr.bf16.mxu0 %v8345_v54 }
 0x2a8   :  { %2940 = vmatprep.subr.bf16.mxu1 %v8347_v38 }
 0x2aa   :  { %2900 = vmatpush1.bf16.msra.mxu0 %v8349_v61 }
 0x2ab   :  { %2941 = vmatpush1.bf16.msra.mxu1 %v8351_v62  ;;  %2901 = vmatprep.subr.bf16.mxu0 %v8357_v3 }
 0x2ac   :  { %2942 = vmatprep.subr.bf16.mxu1 %v8359_v31 }
 0x2ae   :  { %2902 = vmatpush1.bf16.msra.mxu0 %v8361_v0 }
 0x2af   :  { %2943 = vmatpush1.bf16.msra.mxu1 %v8363_v4  ;;  %2903 = vmatprep.subr.bf16.mxu0 %v8369_v37  ;;  %v9468_v37 = vld [vmem:[#allocation32_spill] sm:$0xff] }
 0x2b0   :  { %2944 = vmatprep.subr.bf16.mxu1 %v8371_v2  ;;  %v2636_v2 = vunpack.c.l.bf16 %v9468_v37 }
 0x2b2   :  { %2904 = vmatpush1.bf16.msra.mxu0 %v8373_v53 }
 0x2b3   :  { %2945 = vmatpush1.bf16.msra.mxu1 %v8375_v34  ;;  %3164 = vmatprep.subr.bf16.mxu0 %v8381_v46  ;;  %v9469_v34 = vld [vmem:[#allocation33_spill] sm:$0xff] }
 0x2b4   :  { %3205 = vmatprep.subr.bf16.mxu1 %v8383_v40  ;;  %v2638_v46 = vunpack.c.l.bf16 %v9469_v34  ;;  %v2637_v40 = vunpack.c.h.bf16 %v9468_v37  ;;  %v8626_v37 = vld [vmem:[#allocation6 + $0x28] ss:$16 sps:$4 sm:$0xff]  }
 0x348   :  { %v2299_v11 = vpop.f32.mrb[48].mxu0 }
 0x349   :  { %v2629_v14 = vadd.f32 %v2625_v10, %v2299_v11  ;;  %v2340_v15 = vpop.f32.mrb[48].mxu1  ;;  %v2301_v16 = vpop.f32.mrb[49].mxu0  ;;  %v2639_v11 = vunpack.c.h.bf16 %v9469_v34  ;;  %v8636_v34 = vld [vmem:[#allocation6 + $0x40] ss:$16 sps:$4 sm:$0xff]  }
 0x34a   :  { %v2631_v18 = vadd.f32 %v2627_v12, %v2340_v15  ;;  %v2630_v19 = vadd.f32 %v2626_v13, %v2301_v16  ;;  %v2342_v21 = vpop.f32.mrb[49].mxu1  ;;  %v2303_v23 = vpop.f32.mrb[50].mxu0 }
 0x34b   :  { %v6463_v24 = vmul.f32 -1.442695, %v2629_v14  ;;  %v2632_v25 = vadd.f32 %v2628_v17, %v2342_v21  ;;  %v2344_v26 = vpop.f32.mrb[50].mxu1  ;;  %v2304_v27 = vpop.f32.mrb[51].mxu0 }
 0x34c   :  { %v6464_v28 = vmul.f32 -1.442695, %v2630_v19  ;;  %v2345_v29 = vpop.f32.mrb[51].mxu1 }
 0x34d   :  { %7399 = vpow2.f32 %v6463_v24  ;;  %v6465_v30 = vmul.f32 -1.442695, %v2632_v25 }
 0x34e   :  { %7401 = vpow2.f32 %v6464_v28 }
 0x34f   :  { %7403 = vpow2.f32 %v6465_v30 }
 0x350   :  { %7405 = vtanh.f32 %v2631_v18 }
 0x357   :  { %v7400_v63 = vpop.eup %7399 }
 0x358   :  { %v7402_v43 = vpop.eup %7401  ;;  %v2647_v54 = vadd.f32 1.0, %v7400_v63 }
 0x359   :  { %v2653_v38 = vadd.f32 1.0, %v7402_v43  ;;  %v7404_v47 = vpop.eup %7403 }
 0x35a   :  { %7407 = vrcp.f32 %v2647_v54  ;;  %v7406_v61 = vpop.eup %7405  ;;  %v2660_v0 = vadd.f32 1.0, %v7404_v47  ;;  %v9473_v54 = vld [vmem:[#allocation39_spill] sm:$0xff] }
 0x35b   :  { %7409 = vrcp.f32 %v2653_v38 }
 0x35c   :  { %7411 = vrcp.f32 %v2660_v0  ;;  %v8622_v0 = vld [vmem:[#allocation6 + $0x2c] ss:$16 sps:$4 sm:$0xff]  }
 0x364   :  { %v7408_v62 = vpop.eup %7407 }
 0x365   :  { %v7410_v3 = vpop.eup %7409  ;;  %v2664_v31 = vmul.f32 %v7408_v62, %v7406_v61 }
 0x366   :  { %v2663_v4 = vmul.f32 %v7410_v3, %v8393_v50  ;;  %v7412_v23 = vpop.eup %7411  ;;  %v8599_v3 = vld [vmem:[%s9360_s7] ss:$0 sm:$0xff] }
 0x368   :  { %v2574_v53 = vpop.f32.mrb[52].mxu0  ;;  %v8549_v56 = vadd.f32 %v2664_v31, %v2663_v4  ;;  %v8620_v31 = vld [vmem:[#allocation6 + $0x24] ss:$16 sps:$4 sm:$0xff]   ;;  %v8624_v4 = vld [vmem:[#allocation6 + $0x20] ss:$16 sps:$4 sm:$0xff]  }
 0x369   :  { %v2640_v60 = vadd.f32 %v2636_v2, %v2574_v53  ;;  %v2615_v36 = vpop.f32.mrb[52].mxu1  ;;  %v2576_v10 = vpop.f32.mrb[53].mxu0  ;;  %v8632_v2 = vld [vmem:[#allocation6 + $0x44] ss:$16 sps:$4 sm:$0xff]   ;;  %v8634_v53 = vld [vmem:[#allocation6 + $0x4c] ss:$16 sps:$4 sm:$0xff]  }
 0x36a   :  { %v2642_v12 = vadd.f32 %v2638_v46, %v2615_v36  ;;  %v2641_v13 = vadd.f32 %v2637_v40, %v2576_v10  ;;  %v2617_v14 = vpop.f32.mrb[53].mxu1  ;;  %v2578_v15 = vpop.f32.mrb[54].mxu0  ;;  %7413 = vtanh.f32 %v8549_v56  ;;  %v8638_v46 = vld [vmem:[#allocation6 + $0x48] ss:$16 sps:$4 sm:$0xff]   ;;  %v8644_v40 = vld [vmem:[#allocation6 + $0x64] ss:$16 sps:$4 sm:$0xff]  }
 0x36b   :  { %v6466_v50 = vmul.f32 -1.442695, %v2640_v60  ;;  %v2643_v16 = vadd.f32 %v2639_v11, %v2617_v14  ;;  %v2619_v17 = vpop.f32.mrb[54].mxu1  ;;  %v2579_v18 = vpop.f32.mrb[55].mxu0  ;;  %v8646_v60 = vld [vmem:[#allocation6 + $0x6c] ss:$16 sps:$4 sm:$0xff]  }
 0x36c   :  { %v6467_v19 = vmul.f32 -1.442695, %v2641_v13  ;;  %v2620_v21 = vpop.f32.mrb[55].mxu1  ;;  %v8648_v36 = vld [vmem:[#allocation6 + $0x60] ss:$16 sps:$4 sm:$0xff]  }
 0x36d   :  { %7415 = vpow2.f32 %v6466_v50  ;;  %v6468_v25 = vmul.f32 -1.442695, %v2643_v16  ;;  %v8650_v10 = vld [vmem:[#allocation6 + $0x68] ss:$16 sps:$4 sm:$0xff]   ;;  %v8656_v11 = vld [vmem:[#allocation6 + $0x84] ss:$16 sps:$4 sm:$0xff]  }
 0x36e   :  { %7417 = vpow2.f32 %v6467_v19  ;;  %v8660_v13 = vld [vmem:[#allocation6 + $0x80] ss:$16 sps:$4 sm:$0xff]   ;;  %v8662_v14 = vld [vmem:[#allocation6 + $0x88] ss:$16 sps:$4 sm:$0xff]   ;;  %v8668_v15 = vld [vmem:[#allocation6 + $0xa4] ss:$16 sps:$4 sm:$0xff]  }
 0x36f   :  { %7419 = vpow2.f32 %v6468_v25  ;;  %v8670_v50 = vld [vmem:[#allocation6 + $0xac] ss:$16 sps:$4 sm:$0xff]   ;;  %v8672_v16 = vld [vmem:[#allocation6 + $0xa0] ss:$16 sps:$4 sm:$0xff]   ;;  %v8674_v17 = vld [vmem:[#allocation6 + $0xa8] ss:$16 sps:$4 sm:$0xff]  }
 0x370   :  { %7421 = vtanh.f32 %v2642_v12  ;;  %v8658_v12 = vld [vmem:[#allocation6 + $0x8c] ss:$16 sps:$4 sm:$0xff]   ;;  %v8680_v18 = vld [vmem:[#allocation6 + $0xc4] ss:$16 sps:$4 sm:$0xff]   ;;  %v8684_v21 = vld [vmem:[#allocation6 + $0xc0] ss:$16 sps:$4 sm:$0xff]  }
 0x371   :  { %v8682_v19 = vld [vmem:[#allocation6 + $0xcc] ss:$16 sps:$4 sm:$0xff]  }
 0x372   :  { %v8694_v25 = vld [vmem:[#allocation6 + $0xec] ss:$16 sps:$4 sm:$0xff]  }
 0x374   :  { %v7414_v24 = vpop.eup %7413 }
 0x375   :  { %v8553_v26 = vmul.f32 %v7414_v24, %v7412_v23  ;;  %v8686_v23 = vld [vmem:[#allocation6 + $0xc8] ss:$16 sps:$4 sm:$0xff]   ;;  %v8692_v24 = vld [vmem:[#allocation6 + $0xe4] ss:$16 sps:$4 sm:$0xff]  }
 0x377   :  { %9470 = vst [vmem:[#allocation32_spill] sm:$0xff] %v8553_v26  ;;  %v7416_v27 = vpop.eup %7415  ;;  %v5839_v28 = vmul.f32 %v8241_v32, %v8553_v26  ;;  %v2696_v29 = vpack.c.bf16 %v8553_v26, %v8553_v26  ;;  %v8781_v26 = vld [vmem:[#allocation8 + $0x80] ss:$16 sps:$4 sm:$0xff]  }
 0x378   :  { %v7418_v30 = vpop.eup %7417  ;;  %v2671_v63 = vadd.f32 1.0, %v7416_v27  ;;  %v8696_v27 = vld [vmem:[#allocation6 + $0xe0] ss:$16 sps:$4 sm:$0xff]  }
 0x379   :  { %v2677_v43 = vadd.f32 1.0, %v7418_v30  ;;  %5849 = vadd.xlane.f32.xlu1 %v5839_v28  ;;  %2922 = vmatmul.mubr.bf16.vlgmr.msra.gmra.mrb[56].mxu0 %v2696_v29  ;;  %v7420_v32 = vpop.eup %7419  ;;  %v8698_v28 = vld [vmem:[#allocation6 + $0xe8] ss:$16 sps:$4 sm:$0xff]   ;;  %v8706_v30 = vld [vmem:[#allocation8 + $0xc] ss:$16 sps:$4 sm:$0xff]  }
 0x37a   :  { %7423 = vrcp.f32 %v2671_v63  ;;  %2963 = vmatmul.mubr.bf16.vlgmr.msra.gmra.mrb[56].mxu1 %v2696_v29  ;;  %3165 = vmatpush1.bf16.msra.mxu0 %v8401_v44  ;;  %v7422_v44 = vpop.eup %7421  ;;  %v8704_v29 = vld [vmem:[#allocation8 + $0x4] ss:$16 sps:$4 sm:$0xff]  }
 0x37b   :  { %7425 = vrcp.f32 %v2677_v43  ;;  %3206 = vmatpush1.bf16.msra.mxu1 %v8403_v49  ;;  %3166 = vmatprep.subr.bf16.mxu0 %v8409_v51  ;;  %v9471_v49 = vld [vmem:[#allocation37_spill] sm:$0xff]  ;;  %v9472_v51 = vld [vmem:[#allocation38_spill] sm:$0xff]  ;;  %v9482_v63 = vld [vmem:[#allocation12_spill] sm:$0xff] }
 0x37c   :  { %3207 = vmatprep.subr.bf16.mxu1 %v8411_v33  ;;  %3196 = vmatprep.mubr.bf16.mxu0 %v9454_v52  ;;  %v3249_v43 = vunpack.c.l.bf16 %v9482_v63 }
 0x37d   :  { %3237 = vmatprep.mubr.bf16.mxu1 %v9454_v52 }
 0x37e   :  { %3167 = vmatpush1.bf16.msra.mxu0 %v8414_v7  ;;  %v2684_v7 = vadd.f32 1.0, %v7420_v32 }
 0x37f   :  { %3208 = vmatpush1.bf16.msra.mxu1 %v8418_v9  ;;  %3168 = vmatprep.subr.bf16.mxu0 %v8420_v58 }
 0x380   :  { %3209 = vmatprep.subr.bf16.mxu1 %v8423_v6  ;;  %7427 = vrcp.f32 %v2684_v7  ;;  %v9474_v6 = vld [vmem:[#allocation40_spill] sm:$0xff] }
 0x381   :  { %9489 = vst [vmem:[#allocation40_spill] sm:$0xff] %v8785_v5 }
 0x382   :  { %3169 = vmatpush1.bf16.msra.mxu0 %v8428_v41  ;;  %v9475_v41 = vld [vmem:[#allocation41_spill] sm:$0xff] }
 0x383   :  { %3210 = vmatpush1.bf16.msra.mxu1 %v9471_v49  ;;  %3170 = vmatprep.subr.bf16.mxu0 %v9472_v51  ;;  %v3250_v51 = vunpack.c.h.bf16 %v9482_v63 }
 0x384   :  { %v7424_v33 = vpop.eup %7423  ;;  %3211 = vmatprep.subr.bf16.mxu1 %v9473_v54 }
 0x385   :  { %v7426_v38 = vpop.eup %7425  ;;  %v2688_v47 = vmul.f32 %v7424_v33, %v7422_v44  ;;  %v9483_v44 = vld [vmem:[#allocation13_spill] sm:$0xff] }
 0x386   :  { %v2687_v9 = vmul.f32 %v7426_v38, %v8461_v59  ;;  %3171 = vmatpush1.bf16.msra.mxu0 %v8440_v22  ;;  %v9476_v59 = vld [vmem:[#allocation42_spill] sm:$0xff]  ;;  %v9477_v22 = vld [vmem:[#allocation43_spill] sm:$0xff]  ;;  %v3251_v49 = vunpack.c.l.bf16 %v9483_v44 }
 0x387   :  { %3212 = vmatpush1.bf16.msra.mxu1 %v8444_v1  ;;  %3172 = vmatprep.subr.bf16.mxu0 %v8446_v8  ;;  %v9478_v1 = vld [vmem:[#allocation44_spill] sm:$0xff]  ;;  %v9479_v8 = vld [vmem:[#allocation45_spill] sm:$0xff] }
 0x388   :  { %v8577_v58 = vadd.f32 %v2688_v47, %v2687_v9  ;;  %3213 = vmatprep.subr.bf16.mxu1 %v8449_v20  ;;  %v9480_v20 = vld [vmem:[#allocation46_spill] sm:$0xff]  ;;  %v3252_v47 = vunpack.c.h.bf16 %v9483_v44 }
 0x38a   :  { %3173 = vmatpush1.bf16.msra.mxu0 %v8453_v39  ;;  %7429 = vtanh.f32 %v8577_v58  ;;  %v7428_v61 = vpop.eup %7427 }
 0x38b   :  { %3214 = vmatpush1.bf16.msra.mxu1 %v9474_v6  ;;  %3174 = vmatprep.subr.bf16.mxu0 %v9475_v41 }
 0x38c   :  { %3215 = vmatprep.subr.bf16.mxu1 %v9476_v59 }
 0x38e   :  { %3175 = vmatpush1.bf16.msra.mxu0 %v9477_v22 }
 0x38f   :  { %3216 = vmatpush1.bf16.msra.mxu1 %v9478_v1  ;;  %3176 = vmatprep.subr.bf16.mxu0 %v9479_v8 }
 0x390   :  { %3217 = vmatprep.subr.bf16.mxu1 %v8477_v42 }
 0x392   :  { %3177 = vmatpush1.bf16.msra.mxu0 %v9480_v20 }
 0x393   :  { %3218 = vmatpush1.bf16.msra.mxu1 %v8484_v57  ;;  %3178 = vmatprep.subr.bf16.mxu0 %v8486_v35  ;;  %v8612_v35 = vld [vmem:[#allocation6] ss:$16 sps:$4 sm:$0xff]  }
 0x394   :  { %v7430_v39 = vpop.eup %7429  ;;  %3219 = vmatprep.subr.bf16.mxu1 %v8489_v48  ;;  %v8608_v48 = vld [vmem:[#allocation6 + $0x4] ss:$16 sps:$4 sm:$0xff]  }
 0x395   :  { %v8593_v62 = vmul.f32 %v7430_v39, %v7428_v61 }
 0x396   :  { %3179 = vmatpush1.bf16.msra.mxu0 %v8492_v55  ;;  %v8610_v55 = vld [vmem:[#allocation6 + $0xc] ss:$16 sps:$4 sm:$0xff]  }
 0x397   :  { %9481 = vst [vmem:[#allocation33_spill] sm:$0xff] %v8593_v62  ;;  %3220 = vmatpush1.bf16.msra.mxu1 %v8496_v45  ;;  %v5873_v42 = vmul.f32 %v8599_v3, %v8593_v62  ;;  %v2971_v57 = vpack.c.bf16 %v8593_v62, %v8593_v62  ;;  %v8614_v45 = vld [vmem:[#allocation6 + $0x8] ss:$16 sps:$4 sm:$0xff]   ;;  %3513 = vmatprep.subr.bf16.mxu0 %v8608_v48 }
 0x398   :  { %3554 = vmatprep.subr.bf16.mxu1 %v8610_v55 }
 0x399   :  { %5886 = vadd.xlane.f32.xlu1 %v5873_v42  ;;  %3197 = vmatmul.mubr.bf16.vlgmr.msra.gmra.mrb[60].mxu0 %v2971_v57 }
 0x39a   :  { %3238 = vmatmul.mubr.bf16.vlgmr.msra.gmra.mrb[60].mxu1 %v2971_v57  ;;  %3545 = vmatprep.mubr.bf16.mxu0 %v9454_v52 }
 0x39b   :  { %3586 = vmatprep.mubr.bf16.mxu1 %v9454_v52  ;;  %3514 = vmatpush1.bf16.msra.mxu0 %v8612_v35 }
 0x39c   :  { %3555 = vmatpush1.bf16.msra.mxu1 %v8614_v45  ;;  %3515 = vmatprep.subr.bf16.mxu0 %v8620_v31 }
 0x39d   :  { %3556 = vmatprep.subr.bf16.mxu1 %v8622_v0 }
 0x39f   :  { %3516 = vmatpush1.bf16.msra.mxu0 %v8624_v4 }
 0x3a0   :  { %3557 = vmatpush1.bf16.msra.mxu1 %v8626_v37  ;;  %3517 = vmatprep.subr.bf16.mxu0 %v8632_v2 }
 0x3a1   :  { %3558 = vmatprep.subr.bf16.mxu1 %v8634_v53 }
 0x3a3   :  { %3518 = vmatpush1.bf16.msra.mxu0 %v8636_v34 }
 0x3a4   :  { %3559 = vmatpush1.bf16.msra.mxu1 %v8638_v46  ;;  %3519 = vmatprep.subr.bf16.mxu0 %v8644_v40 }
 0x3a5   :  { %3560 = vmatprep.subr.bf16.mxu1 %v8646_v60 }
 0x3a7   :  { %3520 = vmatpush1.bf16.msra.mxu0 %v8648_v36 }
 0x3a8   :  { %3561 = vmatpush1.bf16.msra.mxu1 %v8650_v10  ;;  %3521 = vmatprep.subr.bf16.mxu0 %v8656_v11 }
 0x3a9   :  { %3562 = vmatprep.subr.bf16.mxu1 %v8658_v12 }
 0x3ab   :  { %3522 = vmatpush1.bf16.msra.mxu0 %v8660_v13 }
 0x3ac   :  { %3563 = vmatpush1.bf16.msra.mxu1 %v8662_v14  ;;  %3523 = vmatprep.subr.bf16.mxu0 %v8668_v15 }
 0x3ad   :  { %3564 = vmatprep.subr.bf16.mxu1 %v8670_v50 }
 0x3af   :  { %3524 = vmatpush1.bf16.msra.mxu0 %v8672_v16 }
 0x3b0   :  { %3565 = vmatpush1.bf16.msra.mxu1 %v8674_v17  ;;  %3525 = vmatprep.subr.bf16.mxu0 %v8680_v18 }
 0x3b1   :  { %3566 = vmatprep.subr.bf16.mxu1 %v8682_v19 }
 0x3b3   :  { %3526 = vmatpush1.bf16.msra.mxu0 %v8684_v21 }
 0x3b4   :  { %3567 = vmatpush1.bf16.msra.mxu1 %v8686_v23  ;;  %3527 = vmatprep.subr.bf16.mxu0 %v8692_v24 }
 0x3b5   :  { %3568 = vmatprep.subr.bf16.mxu1 %v8694_v25 }
 0x3b7   :  { %3528 = vmatpush1.bf16.msra.mxu0 %v8696_v27 }
 0x3b8   :  { %3569 = vmatpush1.bf16.msra.mxu1 %v8698_v28  ;;  %3788 = vmatprep.subr.bf16.mxu0 %v8704_v29 }
 0x3b9   :  { %3829 = vmatprep.subr.bf16.mxu1 %v8706_v30 }
 0x44c   :  { %v2923_v32 = vpop.f32.mrb[56].mxu0 }
 0x44d   :  { %v3253_v33 = vadd.f32 %v3249_v43, %v2923_v32  ;;  %v2964_v54 = vpop.f32.mrb[56].mxu1  ;;  %v2925_v38 = vpop.f32.mrb[57].mxu0 }
 0x44e   :  { %v3255_v7 = vadd.f32 %v3251_v49, %v2964_v54  ;;  %v3254_v9 = vadd.f32 %v3250_v51, %v2925_v38  ;;  %v2966_v6 = vpop.f32.mrb[57].mxu1  ;;  %v2927_v41 = vpop.f32.mrb[58].mxu0 }
 0x44f   :  { %v6533_v59 = vmul.f32 -1.442695, %v3253_v33  ;;  %v3256_v22 = vadd.f32 %v3252_v47, %v2966_v6  ;;  %v2968_v1 = vpop.f32.mrb[58].mxu1  ;;  %v2928_v8 = vpop.f32.mrb[59].mxu0  ;;  %v9484_v47 = vld [vmem:[#allocation30_spill] sm:$0xff] }
 0x450   :  { %v6534_v20 = vmul.f32 -1.442695, %v3254_v9  ;;  %v2969_v61 = vpop.f32.mrb[59].mxu1  ;;  %v3260_v9 = vunpack.c.l.bf16 %v9484_v47 }
 0x451   :  { %7431 = vpow2.f32 %v6533_v59  ;;  %v6535_v39 = vmul.f32 -1.442695, %v3256_v22  ;;  %v9485_v59 = vld [vmem:[#allocation31_spill] sm:$0xff] }
 0x452   :  { %7433 = vpow2.f32 %v6534_v20  ;;  %v3262_v22 = vunpack.c.l.bf16 %v9485_v59  ;;  %v3263_v61 = vunpack.c.h.bf16 %v9485_v59  ;;  %v8726_v59 = vld [vmem:[#allocation8 + $0x8] ss:$16 sps:$4 sm:$0xff]  }
 0x453   :  { %7435 = vpow2.f32 %v6535_v39 }
 0x454   :  { %7437 = vtanh.f32 %v3255_v7  ;;  %v3261_v7 = vunpack.c.h.bf16 %v9484_v47 }
 0x45b   :  { %v7432_v42 = vpop.eup %7431 }
 0x45c   :  { %v7434_v57 = vpop.eup %7433  ;;  %v3271_v63 = vadd.f32 1.0, %v7432_v42 }
 0x45d   :  { %v3277_v43 = vadd.f32 1.0, %v7434_v57  ;;  %v7436_v32 = vpop.eup %7435 }
 0x45e   :  { %7439 = vrcp.f32 %v3271_v63  ;;  %v7438_v44 = vpop.eup %7437  ;;  %v3284_v54 = vadd.f32 1.0, %v7436_v32 }
 0x45f   :  { %7441 = vrcp.f32 %v3277_v43 }
 0x460   :  { %7443 = vrcp.f32 %v3284_v54 }
 0x468   :  { %v7440_v49 = vpop.eup %7439 }
 0x469   :  { %v7442_v51 = vpop.eup %7441  ;;  %v3288_v33 = vmul.f32 %v7440_v49, %v7438_v44 }
 0x46a   :  { %v3287_v38 = vmul.f32 %v7442_v51, %v8549_v56 }
 0x46c   :  { %v8716_v6 = vadd.f32 %v3288_v33, %v3287_v38  ;;  %v3198_v41 = vpop.f32.mrb[60].mxu0  ;;  %v7444_v33 = vpop.eup %7443 }
 0x46d   :  { %v3264_v1 = vadd.f32 %v3260_v9, %v3198_v41  ;;  %v3239_v8 = vpop.f32.mrb[60].mxu1  ;;  %v3200_v20 = vpop.f32.mrb[61].mxu0  ;;  %v8724_v9 = vld [vmem:[#allocation8] ss:$16 sps:$4 sm:$0xff]  }
 0x46e   :  { %v3266_v39 = vadd.f32 %v3262_v22, %v3239_v8  ;;  %v3265_v42 = vadd.f32 %v3261_v7, %v3200_v20  ;;  %v3241_v57 = vpop.f32.mrb[61].mxu1  ;;  %v3202_v63 = vpop.f32.mrb[62].mxu0  ;;  %7445 = vtanh.f32 %v8716_v6  ;;  %v8731_v22 = vld [vmem:[%s9359_s6] ss:$0 sm:$0xff]  ;;  %v8737_v8 = vld [vmem:[#allocation8 + $0x24] ss:$16 sps:$4 sm:$0xff]  }
 0x46f   :  { %v6536_v56 = vmul.f32 -1.442695, %v3264_v1  ;;  %v3267_v43 = vadd.f32 %v3263_v61, %v3241_v57  ;;  %v3243_v32 = vpop.f32.mrb[62].mxu1  ;;  %v3203_v44 = vpop.f32.mrb[63].mxu0  ;;  %v8742_v63 = vld [vmem:[#allocation8 + $0x20] ss:$16 sps:$4 sm:$0xff]  }
 0x470   :  { %v6537_v49 = vmul.f32 -1.442695, %v3265_v42  ;;  %v3244_v51 = vpop.f32.mrb[63].mxu1  ;;  %v8739_v42 = vld [vmem:[#allocation8 + $0x2c] ss:$16 sps:$4 sm:$0xff]  }
 0x471   :  { %7447 = vpow2.f32 %v6536_v56  ;;  %v6538_v38 = vmul.f32 -1.442695, %v3267_v43  ;;  %v8746_v56 = vld [vmem:[#allocation8 + $0x28] ss:$16 sps:$4 sm:$0xff]   ;;  %v8748_v43 = vld [vmem:[#allocation8 + $0x44] ss:$16 sps:$4 sm:$0xff]  }
 0x472   :  { %7449 = vpow2.f32 %v6537_v49  ;;  %v8756_v32 = vld [vmem:[#allocation8 + $0x40] ss:$16 sps:$4 sm:$0xff]   ;;  %v8760_v44 = vld [vmem:[#allocation8 + $0x48] ss:$16 sps:$4 sm:$0xff]   ;;  %v8762_v49 = vld [vmem:[#allocation8 + $0x64] ss:$16 sps:$4 sm:$0xff]  }
 0x473   :  { %7451 = vpow2.f32 %v6538_v38  ;;  %9487 = vst [vmem:[#allocation38_spill] sm:$0xff] %v8762_v49  ;;  %v8765_v51 = vld [vmem:[#allocation8 + $0x6c] ss:$16 sps:$4 sm:$0xff]  }
 0x474   :  { %7453 = vtanh.f32 %v3266_v39  ;;  %v8751_v39 = vld [vmem:[#allocation8 + $0x4c] ss:$16 sps:$4 sm:$0xff]   ;;  %9488 = vst [vmem:[#allocation39_spill] sm:$0xff] %v8765_v51 }
 0x478   :  { %v7446_v54 = vpop.eup %7445 }
 0x479   :  { %v8722_v47 = vmul.f32 %v7446_v54, %v7444_v33  ;;  %v8768_v54 = vld [vmem:[#allocation8 + $0x60] ss:$16 sps:$4 sm:$0xff]  }
 0x47b   :  { %9486 = vst [vmem:[#allocation37_spill] sm:$0xff] %v8722_v47  ;;  %v7448_v41 = vpop.eup %7447  ;;  %v5840_v7 = vmul.f32 %v8731_v22, %v8722_v47  ;;  %v3320_v1 = vpack.c.bf16 %v8722_v47, %v8722_v47 }
 0x47c   :  { %v7450_v20 = vpop.eup %7449  ;;  %v3295_v61 = vadd.f32 1.0, %v7448_v41  ;;  %v8772_v41 = vld [vmem:[#allocation8 + $0x68] ss:$16 sps:$4 sm:$0xff]  }
 0x47d   :  { %v3301_v57 = vadd.f32 1.0, %v7450_v20  ;;  %5851 = vadd.xlane.f32.xlu1 %v5840_v7  ;;  %3546 = vmatmul.mubr.bf16.vlgmr.msra.gmra.mrb[64].mxu0 %v3320_v1  ;;  %v7452_v33 = vpop.eup %7451  ;;  %v8774_v7 = vld [vmem:[#allocation8 + $0x84] ss:$16 sps:$4 sm:$0xff]   ;;  %v8777_v20 = vld [vmem:[#allocation8 + $0x8c] ss:$16 sps:$4 sm:$0xff]  }
 0x47e   :  { %7455 = vrcp.f32 %v3295_v61  ;;  %3587 = vmatmul.mubr.bf16.vlgmr.msra.gmra.mrb[64].mxu1 %v3320_v1  ;;  %3789 = vmatpush1.bf16.msra.mxu0 %v8724_v9  ;;  %v7454_v38 = vpop.eup %7453  ;;  %v3308_v62 = vadd.f32 1.0, %v7452_v33  ;;  %v8800_v33 = vld [vmem:[#allocation8 + $0xa8] ss:$16 sps:$4 sm:$0xff]  }
 0x47f   :  { %7457 = vrcp.f32 %v3301_v57  ;;  %3830 = vmatpush1.bf16.msra.mxu1 %v8726_v59  ;;  %3790 = vmatprep.subr.bf16.mxu0 %v8737_v8  ;;  %9493 = vst [vmem:[#allocation44_spill] sm:$0xff] %v8800_v33 }
 0x480   :  { %3831 = vmatprep.subr.bf16.mxu1 %v8739_v42  ;;  %3820 = vmatprep.mubr.bf16.mxu0 %v9454_v52  ;;  %7459 = vrcp.f32 %v3308_v62  ;;  %v8808_v62 = vld [vmem:[#allocation8 + $0xc0] ss:$16 sps:$4 sm:$0xff]  }
 0x481   :  { %3861 = vmatprep.mubr.bf16.mxu1 %v9454_v52  ;;  %9496 = vst [vmem:[#allocation12_spill] sm:$0xff] %v8808_v62 }
 0x482   :  { %3791 = vmatpush1.bf16.msra.mxu0 %v8742_v63 }
 0x483   :  { %3832 = vmatpush1.bf16.msra.mxu1 %v8746_v56  ;;  %3792 = vmatprep.subr.bf16.mxu0 %v8748_v43 }
 0x484   :  { %3833 = vmatprep.subr.bf16.mxu1 %v8751_v39 }
 0x486   :  { %3793 = vmatpush1.bf16.msra.mxu0 %v8756_v32 }
 0x487   :  { %3834 = vmatpush1.bf16.msra.mxu1 %v8760_v44  ;;  %3794 = vmatprep.subr.bf16.mxu0 %v8762_v49  ;;  %v8787_v49 = vld [vmem:[#allocation8 + $0xa4] ss:$16 sps:$4 sm:$0xff]  }
 0x488   :  { %v7456_v1 = vpop.eup %7455  ;;  %3835 = vmatprep.subr.bf16.mxu1 %v8765_v51  ;;  %9490 = vst [vmem:[#allocation41_spill] sm:$0xff] %v8787_v49 }
 0x489   :  { %v7458_v61 = vpop.eup %7457  ;;  %v3312_v57 = vmul.f32 %v7456_v1, %v7454_v38  ;;  %v8792_v38 = vld [vmem:[#allocation8 + $0xac] ss:$16 sps:$4 sm:$0xff]   ;;  %v8802_v1 = vld [vmem:[#allocation8 + $0xc4] ss:$16 sps:$4 sm:$0xff]  }
 0x48a   :  { %v3311_v47 = vmul.f32 %v7458_v61, %v8577_v58  ;;  %3795 = vmatpush1.bf16.msra.mxu0 %v8768_v54  ;;  %9491 = vst [vmem:[#allocation42_spill] sm:$0xff] %v8792_v38  ;;  %v8795_v58 = vld [vmem:[#allocation8 + $0xa0] ss:$16 sps:$4 sm:$0xff]   ;;  %9494 = vst [vmem:[#allocation45_spill] sm:$0xff] %v8802_v1  ;;  %v8812_v61 = vld [vmem:[#allocation8 + $0xc8] ss:$16 sps:$4 sm:$0xff]  }
 0x48b   :  { %3836 = vmatpush1.bf16.msra.mxu1 %v8772_v41  ;;  %3796 = vmatprep.subr.bf16.mxu0 %v8774_v7  ;;  %9492 = vst [vmem:[#allocation43_spill] sm:$0xff] %v8795_v58 }
 0x48c   :  { %v8789_v51 = vadd.f32 %v3312_v57, %v3311_v47  ;;  %3837 = vmatprep.subr.bf16.mxu1 %v8777_v20  ;;  %v8805_v47 = vld [vmem:[#allocation8 + $0xcc] ss:$16 sps:$4 sm:$0xff]   ;;  %v8814_v57 = vld [vmem:[#allocation8 + $0xe4] ss:$16 sps:$4 sm:$0xff]  }
 0x48d   :  { %9495 = vst [vmem:[#allocation46_spill] sm:$0xff] %v8805_v47 }
 0x48e   :  { %3797 = vmatpush1.bf16.msra.mxu0 %v8781_v26  ;;  %7461 = vtanh.f32 %v8789_v51 }
 0x48f   :  { %3838 = vmatpush1.bf16.msra.mxu1 %v8785_v5  ;;  %3798 = vmatprep.subr.bf16.mxu0 %v8787_v49  ;;  %v8817_v49 = vld [vmem:[#allocation8 + $0xec] ss:$16 sps:$4 sm:$0xff]   ;;  %v7460_v5 = vpop.eup %7459 }
 0x490   :  { %3839 = vmatprep.subr.bf16.mxu1 %v8792_v38  ;;  %v8820_v38 = vld [vmem:[#allocation8 + $0xe0] ss:$16 sps:$4 sm:$0xff]  }
 0x492   :  { %3799 = vmatpush1.bf16.msra.mxu0 %v8795_v58 }
 0x493   :  { %3840 = vmatpush1.bf16.msra.mxu1 %v8800_v33  ;;  %3800 = vmatprep.subr.bf16.mxu0 %v8802_v1  ;;  %v8824_v33 = vld [vmem:[#allocation8 + $0xe8] ss:$16 sps:$4 sm:$0xff]  }
 0x494   :  { %3841 = vmatprep.subr.bf16.mxu1 %v8805_v47 }
 0x496   :  { %3801 = vmatpush1.bf16.msra.mxu0 %v8808_v62 }
 0x497   :  { %3842 = vmatpush1.bf16.msra.mxu1 %v8812_v61  ;;  %3802 = vmatprep.subr.bf16.mxu0 %v8814_v57 }
 0x498   :  { %v7462_v1 = vpop.eup %7461  ;;  %3843 = vmatprep.subr.bf16.mxu1 %v8817_v49 }
 0x499   :  { %v8827_v58 = vmul.f32 %v7462_v1, %v7460_v5  ;;  %v9498_v5 = vld [vmem:[#allocation14_spill] sm:$0xff] }
 0x49a   :  { %3803 = vmatpush1.bf16.msra.mxu0 %v8820_v38 }
 0x49b   :  { %9497 = vst [vmem:[#allocation13_spill] sm:$0xff] %v8827_v58  ;;  %3844 = vmatpush1.bf16.msra.mxu1 %v8824_v33  ;;  %v5872_v62 = vmul.f32 %v8599_v3, %v8827_v58  ;;  %v3595_v47 = vpack.c.bf16 %v8827_v58, %v8827_v58  ;;  %4137 = vmatprep.subr.bf16.mxu0 %v8608_v48  ;;  %v3873_v48 = vunpack.c.l.bf16 %v9498_v5  ;;  %v9107_v58 = vld [vmem:[#allocation8 + $0xa4] ss:$16 sps:$4 sm:$0xff]  }
 0x49c   :  { %4178 = vmatprep.subr.bf16.mxu1 %v8610_v55 }
 0x49d   :  { %5884 = vadd.xlane.f32.xlu0 %v5872_v62  ;;  %3821 = vmatmul.mubr.bf16.vlgmr.msra.gmra.mrb[68].mxu0 %v3595_v47 }
 0x49e   :  { %3862 = vmatmul.mubr.bf16.vlgmr.msra.gmra.mrb[68].mxu1 %v3595_v47  ;;  %4138 = vmatpush1.bf16.msra.mxu0 %v8612_v35  ;;  %v9499_v35 = vld [vmem:[#allocation15_spill] sm:$0xff]  ;;  %v9501_v47 = vld [vmem:[#allocation29_spill] sm:$0xff] }
 0x49f   :  { %4179 = vmatpush1.bf16.msra.mxu1 %v8614_v45  ;;  %4139 = vmatprep.subr.bf16.mxu0 %v8620_v31  ;;  %v3875_v45 = vunpack.c.l.bf16 %v9499_v35  ;;  %v3874_v31 = vunpack.c.h.bf16 %v9498_v5  ;;  %v3886_v62 = vunpack.c.l.bf16 %v9501_v47 }
 0x4a0   :  { %4180 = vmatprep.subr.bf16.mxu1 %v8622_v0  ;;  %4169 = vmatprep.mubr.bf16.mxu0 %v9454_v52 }
 0x4a1   :  { %4210 = vmatprep.mubr.bf16.mxu1 %v9454_v52 }
 0x4a2   :  { %4140 = vmatpush1.bf16.msra.mxu0 %v8624_v4 }
 0x4a3   :  { %4181 = vmatpush1.bf16.msra.mxu1 %v8626_v37  ;;  %4141 = vmatprep.subr.bf16.mxu0 %v8632_v2  ;;  %v3876_v2 = vunpack.c.h.bf16 %v9499_v35 }
 0x4a4   :  { %4182 = vmatprep.subr.bf16.mxu1 %v8634_v53 }
 0x4a6   :  { %4142 = vmatpush1.bf16.msra.mxu0 %v8636_v34 }
 0x4a7   :  { %4183 = vmatpush1.bf16.msra.mxu1 %v8638_v46  ;;  %4143 = vmatprep.subr.bf16.mxu0 %v8644_v40 }
 0x4a8   :  { %4184 = vmatprep.subr.bf16.mxu1 %v8646_v60 }
 0x4aa   :  { %4144 = vmatpush1.bf16.msra.mxu0 %v8648_v36 }
 0x4ab   :  { %4185 = vmatpush1.bf16.msra.mxu1 %v8650_v10  ;;  %4145 = vmatprep.subr.bf16.mxu0 %v8656_v11 }
 0x4ac   :  { %4186 = vmatprep.subr.bf16.mxu1 %v8658_v12 }
 0x4ae   :  { %4146 = vmatpush1.bf16.msra.mxu0 %v8660_v13 }
 0x4af   :  { %4187 = vmatpush1.bf16.msra.mxu1 %v8662_v14  ;;  %4147 = vmatprep.subr.bf16.mxu0 %v8668_v15 }
 0x4b0   :  { %4188 = vmatprep.subr.bf16.mxu1 %v8670_v50 }
 0x4b2   :  { %4148 = vmatpush1.bf16.msra.mxu0 %v8672_v16 }
 0x4b3   :  { %4189 = vmatpush1.bf16.msra.mxu1 %v8674_v17  ;;  %4149 = vmatprep.subr.bf16.mxu0 %v8680_v18 }
 0x4b4   :  { %4190 = vmatprep.subr.bf16.mxu1 %v8682_v19 }
 0x4b6   :  { %4150 = vmatpush1.bf16.msra.mxu0 %v8684_v21 }
 0x4b7   :  { %4191 = vmatpush1.bf16.msra.mxu1 %v8686_v23  ;;  %4151 = vmatprep.subr.bf16.mxu0 %v8692_v24 }
 0x4b8   :  { %4192 = vmatprep.subr.bf16.mxu1 %v8694_v25 }
 0x4ba   :  { %4152 = vmatpush1.bf16.msra.mxu0 %v8696_v27 }
 0x4bb   :  { %4193 = vmatpush1.bf16.msra.mxu1 %v8698_v28  ;;  %4412 = vmatprep.subr.bf16.mxu0 %v8704_v29  ;;  %v9500_v28 = vld [vmem:[#allocation28_spill] sm:$0xff] }
 0x4bc   :  { %4453 = vmatprep.subr.bf16.mxu1 %v8706_v30  ;;  %v3884_v29 = vunpack.c.l.bf16 %v9500_v28  ;;  %v3885_v5 = vunpack.c.h.bf16 %v9500_v28  ;;  %v8951_v28 = vld [vmem:[#allocation6 + $0x28] ss:$16 sps:$4 sm:$0xff]   ;;  %9520 = vst [vmem:[#allocation28_spill] sm:$0xff] %v9107_v58 }
 0x550   :  { %v3547_v55 = vpop.f32.mrb[64].mxu0 }
 0x551   :  { %v3877_v0 = vadd.f32 %v3873_v48, %v3547_v55  ;;  %v3588_v4 = vpop.f32.mrb[64].mxu1  ;;  %v3549_v37 = vpop.f32.mrb[65].mxu0 }
 0x552   :  { %v3879_v53 = vadd.f32 %v3875_v45, %v3588_v4  ;;  %v3878_v34 = vadd.f32 %v3874_v31, %v3549_v37  ;;  %v3590_v46 = vpop.f32.mrb[65].mxu1  ;;  %v3551_v40 = vpop.f32.mrb[66].mxu0  ;;  %v3887_v45 = vunpack.c.h.bf16 %v9501_v47  ;;  %v8961_v47 = vld [vmem:[#allocation6 + $0x40] ss:$16 sps:$4 sm:$0xff]  }
 0x553   :  { %v6603_v60 = vmul.f32 -1.442695, %v3877_v0  ;;  %v3880_v36 = vadd.f32 %v3876_v2, %v3590_v46  ;;  %v3592_v10 = vpop.f32.mrb[66].mxu1  ;;  %v3552_v11 = vpop.f32.mrb[67].mxu0 }
 0x554   :  { %v6604_v12 = vmul.f32 -1.442695, %v3878_v34  ;;  %v3593_v13 = vpop.f32.mrb[67].mxu1 }
 0x555   :  { %7463 = vpow2.f32 %v6603_v60  ;;  %v6605_v14 = vmul.f32 -1.442695, %v3880_v36 }
 0x556   :  { %7465 = vpow2.f32 %v6604_v12 }
 0x557   :  { %7467 = vpow2.f32 %v6605_v14 }
 0x558   :  { %7469 = vtanh.f32 %v3879_v53 }
 0x55f   :  { %v7464_v15 = vpop.eup %7463 }
 0x560   :  { %v7466_v50 = vpop.eup %7465  ;;  %v3895_v16 = vadd.f32 1.0, %v7464_v15 }
 0x561   :  { %v3901_v17 = vadd.f32 1.0, %v7466_v50  ;;  %v7468_v18 = vpop.eup %7467 }
 0x562   :  { %7471 = vrcp.f32 %v3895_v16  ;;  %v7470_v19 = vpop.eup %7469  ;;  %v3908_v25 = vadd.f32 1.0, %v7468_v18 }
 0x563   :  { %7473 = vrcp.f32 %v3901_v17  ;;  %v9504_v17 = vld [vmem:[#allocation39_spill] sm:$0xff] }
 0x564   :  { %7475 = vrcp.f32 %v3908_v25 }
 0x56c   :  { %v7472_v21 = vpop.eup %7471 }
 0x56d   :  { %v7474_v23 = vpop.eup %7473  ;;  %v3912_v24 = vmul.f32 %v7472_v21, %v7470_v19 }
 0x56e   :  { %v3911_v27 = vmul.f32 %v7474_v23, %v8716_v6  ;;  %v7476_v60 = vpop.eup %7475 }
 0x570   :  { %v8877_v30 = vadd.f32 %v3912_v24, %v3911_v27  ;;  %v3822_v1 = vpop.f32.mrb[68].mxu0  ;;  %v8949_v27 = vld [vmem:[#allocation6 + $0x20] ss:$16 sps:$4 sm:$0xff]  }
 0x571   :  { %v3888_v48 = vadd.f32 %v3884_v29, %v3822_v1  ;;  %v3863_v55 = vpop.f32.mrb[68].mxu1  ;;  %v3824_v35 = vpop.f32.mrb[69].mxu0  ;;  %v8957_v29 = vld [vmem:[#allocation6 + $0x44] ss:$16 sps:$4 sm:$0xff]   ;;  %v8959_v1 = vld [vmem:[#allocation6 + $0x4c] ss:$16 sps:$4 sm:$0xff]  }
 0x572   :  { %v3890_v31 = vadd.f32 %v3886_v62, %v3863_v55  ;;  %v3889_v0 = vadd.f32 %v3885_v5, %v3824_v35  ;;  %v3865_v4 = vpop.f32.mrb[69].mxu1  ;;  %v3826_v37 = vpop.f32.mrb[70].mxu0  ;;  %7477 = vtanh.f32 %v8877_v30  ;;  %v8963_v62 = vld [vmem:[#allocation6 + $0x48] ss:$16 sps:$4 sm:$0xff]   ;;  %v8969_v5 = vld [vmem:[#allocation6 + $0x64] ss:$16 sps:$4 sm:$0xff]  }
 0x573   :  { %v6606_v6 = vmul.f32 -1.442695, %v3888_v48  ;;  %v3891_v2 = vadd.f32 %v3887_v45, %v3865_v4  ;;  %v3867_v53 = vpop.f32.mrb[70].mxu1  ;;  %v3827_v34 = vpop.f32.mrb[71].mxu0  ;;  %v8971_v48 = vld [vmem:[#allocation6 + $0x6c] ss:$16 sps:$4 sm:$0xff]  }
 0x574   :  { %v6607_v46 = vmul.f32 -1.442695, %v3889_v0  ;;  %v3868_v40 = vpop.f32.mrb[71].mxu1  ;;  %v8973_v55 = vld [vmem:[#allocation6 + $0x60] ss:$16 sps:$4 sm:$0xff]  }
 0x575   :  { %7479 = vpow2.f32 %v6606_v6  ;;  %v6608_v10 = vmul.f32 -1.442695, %v3891_v2  ;;  %v8975_v35 = vld [vmem:[#allocation6 + $0x68] ss:$16 sps:$4 sm:$0xff]   ;;  %v8981_v45 = vld [vmem:[#allocation6 + $0x84] ss:$16 sps:$4 sm:$0xff]  }
 0x576   :  { %7481 = vpow2.f32 %v6607_v46  ;;  %v8985_v0 = vld [vmem:[#allocation6 + $0x80] ss:$16 sps:$4 sm:$0xff]   ;;  %v8987_v4 = vld [vmem:[#allocation6 + $0x88] ss:$16 sps:$4 sm:$0xff]   ;;  %v8993_v37 = vld [vmem:[#allocation6 + $0xa4] ss:$16 sps:$4 sm:$0xff]  }
 0x577   :  { %7483 = vpow2.f32 %v6608_v10  ;;  %v8995_v6 = vld [vmem:[#allocation6 + $0xac] ss:$16 sps:$4 sm:$0xff]   ;;  %v8997_v2 = vld [vmem:[#allocation6 + $0xa0] ss:$16 sps:$4 sm:$0xff]   ;;  %v8999_v53 = vld [vmem:[#allocation6 + $0xa8] ss:$16 sps:$4 sm:$0xff]  }
 0x578   :  { %7485 = vtanh.f32 %v3890_v31  ;;  %v8983_v31 = vld [vmem:[#allocation6 + $0x8c] ss:$16 sps:$4 sm:$0xff]   ;;  %v9005_v34 = vld [vmem:[#allocation6 + $0xc4] ss:$16 sps:$4 sm:$0xff]   ;;  %v9009_v40 = vld [vmem:[#allocation6 + $0xc0] ss:$16 sps:$4 sm:$0xff]  }
 0x579   :  { %v9007_v46 = vld [vmem:[#allocation6 + $0xcc] ss:$16 sps:$4 sm:$0xff]  }
 0x57a   :  { %v9019_v10 = vld [vmem:[#allocation6 + $0xec] ss:$16 sps:$4 sm:$0xff]  }
 0x57c   :  { %v7478_v36 = vpop.eup %7477 }
 0x57d   :  { %v8883_v11 = vmul.f32 %v7478_v36, %v7476_v60  ;;  %v9011_v60 = vld [vmem:[#allocation6 + $0xc8] ss:$16 sps:$4 sm:$0xff]   ;;  %v9017_v36 = vld [vmem:[#allocation6 + $0xe4] ss:$16 sps:$4 sm:$0xff]  }
 0x57f   :  { %9502 = vst [vmem:[#allocation30_spill] sm:$0xff] %v8883_v11  ;;  %v7480_v12 = vpop.eup %7479  ;;  %v5841_v13 = vmul.f32 %v8731_v22, %v8883_v11  ;;  %v3944_v14 = vpack.c.bf16 %v8883_v11, %v8883_v11  ;;  %v9105_v11 = vld [vmem:[#allocation8 + $0x88] ss:$16 sps:$4 sm:$0xff]  }
 0x580   :  { %v7482_v15 = vpop.eup %7481  ;;  %v3919_v50 = vadd.f32 1.0, %v7480_v12  ;;  %v9021_v12 = vld [vmem:[#allocation6 + $0xe0] ss:$16 sps:$4 sm:$0xff]   ;;  %9519 = vst [vmem:[#allocation15_spill] sm:$0xff] %v9105_v11 }
 0x581   :  { %v3925_v16 = vadd.f32 1.0, %v7482_v15  ;;  %5853 = vadd.xlane.f32.xlu0 %v5841_v13  ;;  %4170 = vmatmul.mubr.bf16.vlgmr.msra.gmra.mrb[72].mxu0 %v3944_v14  ;;  %v9023_v13 = vld [vmem:[#allocation6 + $0xe8] ss:$16 sps:$4 sm:$0xff]   ;;  %v9031_v15 = vld [vmem:[#allocation8 + $0xc] ss:$16 sps:$4 sm:$0xff]  }
 0x582   :  { %7487 = vrcp.f32 %v3919_v50  ;;  %4211 = vmatmul.mubr.bf16.vlgmr.msra.gmra.mrb[72].mxu1 %v3944_v14  ;;  %4413 = vmatpush1.bf16.msra.mxu0 %v8724_v9  ;;  %v7484_v9 = vpop.eup %7483  ;;  %v9029_v14 = vld [vmem:[#allocation8 + $0x4] ss:$16 sps:$4 sm:$0xff]  }
 0x583   :  { %7489 = vrcp.f32 %v3925_v16  ;;  %4454 = vmatpush1.bf16.msra.mxu1 %v8726_v59  ;;  %4414 = vmatprep.subr.bf16.mxu0 %v8737_v8  ;;  %v7486_v59 = vpop.eup %7485  ;;  %v9503_v8 = vld [vmem:[#allocation38_spill] sm:$0xff]  ;;  %v9514_v50 = vld [vmem:[#allocation16_spill] sm:$0xff] }
 0x584   :  { %4455 = vmatprep.subr.bf16.mxu1 %v8739_v42  ;;  %4444 = vmatprep.mubr.bf16.mxu0 %v9454_v52  ;;  %v4497_v16 = vunpack.c.l.bf16 %v9514_v50 }
 0x585   :  { %4485 = vmatprep.mubr.bf16.mxu1 %v9454_v52 }
 0x586   :  { %4415 = vmatpush1.bf16.msra.mxu0 %v8742_v63  ;;  %v3932_v63 = vadd.f32 1.0, %v7484_v9 }
 0x587   :  { %4456 = vmatpush1.bf16.msra.mxu1 %v8746_v56  ;;  %4416 = vmatprep.subr.bf16.mxu0 %v8748_v43 }
 0x588   :  { %4457 = vmatprep.subr.bf16.mxu1 %v8751_v39  ;;  %7491 = vrcp.f32 %v3932_v63  ;;  %v9505_v39 = vld [vmem:[#allocation40_spill] sm:$0xff] }
 0x58a   :  { %4417 = vmatpush1.bf16.msra.mxu0 %v8756_v32  ;;  %v9506_v32 = vld [vmem:[#allocation41_spill] sm:$0xff] }
 0x58b   :  { %4458 = vmatpush1.bf16.msra.mxu1 %v8760_v44  ;;  %4418 = vmatprep.subr.bf16.mxu0 %v9503_v8  ;;  %v9507_v44 = vld [vmem:[#allocation42_spill] sm:$0xff] }
 0x58c   :  { %v7488_v42 = vpop.eup %7487  ;;  %4459 = vmatprep.subr.bf16.mxu1 %v9504_v17 }
 0x58d   :  { %v7490_v18 = vpop.eup %7489  ;;  %v3936_v19 = vmul.f32 %v7488_v42, %v7486_v59  ;;  %v9515_v59 = vld [vmem:[#allocation17_spill] sm:$0xff]  ;;  %v4498_v42 = vunpack.c.h.bf16 %v9514_v50 }
 0x58e   :  { %v3935_v56 = vmul.f32 %v7490_v18, %v8789_v51  ;;  %4419 = vmatpush1.bf16.msra.mxu0 %v8768_v54  ;;  %v9508_v51 = vld [vmem:[#allocation43_spill] sm:$0xff]  ;;  %v9509_v54 = vld [vmem:[#allocation44_spill] sm:$0xff]  ;;  %v4499_v8 = vunpack.c.l.bf16 %v9515_v59  ;;  %v4500_v63 = vunpack.c.h.bf16 %v9515_v59 }
 0x58f   :  { %4460 = vmatpush1.bf16.msra.mxu1 %v8772_v41  ;;  %4420 = vmatprep.subr.bf16.mxu0 %v8774_v7  ;;  %v9510_v41 = vld [vmem:[#allocation45_spill] sm:$0xff]  ;;  %v9511_v7 = vld [vmem:[#allocation46_spill] sm:$0xff] }
 0x590   :  { %v8907_v43 = vadd.f32 %v3936_v19, %v3935_v56  ;;  %4461 = vmatprep.subr.bf16.mxu1 %v8777_v20  ;;  %v9512_v20 = vld [vmem:[#allocation12_spill] sm:$0xff] }
 0x592   :  { %4421 = vmatpush1.bf16.msra.mxu0 %v8781_v26  ;;  %7493 = vtanh.f32 %v8907_v43  ;;  %v7492_v21 = vpop.eup %7491 }
 0x593   :  { %4462 = vmatpush1.bf16.msra.mxu1 %v9505_v39  ;;  %4422 = vmatprep.subr.bf16.mxu0 %v9506_v32 }
 0x594   :  { %4463 = vmatprep.subr.bf16.mxu1 %v9507_v44 }
 0x596   :  { %4423 = vmatpush1.bf16.msra.mxu0 %v9508_v51 }
 0x597   :  { %4464 = vmatpush1.bf16.msra.mxu1 %v9509_v54  ;;  %4424 = vmatprep.subr.bf16.mxu0 %v9510_v41 }
 0x598   :  { %4465 = vmatprep.subr.bf16.mxu1 %v9511_v7 }
 0x59a   :  { %4425 = vmatpush1.bf16.msra.mxu0 %v9512_v20 }
 0x59b   :  { %4466 = vmatpush1.bf16.msra.mxu1 %v8812_v61  ;;  %4426 = vmatprep.subr.bf16.mxu0 %v8814_v57  ;;  %v8935_v61 = vld [vmem:[#allocation6 + $0xc] ss:$16 sps:$4 sm:$0xff]  }
 0x59c   :  { %v7494_v26 = vpop.eup %7493  ;;  %4467 = vmatprep.subr.bf16.mxu1 %v8817_v49  ;;  %v8933_v49 = vld [vmem:[#allocation6 + $0x4] ss:$16 sps:$4 sm:$0xff]   ;;  %v8947_v57 = vld [vmem:[#allocation6 + $0x2c] ss:$16 sps:$4 sm:$0xff]  }
 0x59d   :  { %v8923_v23 = vmul.f32 %v7494_v26, %v7492_v21 }
 0x59e   :  { %4427 = vmatpush1.bf16.msra.mxu0 %v8820_v38  ;;  %v8937_v38 = vld [vmem:[#allocation6] ss:$16 sps:$4 sm:$0xff]  }
 0x59f   :  { %9513 = vst [vmem:[#allocation31_spill] sm:$0xff] %v8923_v23  ;;  %4468 = vmatpush1.bf16.msra.mxu1 %v8824_v33  ;;  %v5871_v24 = vmul.f32 %v8599_v3, %v8923_v23  ;;  %v4219_v25 = vpack.c.bf16 %v8923_v23, %v8923_v23  ;;  %v8939_v33 = vld [vmem:[#allocation6 + $0x8] ss:$16 sps:$4 sm:$0xff]   ;;  %4761 = vmatprep.subr.bf16.mxu0 %v8933_v49  ;;  %v8945_v3 = vld [vmem:[#allocation6 + $0x24] ss:$16 sps:$4 sm:$0xff]  }
 0x5a0   :  { %4802 = vmatprep.subr.bf16.mxu1 %v8935_v61 }
 0x5a1   :  { %5882 = vadd.xlane.f32.xlu1 %v5871_v24  ;;  %4445 = vmatmul.mubr.bf16.vlgmr.msra.gmra.mrb[76].mxu0 %v4219_v25 }
 0x5a2   :  { %4486 = vmatmul.mubr.bf16.vlgmr.msra.gmra.mrb[76].mxu1 %v4219_v25  ;;  %4793 = vmatprep.mubr.bf16.mxu0 %v9454_v52 }
 0x5a3   :  { %4834 = vmatprep.mubr.bf16.mxu1 %v9454_v52  ;;  %4762 = vmatpush1.bf16.msra.mxu0 %v8937_v38 }
 0x5a4   :  { %4803 = vmatpush1.bf16.msra.mxu1 %v8939_v33  ;;  %4763 = vmatprep.subr.bf16.mxu0 %v8945_v3 }
 0x5a5   :  { %4804 = vmatprep.subr.bf16.mxu1 %v8947_v57 }
 0x5a7   :  { %4764 = vmatpush1.bf16.msra.mxu0 %v8949_v27 }
 0x5a8   :  { %4805 = vmatpush1.bf16.msra.mxu1 %v8951_v28  ;;  %4765 = vmatprep.subr.bf16.mxu0 %v8957_v29 }
 0x5a9   :  { %4806 = vmatprep.subr.bf16.mxu1 %v8959_v1 }
 0x5ab   :  { %4766 = vmatpush1.bf16.msra.mxu0 %v8961_v47 }
 0x5ac   :  { %4807 = vmatpush1.bf16.msra.mxu1 %v8963_v62  ;;  %4767 = vmatprep.subr.bf16.mxu0 %v8969_v5 }
 0x5ad   :  { %4808 = vmatprep.subr.bf16.mxu1 %v8971_v48 }
 0x5af   :  { %4768 = vmatpush1.bf16.msra.mxu0 %v8973_v55 }
 0x5b0   :  { %4809 = vmatpush1.bf16.msra.mxu1 %v8975_v35  ;;  %4769 = vmatprep.subr.bf16.mxu0 %v8981_v45 }
 0x5b1   :  { %4810 = vmatprep.subr.bf16.mxu1 %v8983_v31 }
 0x5b3   :  { %4770 = vmatpush1.bf16.msra.mxu0 %v8985_v0 }
 0x5b4   :  { %4811 = vmatpush1.bf16.msra.mxu1 %v8987_v4  ;;  %4771 = vmatprep.subr.bf16.mxu0 %v8993_v37 }
 0x5b5   :  { %4812 = vmatprep.subr.bf16.mxu1 %v8995_v6 }
 0x5b7   :  { %4772 = vmatpush1.bf16.msra.mxu0 %v8997_v2 }
 0x5b8   :  { %4813 = vmatpush1.bf16.msra.mxu1 %v8999_v53  ;;  %4773 = vmatprep.subr.bf16.mxu0 %v9005_v34 }
 0x5b9   :  { %4814 = vmatprep.subr.bf16.mxu1 %v9007_v46 }
 0x5bb   :  { %4774 = vmatpush1.bf16.msra.mxu0 %v9009_v40 }
 0x5bc   :  { %4815 = vmatpush1.bf16.msra.mxu1 %v9011_v60  ;;  %4775 = vmatprep.subr.bf16.mxu0 %v9017_v36 }
 0x5bd   :  { %4816 = vmatprep.subr.bf16.mxu1 %v9019_v10 }
 0x5bf   :  { %4776 = vmatpush1.bf16.msra.mxu0 %v9021_v12 }
 0x5c0   :  { %4817 = vmatpush1.bf16.msra.mxu1 %v9023_v13  ;;  %5036 = vmatprep.subr.bf16.mxu0 %v9029_v14 }
 0x5c1   :  { %5077 = vmatprep.subr.bf16.mxu1 %v9031_v15 }
 0x654   :  { %v4171_v9 = vpop.f32.mrb[72].mxu0 }
 0x655   :  { %v4501_v17 = vadd.f32 %v4497_v16, %v4171_v9  ;;  %v4212_v18 = vpop.f32.mrb[72].mxu1  ;;  %v4173_v19 = vpop.f32.mrb[73].mxu0 }
 0x656   :  { %v4503_v56 = vadd.f32 %v4499_v8, %v4212_v18  ;;  %v4502_v39 = vadd.f32 %v4498_v42, %v4173_v19  ;;  %v4214_v32 = vpop.f32.mrb[73].mxu1  ;;  %v4175_v44 = vpop.f32.mrb[74].mxu0 }
 0x657   :  { %v6673_v51 = vmul.f32 -1.442695, %v4501_v17  ;;  %v4504_v54 = vadd.f32 %v4500_v63, %v4214_v32  ;;  %v4216_v41 = vpop.f32.mrb[74].mxu1  ;;  %v4176_v7 = vpop.f32.mrb[75].mxu0  ;;  %v9516_v63 = vld [vmem:[#allocation26_spill] sm:$0xff] }
 0x658   :  { %v6674_v20 = vmul.f32 -1.442695, %v4502_v39  ;;  %v4217_v21 = vpop.f32.mrb[75].mxu1  ;;  %v4508_v39 = vunpack.c.l.bf16 %v9516_v63 }
 0x659   :  { %7495 = vpow2.f32 %v6673_v51  ;;  %v6675_v26 = vmul.f32 -1.442695, %v4504_v54  ;;  %v9517_v51 = vld [vmem:[#allocation27_spill] sm:$0xff] }
 0x65a   :  { %7497 = vpow2.f32 %v6674_v20  ;;  %v4510_v54 = vunpack.c.l.bf16 %v9517_v51  ;;  %v4511_v21 = vunpack.c.h.bf16 %v9517_v51  ;;  %v9051_v51 = vld [vmem:[#allocation8 + $0x8] ss:$16 sps:$4 sm:$0xff]  }
 0x65b   :  { %7499 = vpow2.f32 %v6675_v26 }
 0x65c   :  { %7501 = vtanh.f32 %v4503_v56  ;;  %v4509_v56 = vunpack.c.h.bf16 %v9516_v63 }
 0x663   :  { %v7496_v24 = vpop.eup %7495 }
 0x664   :  { %v7498_v25 = vpop.eup %7497  ;;  %v4519_v50 = vadd.f32 1.0, %v7496_v24 }
 0x665   :  { %v4525_v16 = vadd.f32 1.0, %v7498_v25  ;;  %v7500_v9 = vpop.eup %7499 }
 0x666   :  { %7503 = vrcp.f32 %v4519_v50  ;;  %v7502_v59 = vpop.eup %7501  ;;  %v4532_v18 = vadd.f32 1.0, %v7500_v9 }
 0x667   :  { %7505 = vrcp.f32 %v4525_v16 }
 0x668   :  { %7507 = vrcp.f32 %v4532_v18 }
 0x670   :  { %v7504_v8 = vpop.eup %7503 }
 0x671   :  { %v7506_v42 = vpop.eup %7505  ;;  %v4536_v17 = vmul.f32 %v7504_v8, %v7502_v59 }
 0x672   :  { %v4535_v19 = vmul.f32 %v7506_v42, %v8877_v30 }
 0x674   :  { %v9041_v32 = vadd.f32 %v4536_v17, %v4535_v19  ;;  %v4446_v44 = vpop.f32.mrb[76].mxu0  ;;  %v7508_v17 = vpop.eup %7507 }
 0x675   :  { %v4512_v41 = vadd.f32 %v4508_v39, %v4446_v44  ;;  %v4487_v7 = vpop.f32.mrb[76].mxu1  ;;  %v4448_v20 = vpop.f32.mrb[77].mxu0  ;;  %v9049_v39 = vld [vmem:[#allocation8] ss:$16 sps:$4 sm:$0xff]  }
 0x676   :  { %v4514_v26 = vadd.f32 %v4510_v54, %v4487_v7  ;;  %v4513_v24 = vadd.f32 %v4509_v56, %v4448_v20  ;;  %v4489_v25 = vpop.f32.mrb[77].mxu1  ;;  %v4450_v50 = vpop.f32.mrb[78].mxu0  ;;  %7509 = vtanh.f32 %v9041_v32 }
 0x677   :  { %v6676_v30 = vmul.f32 -1.442695, %v4512_v41  ;;  %v4515_v16 = vadd.f32 %v4511_v21, %v4489_v25  ;;  %v4491_v9 = vpop.f32.mrb[78].mxu1  ;;  %v4451_v59 = vpop.f32.mrb[79].mxu0  ;;  %v9057_v41 = vld [vmem:[#allocation8 + $0x24] ss:$16 sps:$4 sm:$0xff]  }
 0x678   :  { %v6677_v8 = vmul.f32 -1.442695, %v4513_v24  ;;  %v4492_v42 = vpop.f32.mrb[79].mxu1  ;;  %v9059_v21 = vld [vmem:[#allocation8 + $0x2c] ss:$16 sps:$4 sm:$0xff]  }
 0x679   :  { %7511 = vpow2.f32 %v6676_v30  ;;  %v6678_v19 = vmul.f32 -1.442695, %v4515_v16  ;;  %v9062_v25 = vld [vmem:[#allocation8 + $0x20] ss:$16 sps:$4 sm:$0xff]   ;;  %v9068_v50 = vld [vmem:[#allocation8 + $0x44] ss:$16 sps:$4 sm:$0xff]  }
 0x67a   :  { %7513 = vpow2.f32 %v6677_v8  ;;  %v9076_v30 = vld [vmem:[#allocation8 + $0x40] ss:$16 sps:$4 sm:$0xff]   ;;  %v9080_v16 = vld [vmem:[#allocation8 + $0x48] ss:$16 sps:$4 sm:$0xff]   ;;  %v9082_v9 = vld [vmem:[#allocation8 + $0x64] ss:$16 sps:$4 sm:$0xff]  }
 0x67b   :  { %7515 = vpow2.f32 %v6678_v19  ;;  %v9085_v59 = vld [vmem:[#allocation8 + $0x6c] ss:$16 sps:$4 sm:$0xff]   ;;  %v9088_v42 = vld [vmem:[#allocation8 + $0x60] ss:$16 sps:$4 sm:$0xff]   ;;  %v9094_v19 = vld [vmem:[#allocation8 + $0x84] ss:$16 sps:$4 sm:$0xff]  }
 0x67c   :  { %7517 = vtanh.f32 %v4514_v26  ;;  %v9071_v26 = vld [vmem:[#allocation8 + $0x4c] ss:$16 sps:$4 sm:$0xff]  }
 0x680   :  { %v7510_v18 = vpop.eup %7509 }
 0x681   :  { %v9047_v63 = vmul.f32 %v7510_v18, %v7508_v17  ;;  %v9092_v18 = vld [vmem:[#allocation8 + $0x68] ss:$16 sps:$4 sm:$0xff]  }
 0x683   :  { %9518 = vst [vmem:[#allocation14_spill] sm:$0xff] %v9047_v63  ;;  %v7512_v44 = vpop.eup %7511  ;;  %v5842_v54 = vmul.f32 %v8731_v22, %v9047_v63  ;;  %v4568_v56 = vpack.c.bf16 %v9047_v63, %v9047_v63  ;;  %v9066_v22 = vld [vmem:[#allocation8 + $0x28] ss:$16 sps:$4 sm:$0xff]   ;;  %v9101_v63 = vld [vmem:[#allocation8 + $0x80] ss:$16 sps:$4 sm:$0xff]  }
 0x684   :  { %v7514_v7 = vpop.eup %7513  ;;  %v4543_v20 = vadd.f32 1.0, %v7512_v44 }
 0x685   :  { %v4549_v24 = vadd.f32 1.0, %v7514_v7  ;;  %5855 = vadd.xlane.f32.xlu1 %v5842_v54  ;;  %4794 = vmatmul.mubr.bf16.vlgmr.msra.gmra.mrb[80].mxu0 %v4568_v56  ;;  %v7516_v8 = vpop.eup %7515  ;;  %v9097_v54 = vld [vmem:[#allocation8 + $0x8c] ss:$16 sps:$4 sm:$0xff]  }
 0x686   :  { %7519 = vrcp.f32 %v4543_v20  ;;  %4835 = vmatmul.mubr.bf16.vlgmr.msra.gmra.mrb[80].mxu1 %v4568_v56  ;;  %5037 = vmatpush1.bf16.msra.mxu0 %v9049_v39  ;;  %v7518_v17 = vpop.eup %7517  ;;  %v4556_v20 = vadd.f32 1.0, %v7516_v8  ;;  %v9120_v8 = vld [vmem:[#allocation8 + $0xa8] ss:$16 sps:$4 sm:$0xff]  }
 0x687   :  { %7521 = vrcp.f32 %v4549_v24  ;;  %5078 = vmatpush1.bf16.msra.mxu1 %v9051_v51  ;;  %5038 = vmatprep.subr.bf16.mxu0 %v9057_v41  ;;  %9523 = vst [vmem:[#allocation39_spill] sm:$0xff] %v9120_v8 }
 0x688   :  { %5079 = vmatprep.subr.bf16.mxu1 %v9059_v21  ;;  %5068 = vmatprep.mubr.bf16.mxu0 %v9454_v52  ;;  %7523 = vrcp.f32 %v4556_v20  ;;  %v9132_v20 = vld [vmem:[#allocation8 + $0xc8] ss:$16 sps:$4 sm:$0xff]  }
 0x689   :  { %5109 = vmatprep.mubr.bf16.mxu1 %v9454_v52  ;;  %9526 = vst [vmem:[#allocation42_spill] sm:$0xff] %v9132_v20 }
 0x68a   :  { %5039 = vmatpush1.bf16.msra.mxu0 %v9062_v25 }
 0x68b   :  { %5080 = vmatpush1.bf16.msra.mxu1 %v9066_v22  ;;  %5040 = vmatprep.subr.bf16.mxu0 %v9068_v50 }
 0x68c   :  { %5081 = vmatprep.subr.bf16.mxu1 %v9071_v26 }
 0x68e   :  { %5041 = vmatpush1.bf16.msra.mxu0 %v9076_v30 }
 0x68f   :  { %5082 = vmatpush1.bf16.msra.mxu1 %v9080_v16  ;;  %5042 = vmatprep.subr.bf16.mxu0 %v9082_v9 }
 0x690   :  { %v7520_v44 = vpop.eup %7519  ;;  %5083 = vmatprep.subr.bf16.mxu1 %v9085_v59 }
 0x691   :  { %v7522_v56 = vpop.eup %7521  ;;  %v4560_v7 = vmul.f32 %v7520_v44, %v7518_v17  ;;  %v9112_v17 = vld [vmem:[#allocation8 + $0xac] ss:$16 sps:$4 sm:$0xff]   ;;  %v9122_v44 = vld [vmem:[#allocation8 + $0xc4] ss:$16 sps:$4 sm:$0xff]  }
 0x692   :  { %v4559_v24 = vmul.f32 %v7522_v56, %v8907_v43  ;;  %5043 = vmatpush1.bf16.msra.mxu0 %v9088_v42  ;;  %9521 = vst [vmem:[#allocation29_spill] sm:$0xff] %v9112_v17  ;;  %v9115_v43 = vld [vmem:[#allocation8 + $0xa0] ss:$16 sps:$4 sm:$0xff]   ;;  %9524 = vst [vmem:[#allocation40_spill] sm:$0xff] %v9122_v44  ;;  %v9125_v56 = vld [vmem:[#allocation8 + $0xcc] ss:$16 sps:$4 sm:$0xff]  }
 0x693   :  { %5084 = vmatpush1.bf16.msra.mxu1 %v9092_v18  ;;  %5044 = vmatprep.subr.bf16.mxu0 %v9094_v19  ;;  %9522 = vst [vmem:[#allocation38_spill] sm:$0xff] %v9115_v43 }
 0x694   :  { %v9109_v23 = vadd.f32 %v4560_v7, %v4559_v24  ;;  %5085 = vmatprep.subr.bf16.mxu1 %v9097_v54  ;;  %v9128_v7 = vld [vmem:[#allocation8 + $0xc0] ss:$16 sps:$4 sm:$0xff]   ;;  %v9134_v24 = vld [vmem:[#allocation8 + $0xe4] ss:$16 sps:$4 sm:$0xff]  }
 0x695   :  { %9525 = vst [vmem:[#allocation41_spill] sm:$0xff] %v9128_v7  ;;  %9527 = vst [vmem:[#allocation43_spill] sm:$0xff] %v9134_v24 }
 0x696   :  { %5045 = vmatpush1.bf16.msra.mxu0 %v9101_v63  ;;  %7525 = vtanh.f32 %v9109_v23 }
 0x697   :  { %5086 = vmatpush1.bf16.msra.mxu1 %v9105_v11  ;;  %5046 = vmatprep.subr.bf16.mxu0 %v9107_v58  ;;  %v9137_v58 = vld [vmem:[#allocation8 + $0xec] ss:$16 sps:$4 sm:$0xff]   ;;  %v7524_v11 = vpop.eup %7523 }
 0x698   :  { %5087 = vmatprep.subr.bf16.mxu1 %v9112_v17  ;;  %v9140_v17 = vld [vmem:[#allocation8 + $0xe0] ss:$16 sps:$4 sm:$0xff]  }
 0x69a   :  { %5047 = vmatpush1.bf16.msra.mxu0 %v9115_v43 }
 0x69b   :  { %5088 = vmatpush1.bf16.msra.mxu1 %v9120_v8  ;;  %5048 = vmatprep.subr.bf16.mxu0 %v9122_v44  ;;  %v9144_v8 = vld [vmem:[#allocation8 + $0xe8] ss:$16 sps:$4 sm:$0xff]  }
 0x69c   :  { %5089 = vmatprep.subr.bf16.mxu1 %v9125_v56 }
 0x69e   :  { %5049 = vmatpush1.bf16.msra.mxu0 %v9128_v7  ;;  %v9154_v7 = vld [vmem:[%s9360_s7] ss:$0 sm:$0xff] }
 0x69f   :  { %5090 = vmatpush1.bf16.msra.mxu1 %v9132_v20  ;;  %5050 = vmatprep.subr.bf16.mxu0 %v9134_v24 }
 0x6a0   :  { %v7526_v44 = vpop.eup %7525  ;;  %5091 = vmatprep.subr.bf16.mxu1 %v9137_v58 }
 0x6a1   :  { %v9147_v43 = vmul.f32 %v7526_v44, %v7524_v11  ;;  %v9528_v11 = vld [vmem:[#allocation18_spill] sm:$0xff] }
 0x6a2   :  { %5051 = vmatpush1.bf16.msra.mxu0 %v9140_v17 }
 0x6a3   :  { %5092 = vmatpush1.bf16.msra.mxu1 %v9144_v8  ;;  %v5870_v20 = vmul.f32 %v9154_v7, %v9147_v43  ;;  %v4843_v24 = vpack.c.bf16 %v9147_v43, %v9147_v43  ;;  %5385 = vmatprep.subr.bf16.mxu0 %v8933_v49  ;;  %v5121_v49 = vunpack.c.l.bf16 %v9528_v11 }
 0x6a4   :  { %5426 = vmatprep.subr.bf16.mxu1 %v8935_v61 }
 0x6a5   :  { %5880 = vadd.xlane.f32.xlu0 %v5870_v20  ;;  %5069 = vmatmul.mubr.bf16.vlgmr.msra.gmra.mrb[84].mxu0 %v4843_v24  ;;  %v9531_v20 = vld [vmem:[#allocation25_spill] sm:$0xff] }
 0x6a6   :  { %5110 = vmatmul.mubr.bf16.vlgmr.msra.gmra.mrb[84].mxu1 %v4843_v24  ;;  %5386 = vmatpush1.bf16.msra.mxu0 %v8937_v38  ;;  %v9529_v38 = vld [vmem:[#allocation19_spill] sm:$0xff]  ;;  %v5134_v24 = vunpack.c.l.bf16 %v9531_v20 }
 0x6a7   :  { %5427 = vmatpush1.bf16.msra.mxu1 %v8939_v33  ;;  %5387 = vmatprep.subr.bf16.mxu0 %v8945_v3  ;;  %v5123_v33 = vunpack.c.l.bf16 %v9529_v38  ;;  %v5122_v3 = vunpack.c.h.bf16 %v9528_v11 }
 0x6a8   :  { %5428 = vmatprep.subr.bf16.mxu1 %v8947_v57  ;;  %5417 = vmatprep.mubr.bf16.mxu0 %v9454_v52 }
 0x6a9   :  { %5458 = vmatprep.mubr.bf16.mxu1 %v9454_v52 }
 0x6aa   :  { %5388 = vmatpush1.bf16.msra.mxu0 %v8949_v27 }
 0x6ab   :  { %5429 = vmatpush1.bf16.msra.mxu1 %v8951_v28  ;;  %5389 = vmatprep.subr.bf16.mxu0 %v8957_v29  ;;  %v5124_v29 = vunpack.c.h.bf16 %v9529_v38 }
 0x6ac   :  { %5430 = vmatprep.subr.bf16.mxu1 %v8959_v1 }
 0x6ae   :  { %5390 = vmatpush1.bf16.msra.mxu0 %v8961_v47 }
 0x6af   :  { %5431 = vmatpush1.bf16.msra.mxu1 %v8963_v62  ;;  %5391 = vmatprep.subr.bf16.mxu0 %v8969_v5 }
 0x6b0   :  { %5432 = vmatprep.subr.bf16.mxu1 %v8971_v48 }
 0x6b2   :  { %5392 = vmatpush1.bf16.msra.mxu0 %v8973_v55 }
 0x6b3   :  { %5433 = vmatpush1.bf16.msra.mxu1 %v8975_v35  ;;  %5393 = vmatprep.subr.bf16.mxu0 %v8981_v45 }
 0x6b4   :  { %5434 = vmatprep.subr.bf16.mxu1 %v8983_v31 }
 0x6b6   :  { %5394 = vmatpush1.bf16.msra.mxu0 %v8985_v0 }
 0x6b7   :  { %5435 = vmatpush1.bf16.msra.mxu1 %v8987_v4  ;;  %5395 = vmatprep.subr.bf16.mxu0 %v8993_v37 }
 0x6b8   :  { %5436 = vmatprep.subr.bf16.mxu1 %v8995_v6 }
 0x6ba   :  { %5396 = vmatpush1.bf16.msra.mxu0 %v8997_v2 }
 0x6bb   :  { %5437 = vmatpush1.bf16.msra.mxu1 %v8999_v53  ;;  %5397 = vmatprep.subr.bf16.mxu0 %v9005_v34 }
 0x6bc   :  { %5438 = vmatprep.subr.bf16.mxu1 %v9007_v46 }
 0x6be   :  { %5398 = vmatpush1.bf16.msra.mxu0 %v9009_v40 }
 0x6bf   :  { %5439 = vmatpush1.bf16.msra.mxu1 %v9011_v60  ;;  %5399 = vmatprep.subr.bf16.mxu0 %v9017_v36 }
 0x6c0   :  { %5440 = vmatprep.subr.bf16.mxu1 %v9019_v10 }
 0x6c2   :  { %5400 = vmatpush1.bf16.msra.mxu0 %v9021_v12 }
 0x6c3   :  { %5441 = vmatpush1.bf16.msra.mxu1 %v9023_v13  ;;  %5660 = vmatprep.subr.bf16.mxu0 %v9029_v14  ;;  %v9530_v13 = vld [vmem:[#allocation24_spill] sm:$0xff] }
 0x6c4   :  { %5701 = vmatprep.subr.bf16.mxu1 %v9031_v15  ;;  %v5132_v14 = vunpack.c.l.bf16 %v9530_v13  ;;  %v5133_v11 = vunpack.c.h.bf16 %v9530_v13 }
 0x758   :  { %v4795_v61 = vpop.f32.mrb[80].mxu0 }
 0x759   :  { %v5125_v57 = vadd.f32 %v5121_v49, %v4795_v61  ;;  %v4836_v27 = vpop.f32.mrb[80].mxu1  ;;  %v4797_v28 = vpop.f32.mrb[81].mxu0 }
 0x75a   :  { %v5127_v1 = vadd.f32 %v5123_v33, %v4836_v27  ;;  %v5126_v47 = vadd.f32 %v5122_v3, %v4797_v28  ;;  %v4838_v62 = vpop.f32.mrb[81].mxu1  ;;  %v4799_v5 = vpop.f32.mrb[82].mxu0  ;;  %v5135_v33 = vunpack.c.h.bf16 %v9531_v20 }
 0x75b   :  { %v6743_v48 = vmul.f32 -1.442695, %v5125_v57  ;;  %v5128_v55 = vadd.f32 %v5124_v29, %v4838_v62  ;;  %v4840_v35 = vpop.f32.mrb[82].mxu1  ;;  %v4800_v45 = vpop.f32.mrb[83].mxu0 }
 0x75c   :  { %v6744_v31 = vmul.f32 -1.442695, %v5126_v47  ;;  %v4841_v0 = vpop.f32.mrb[83].mxu1 }
 0x75d   :  { %7527 = vpow2.f32 %v6743_v48  ;;  %v6745_v4 = vmul.f32 -1.442695, %v5128_v55  ;;  %v9213_v0 = vld [vmem:[%s9359_s6] ss:$0 sm:$0xff] }
 0x75e   :  { %7529 = vpow2.f32 %v6744_v31 }
 0x75f   :  { %7531 = vpow2.f32 %v6745_v4 }
 0x760   :  { %7533 = vtanh.f32 %v5127_v1 }
 0x767   :  { %v7528_v37 = vpop.eup %7527 }
 0x768   :  { %v7530_v6 = vpop.eup %7529  ;;  %v5143_v2 = vadd.f32 1.0, %v7528_v37 }
 0x769   :  { %v5149_v53 = vadd.f32 1.0, %v7530_v6  ;;  %v7532_v34 = vpop.eup %7531 }
 0x76a   :  { %7535 = vrcp.f32 %v5143_v2  ;;  %v7534_v46 = vpop.eup %7533  ;;  %v5156_v10 = vadd.f32 1.0, %v7532_v34 }
 0x76b   :  { %7537 = vrcp.f32 %v5149_v53 }
 0x76c   :  { %7539 = vrcp.f32 %v5156_v10  ;;  %v9542_v10 = vld [vmem:[#allocation21_spill] sm:$0xff] }
 0x774   :  { %v7536_v40 = vpop.eup %7535 }
 0x775   :  { %v7538_v60 = vpop.eup %7537  ;;  %v5160_v36 = vmul.f32 %v7536_v40, %v7534_v46  ;;  %v9541_v40 = vld [vmem:[#allocation20_spill] sm:$0xff] }
 0x776   :  { %v5159_v12 = vmul.f32 %v7538_v60, %v9041_v32  ;;  %v7540_v48 = vpop.eup %7539  ;;  %v5745_v60 = vunpack.c.l.bf16 %v9541_v40 }
 0x778   :  { %v9202_v15 = vadd.f32 %v5160_v36, %v5159_v12  ;;  %v5070_v44 = vpop.f32.mrb[84].mxu0  ;;  %v5746_v12 = vunpack.c.h.bf16 %v9541_v40 }
 0x779   :  { %v5136_v49 = vadd.f32 %v5132_v14, %v5070_v44  ;;  %v5111_v61 = vpop.f32.mrb[84].mxu1  ;;  %v5072_v38 = vpop.f32.mrb[85].mxu0 }
 0x77a   :  { %v5138_v3 = vadd.f32 %v5134_v24, %v5111_v61  ;;  %v5137_v57 = vadd.f32 %v5133_v11, %v5072_v38  ;;  %v5113_v27 = vpop.f32.mrb[85].mxu1  ;;  %v5074_v28 = vpop.f32.mrb[86].mxu0  ;;  %7541 = vtanh.f32 %v9202_v15 }
 0x77b   :  { %v6746_v32 = vmul.f32 -1.442695, %v5136_v49  ;;  %v5139_v29 = vadd.f32 %v5135_v33, %v5113_v27  ;;  %v5115_v1 = vpop.f32.mrb[86].mxu1  ;;  %v5075_v47 = vpop.f32.mrb[87].mxu0 }
 0x77c   :  { %v6747_v62 = vmul.f32 -1.442695, %v5137_v57  ;;  %v5116_v5 = vpop.f32.mrb[87].mxu1 }
 0x77d   :  { %7543 = vpow2.f32 %v6746_v32  ;;  %v6748_v35 = vmul.f32 -1.442695, %v5139_v29 }
 0x77e   :  { %7545 = vpow2.f32 %v6747_v62 }
 0x77f   :  { %7547 = vpow2.f32 %v6748_v35 }
 0x780   :  { %7549 = vtanh.f32 %v5138_v3 }
 0x784   :  { %v7542_v55 = vpop.eup %7541 }
 0x785   :  { %v9208_v45 = vmul.f32 %v7542_v55, %v7540_v48 }
 0x787   :  { %v7544_v31 = vpop.eup %7543  ;;  %v5843_v4 = vmul.f32 %v9213_v0, %v9208_v45  ;;  %v5192_v37 = vpack.c.bf16 %v9208_v45, %v9208_v45 }
 0x788   :  { %v7546_v6 = vpop.eup %7545  ;;  %v5167_v2 = vadd.f32 1.0, %v7544_v31 }
 0x789   :  { %v5173_v53 = vadd.f32 1.0, %v7546_v6  ;;  %5857 = vadd.xlane.f32.xlu0 %v5843_v4  ;;  %5418 = vmatmul.mubr.bf16.vlgmr.msra.gmra.mrb[88].mxu0 %v5192_v37  ;;  %v9543_v4 = vld [vmem:[#allocation22_spill] sm:$0xff] }
 0x78a   :  { %7551 = vrcp.f32 %v5167_v2  ;;  %5459 = vmatmul.mubr.bf16.vlgmr.msra.gmra.mrb[88].mxu1 %v5192_v37  ;;  %5661 = vmatpush1.bf16.msra.mxu0 %v9049_v39  ;;  %v7548_v39 = vpop.eup %7547  ;;  %v5755_v37 = vunpack.c.l.bf16 %v9543_v4  ;;  %v9544_v2 = vld [vmem:[#allocation23_spill] sm:$0xff] }
 0x78b   :  { %7553 = vrcp.f32 %v5173_v53  ;;  %5702 = vmatpush1.bf16.msra.mxu1 %v9051_v51  ;;  %5662 = vmatprep.subr.bf16.mxu0 %v9057_v41  ;;  %v7550_v51 = vpop.eup %7549  ;;  %v5757_v53 = vunpack.c.l.bf16 %v9544_v2 }
 0x78c   :  { %5703 = vmatprep.subr.bf16.mxu1 %v9059_v21  ;;  %5692 = vmatprep.mubr.bf16.mxu0 %v9454_v52 }
 0x78d   :  { %5733 = vmatprep.mubr.bf16.mxu1 %v9454_v52 }
 0x78e   :  { %5663 = vmatpush1.bf16.msra.mxu0 %v9062_v25  ;;  %v5180_v25 = vadd.f32 1.0, %v7548_v39  ;;  %v5756_v39 = vunpack.c.h.bf16 %v9543_v4  ;;  %v7333_v4 = vld [vmem:[%s9362_s9 + $0x38] sm:$0xff]  }
 0x78f   :  { %5704 = vmatpush1.bf16.msra.mxu1 %v9066_v22  ;;  %5664 = vmatprep.subr.bf16.mxu0 %v9068_v50 }
 0x790   :  { %5705 = vmatprep.subr.bf16.mxu1 %v9071_v26  ;;  %7555 = vrcp.f32 %v5180_v25  ;;  %v9532_v26 = vld [vmem:[#allocation15_spill] sm:$0xff]  ;;  %v5758_v25 = vunpack.c.h.bf16 %v9544_v2 }
 0x792   :  { %5665 = vmatpush1.bf16.msra.mxu0 %v9076_v30  ;;  %v9533_v30 = vld [vmem:[#allocation28_spill] sm:$0xff] }
 0x793   :  { %5706 = vmatpush1.bf16.msra.mxu1 %v9080_v16  ;;  %5666 = vmatprep.subr.bf16.mxu0 %v9082_v9  ;;  %v9535_v16 = vld [vmem:[#allocation38_spill] sm:$0xff]  ;;  %v9536_v9 = vld [vmem:[#allocation39_spill] sm:$0xff] }
 0x794   :  { %v7552_v41 = vpop.eup %7551  ;;  %5707 = vmatprep.subr.bf16.mxu1 %v9085_v59  ;;  %v9537_v59 = vld [vmem:[#allocation40_spill] sm:$0xff] }
 0x795   :  { %v7554_v52 = vpop.eup %7553  ;;  %v5184_v21 = vmul.f32 %v7552_v41, %v7550_v51 }
 0x796   :  { %v5183_v22 = vmul.f32 %v7554_v52, %v9109_v23  ;;  %5667 = vmatpush1.bf16.msra.mxu0 %v9088_v42  ;;  %v9534_v23 = vld [vmem:[#allocation29_spill] sm:$0xff] }
 0x797   :  { %5708 = vmatpush1.bf16.msra.mxu1 %v9092_v18  ;;  %5668 = vmatprep.subr.bf16.mxu0 %v9094_v19  ;;  %v9538_v42 = vld [vmem:[#allocation41_spill] sm:$0xff]  ;;  %v9540_v19 = vld [vmem:[#allocation43_spill] sm:$0xff] }
 0x798   :  { %v9237_v50 = vadd.f32 %v5184_v21, %v5183_v22  ;;  %5709 = vmatprep.subr.bf16.mxu1 %v9097_v54 }
 0x79a   :  { %5669 = vmatpush1.bf16.msra.mxu0 %v9101_v63  ;;  %7557 = vtanh.f32 %v9237_v50  ;;  %v7556_v18 = vpop.eup %7555  ;;  %v9539_v63 = vld [vmem:[#allocation42_spill] sm:$0xff] }
 0x79b   :  { %5710 = vmatpush1.bf16.msra.mxu1 %v9532_v26  ;;  %5670 = vmatprep.subr.bf16.mxu0 %v9533_v30 }
 0x79c   :  { %5711 = vmatprep.subr.bf16.mxu1 %v9534_v23 }
 0x79e   :  { %5671 = vmatpush1.bf16.msra.mxu0 %v9535_v16 }
 0x79f   :  { %5712 = vmatpush1.bf16.msra.mxu1 %v9536_v9  ;;  %5672 = vmatprep.subr.bf16.mxu0 %v9537_v59 }
 0x7a0   :  { %5713 = vmatprep.subr.bf16.mxu1 %v9125_v56 }
 0x7a2   :  { %5673 = vmatpush1.bf16.msra.mxu0 %v9538_v42 }
 0x7a3   :  { %5714 = vmatpush1.bf16.msra.mxu1 %v9539_v63  ;;  %5674 = vmatprep.subr.bf16.mxu0 %v9540_v19 }
 0x7a4   :  { %v7558_v54 = vpop.eup %7557  ;;  %5715 = vmatprep.subr.bf16.mxu1 %v9137_v58  ;;  %v5747_v58 = vunpack.c.l.bf16 %v9542_v10 }
 0x7a5   :  { %v9253_v34 = vmul.f32 %v7558_v54, %v7556_v18 }
 0x7a6   :  { %5675 = vmatpush1.bf16.msra.mxu0 %v9140_v17 }
 0x7a7   :  { %5716 = vmatpush1.bf16.msra.mxu1 %v9144_v8  ;;  %v5869_v46 = vmul.f32 %v9154_v7, %v9253_v34  ;;  %v5467_v56 = vpack.c.bf16 %v9253_v34, %v9253_v34  ;;  %v5748_v8 = vunpack.c.h.bf16 %v9542_v10 }
 0x7a9   :  { %5878 = vadd.xlane.f32.xlu1 %v5869_v46  ;;  %5693 = vmatmul.mubr.bf16.vlgmr.msra.gmra.mrb[92].mxu0 %v5467_v56 }
 0x7aa   :  { %5734 = vmatmul.mubr.bf16.vlgmr.msra.gmra.mrb[92].mxu1 %v5467_v56 }
 0x85c   :  { %v5419_v36 = vpop.f32.mrb[88].mxu0 }
 0x85d   :  { %v5749_v13 = vadd.f32 %v5745_v60, %v5419_v36  ;;  %v5460_v17 = vpop.f32.mrb[88].mxu1  ;;  %v5421_v14 = vpop.f32.mrb[89].mxu0 }
 0x85e   :  { %v5751_v44 = vadd.f32 %v5747_v58, %v5460_v17  ;;  %v5750_v20 = vadd.f32 %v5746_v12, %v5421_v14  ;;  %v5462_v24 = vpop.f32.mrb[89].mxu1  ;;  %v5423_v11 = vpop.f32.mrb[90].mxu0  ;;  %v9545_v58 = vld [vmem:[#allocation35_spill] sm:$0xff] }
 0x85f   :  { %v6813_v49 = vmul.f32 -1.442695, %v5749_v13  ;;  %v5752_v61 = vadd.f32 %v5748_v8, %v5462_v24  ;;  %v5464_v38 = vpop.f32.mrb[90].mxu1  ;;  %v5424_v33 = vpop.f32.mrb[91].mxu0  ;;  %v5875_v12 = vmul.f32 %v9154_v7, %v9545_v58 }
 0x860   :  { %v6814_v3 = vmul.f32 -1.442695, %v5750_v20  ;;  %v5465_v57 = vpop.f32.mrb[91].mxu1  ;;  %v9546_v33 = vld [vmem:[#allocation47_spill] sm:$0xff] }
 0x861   :  { %7559 = vpow2.f32 %v6813_v49  ;;  %v6815_v27 = vmul.f32 -1.442695, %v5752_v61  ;;  %v7319_v57 = vld [vmem:[%s9362_s9] sm:$0xff]  }
 0x862   :  { %7561 = vpow2.f32 %v6814_v3  ;;  %v5874_v3 = vmul.f32 %v9154_v7, %v9546_v33 }
 0x863   :  { %7563 = vpow2.f32 %v6815_v27  ;;  %v7670_v27 = vmov 0.0  }
 0x864   :  { %7565 = vtanh.f32 %v5751_v44  ;;  %6888 = vmatprep.subr.bf16.mxu0 %v7670_v27  ;;  %6908 = vmatprep.subr.bf16.mxu1 %v7670_v27 }
 0x865   :  { %6889 = vmatpush3.bf16.msra.mxu0 %v7319_v57  ;;  %6904 = vmatprep.mubr.msk.bf16.mxu0 %vm7671_vm1, %v7670_v27 }
 0x866   :  { %6890 = vmatprep.subr.bf16.mxu0 %v7670_v27  ;;  %6924 = vmatprep.mubr.msk.bf16.mxu1 %vm7671_vm1, %v7670_v27 }
 0x86b   :  { %v7560_v28 = vpop.eup %7559 }
 0x86c   :  { %v7562_v32 = vpop.eup %7561  ;;  %v5766_v29 = vadd.f32 1.0, %v7560_v28  ;;  %v7321_v28 = vld [vmem:[%s9362_s9 + $0x8] sm:$0xff]  }
 0x86d   :  { %v5772_v1 = vadd.f32 1.0, %v7562_v32  ;;  %v7564_v47 = vpop.eup %7563  ;;  %6891 = vmatpush3.bf16.msra.mxu0 %v7321_v28  ;;  %v7323_v32 = vld [vmem:[%s9362_s9 + $0x10] sm:$0xff]  }
 0x86e   :  { %7567 = vrcp.f32 %v5766_v29  ;;  %v7566_v62 = vpop.eup %7565  ;;  %v5779_v35 = vadd.f32 1.0, %v7564_v47  ;;  %v7324_v29 = vld [vmem:[%s9361_s8 + $0x10] sm:$0xff]   ;;  %6892 = vmatprep.subr.bf16.mxu0 %v7670_v27  ;;  %v7326_v47 = vld [vmem:[%s9361_s8 + $0x18] sm:$0xff]  }
 0x86f   :  { %7569 = vrcp.f32 %v5772_v1  ;;  %v7325_v1 = vld [vmem:[%s9362_s9 + $0x18] sm:$0xff]  }
 0x870   :  { %7571 = vrcp.f32 %v5779_v35  ;;  %v7331_v35 = vld [vmem:[%s9362_s9 + $0x30] sm:$0xff]  }
 0x871   :  { %6893 = vmatpush3.bf16.msra.mxu0 %v7323_v32 }
 0x872   :  { %6894 = vmatprep.subr.bf16.mxu0 %v7670_v27 }
 0x875   :  { %6895 = vmatpush3.bf16.msra.mxu0 %v7325_v1 }
 0x876   :  { %6896 = vmatprep.subr.bf16.mxu0 %v7670_v27 }
 0x878   :  { %v7568_v5 = vpop.eup %7567 }
 0x879   :  { %v7570_v48 = vpop.eup %7569  ;;  %v5783_v55 = vmul.f32 %v7568_v5, %v7566_v62  ;;  %v7327_v62 = vld [vmem:[%s9362_s9 + $0x20] sm:$0xff]  }
 0x87a   :  { %v5782_v31 = vmul.f32 %v7570_v48, %v9202_v15  ;;  %v7572_v63 = vpop.eup %7571  ;;  %v7328_v5 = vld [vmem:[%s9361_s8 + $0x20] sm:$0xff]   ;;  %6897 = vmatpush3.bf16.msra.mxu0 %v7327_v62  ;;  %v7329_v48 = vld [vmem:[%s9362_s9 + $0x28] sm:$0xff]  }
 0x87b   :  { %6898 = vmatprep.subr.bf16.mxu0 %v7670_v27 }
 0x87c   :  { %v5694_v6 = vpop.f32.mrb[92].mxu0  ;;  %v5784_v51 = vadd.f32 %v5783_v55, %v5782_v31  ;;  %v7330_v55 = vld [vmem:[%s9361_s8 + $0x28] sm:$0xff]   ;;  %v7332_v31 = vld [vmem:[%s9361_s8 + $0x30] sm:$0xff]  }
 0x87d   :  { %v5759_v41 = vadd.f32 %v5755_v37, %v5694_v6  ;;  %v5735_v52 = vpop.f32.mrb[92].mxu1  ;;  %v5696_v21 = vpop.f32.mrb[93].mxu0  ;;  %v7334_v37 = vld [vmem:[%s9361_s8 + $0x38] sm:$0xff]  }
 0x87e   :  { %v5761_v22 = vadd.f32 %v5757_v53, %v5735_v52  ;;  %v5760_v26 = vadd.f32 %v5756_v39, %v5696_v21  ;;  %v5737_v30 = vpop.f32.mrb[93].mxu1  ;;  %v5698_v23 = vpop.f32.mrb[94].mxu0  ;;  %7573 = vtanh.f32 %v5784_v51  ;;  %6899 = vmatpush3.bf16.msra.mxu0 %v7329_v48 }
 0x87f   :  { %v6816_v15 = vmul.f32 -1.442695, %v5759_v41  ;;  %v5762_v16 = vadd.f32 %v5758_v25, %v5737_v30  ;;  %v5739_v9 = vpop.f32.mrb[94].mxu1  ;;  %v5699_v59 = vpop.f32.mrb[95].mxu0  ;;  %6900 = vmatprep.subr.bf16.mxu0 %v7670_v27 }
 0x880   :  { %v6817_v42 = vmul.f32 -1.442695, %v5760_v26  ;;  %v5740_v18 = vpop.f32.mrb[95].mxu1  ;;  %v5850_v6 = vpop.xlane.xlu1 %5849 }
 0x881   :  { %7575 = vpow2.f32 %v6816_v15  ;;  %v6818_v54 = vmul.f32 -1.442695, %v5762_v16  ;;  %v5846_v53 = vpop.xlane.xlu0 %5845 }
 0x882   :  { %7577 = vpow2.f32 %v6817_v42  ;;  %6901 = vmatpush3.bf16.msra.mxu0 %v7331_v35 }
 0x883   :  { %7579 = vpow2.f32 %v6818_v54  ;;  %6902 = vmatprep.subr.bf16.mxu0 %v7670_v27 }
 0x884   :  { %7581 = vtanh.f32 %v5761_v22  ;;  %v5887_v2 = vpop.xlane.xlu1 %5886 }
 0x885   :  { %v5848_v51 = vpop.xlane.xlu0 %5847 }
 0x886   :  { %6903 = vmatpush3.bf16.msra.mxu0 %v7333_v4 }
 0x888   :  { %v7574_v19 = vpop.eup %7573  ;;  %v5852_v39 = vpop.xlane.xlu1 %5851 }
 0x889   :  { %v9270_v46 = vmul.f32 %v7574_v19, %v7572_v63  ;;  %v5885_v52 = vpop.xlane.xlu0 %5884 }
 0x88b   :  { %v7576_v56 = vpop.eup %7575  ;;  %v5844_v40 = vmul.f32 %v9213_v0, %v9270_v46 }
 0x88c   :  { %v7578_v60 = vpop.eup %7577  ;;  %v5790_v36 = vadd.f32 1.0, %v7576_v56  ;;  %v5883_v41 = vpop.xlane.xlu1 %5882 }
 0x88d   :  { %v5796_v10 = vadd.f32 1.0, %v7578_v60  ;;  %5859 = vadd.xlane.f32.xlu1 %v5844_v40  ;;  %v7580_v13 = vpop.eup %7579  ;;  %v5854_v25 = vpop.xlane.xlu0 %5853  ;;  %v5895_v63 = vadd.f32 %v5883_v41, %v5852_v39 }
 0x88e   :  { %7583 = vrcp.f32 %v5790_v36  ;;  %v7582_v17 = vpop.eup %7581  ;;  %v5803_v20 = vadd.f32 1.0, %v7580_v13  ;;  %v5896_v59 = vadd.f32 %v5885_v52, %v5854_v25 }
 0x88f   :  { %7585 = vrcp.f32 %v5796_v10 }
 0x890   :  { %7587 = vrcp.f32 %v5803_v20  ;;  %v5856_v21 = vpop.xlane.xlu1 %5855 }
 0x891   :  { %5890 = vadd.xlane.f32.xlu1 %v5875_v12  ;;  %v5881_v26 = vpop.xlane.xlu0 %5880  ;;  %v5897_v54 = vadd.f32 %v5887_v2, %v5856_v21 }
 0x892   :  { %v5894_v56 = vadd.f32 %v5881_v26, %v5850_v6 }
 0x894   :  { %v5879_v22 = vpop.xlane.xlu1 %5878 }
 0x895   :  { %v5858_v23 = vpop.xlane.xlu0 %5857  ;;  %v5893_v42 = vadd.f32 %v5879_v22, %v5848_v51 }
 0x897   :  { %v5901_v36 = vmax.f32 %v5893_v42, %v5897_v54 }
 0x898   :  { %v7584_v14 = vpop.eup %7583 }
 0x899   :  { %v7586_v8 = vpop.eup %7585  ;;  %v5807_v44 = vmul.f32 %v7584_v14, %v7582_v17 }
 0x89a   :  { %v5806_v0 = vmul.f32 %v7586_v8, %v9237_v50  ;;  %v7588_v11 = vpop.eup %7587  ;;  %v7320_v50 = vld [vmem:[%s9361_s8] sm:$0xff]  }
 0x89b   :  { %6909 = vmatpush3.bf16.msra.mxu1 %v7320_v50 }
 0x89c   :  { %v5808_v24 = vadd.f32 %v5807_v44, %v5806_v0  ;;  %6910 = vmatprep.subr.bf16.mxu1 %v7670_v27 }
 0x89e   :  { %7589 = vtanh.f32 %v5808_v24 }
 0x8a8   :  { %v7590_v49 = vpop.eup %7589 }
 0x8a9   :  { %v9277_v61 = vmul.f32 %v7590_v49, %v7588_v11 }
 0x8ab   :  { %v5868_v38 = vmul.f32 %v9154_v7, %v9277_v61  ;;  %v7322_v7 = vld [vmem:[%s9361_s8 + $0x8] sm:$0xff]  }
 0x8ac   :  { %6911 = vmatpush3.bf16.msra.mxu1 %v7322_v7 }
 0x8ad   :  { %5876 = vadd.xlane.f32.xlu0 %v5868_v38  ;;  %6912 = vmatprep.subr.bf16.mxu1 %v7670_v27 }
 0x8b0   :  { %6913 = vmatpush3.bf16.msra.mxu1 %v7324_v29 }
 0x8b1   :  { %5888 = vadd.xlane.f32.xlu0 %v5874_v3  ;;  %6914 = vmatprep.subr.bf16.mxu1 %v7670_v27 }
 0x8b4   :  { %6915 = vmatpush3.bf16.msra.mxu1 %v7326_v47 }
 0x8b5   :  { %6916 = vmatprep.subr.bf16.mxu1 %v7670_v27 }
 0x8b8   :  { %6917 = vmatpush3.bf16.msra.mxu1 %v7328_v5 }
 0x8b9   :  { %6918 = vmatprep.subr.bf16.mxu1 %v7670_v27 }
 0x8bc   :  { %6919 = vmatpush3.bf16.msra.mxu1 %v7330_v55 }
 0x8bd   :  { %6920 = vmatprep.subr.bf16.mxu1 %v7670_v27 }
 0x8c0   :  { %6921 = vmatpush3.bf16.msra.mxu1 %v7332_v31 }
 0x8c1   :  { %6922 = vmatprep.subr.bf16.mxu1 %v7670_v27 }
 0x8c4   :  { %6923 = vmatpush3.bf16.msra.mxu1 %v7334_v37 }
 0x91a   :  { %v5860_v30 = vpop.xlane.xlu1 %5859 }
 0x91e   :  { %v5891_v15 = vpop.xlane.xlu1 %5890 }
 0x91f   :  { %v5899_v18 = vadd.f32 %v5891_v15, %v5860_v30 }
 0x921   :  { %v5903_v10 = vmax.f32 %v5895_v63, %v5899_v18 }
 0x93a   :  { %v5877_v16 = vpop.xlane.xlu0 %5876 }
 0x93b   :  { %v5892_v9 = vadd.f32 %v5877_v16, %v5846_v53 }
 0x93d   :  { %v5900_v40 = vmax.f32 %v5892_v9, %v5896_v59 }
 0x93e   :  { %v5889_v19 = vpop.xlane.xlu0 %5888 }
 0x93f   :  { %v5898_v60 = vadd.f32 %v5889_v19, %v5858_v23  ;;  %v5904_v13 = vmax.f32 %v5900_v40, %v5901_v36  ;;  %v9549_v19 = vld [vmem:[#allocation31_spill] sm:$0xff]  ;;  %v9550_v40 = vld [vmem:[#allocation32_spill] sm:$0xff] }
 0x941   :  { %v5902_v12 = vmax.f32 %v5894_v56, %v5898_v60 }
 0x943   :  { %v5905_v17 = vmax.f32 %v5902_v12, %v5903_v10  ;;  %v9551_v12 = vld [vmem:[#allocation13_spill] sm:$0xff] }
 0x945   :  { %v5906_v14 = vmax.f32 %v5904_v13, %v5905_v17 }
 0x947   :  { %v5907_v8 = vsub.f32 %v5892_v9, %v5906_v14  ;;  %v5908_v44 = vsub.f32 %v5893_v42, %v5906_v14  ;;  %v5909_v20 = vsub.f32 %v5894_v56, %v5906_v14  ;;  %v5910_v0 = vsub.f32 %v5895_v63, %v5906_v14  ;;  %v9547_v9 = vld [vmem:[#allocation34_spill] sm:$0xff]  ;;  %v9548_v42 = vld [vmem:[#allocation36_spill] sm:$0xff] }
 0x948   :  { %v5911_v49 = vsub.f32 %v5896_v59, %v5906_v14  ;;  %v5912_v3 = vsub.f32 %v5897_v54, %v5906_v14  ;;  %v5913_v50 = vsub.f32 %v5898_v60, %v5906_v14  ;;  %v5914_v28 = vsub.f32 %v5899_v18, %v5906_v14 }
 0x949   :  { %v5915_v24 = vmul.f32 1.442695, %v5907_v8  ;;  %v5917_v11 = vmul.f32 1.442695, %v5908_v44  ;;  %v5919_v38 = vmul.f32 1.442695, %v5909_v20 }
 0x94a   :  { %v5921_v57 = vmul.f32 1.442695, %v5910_v0  ;;  %v5923_v27 = vmul.f32 1.442695, %v5911_v49  ;;  %v5925_v7 = vmul.f32 1.442695, %v5912_v3 }
 0x94b   :  { %7591 = vpow2.f32 %v5915_v24  ;;  %v5927_v32 = vmul.f32 1.442695, %v5913_v50  ;;  %v5929_v29 = vmul.f32 1.442695, %v5914_v28  ;;  %v9553_v8 = vld [vmem:[#allocation33_spill] sm:$0xff]  ;;  %v9554_v0 = vld [vmem:[#allocation30_spill] sm:$0xff] }
 0x94c   :  { %7593 = vpow2.f32 %v5917_v11  ;;  %v9555_v3 = vld [vmem:[#allocation14_spill] sm:$0xff] }
 0x94d   :  { %7595 = vpow2.f32 %v5919_v38 }
 0x94e   :  { %7597 = vpow2.f32 %v5921_v57 }
 0x94f   :  { %7599 = vpow2.f32 %v5923_v27 }
 0x950   :  { %7601 = vpow2.f32 %v5925_v7 }
 0x951   :  { %7603 = vpow2.f32 %v5927_v32 }
 0x952   :  { %7605 = vpow2.f32 %v5929_v29 }
 0x955   :  { %v7592_v1 = vpop.eup %7591 }
 0x956   :  { %v7594_v47 = vpop.eup %7593 }
 0x957   :  { %v5931_v62 = vadd.f32 %v7594_v47, %v7592_v1  ;;  %v7596_v5 = vpop.eup %7595 }
 0x958   :  { %v7598_v55 = vpop.eup %7597 }
 0x959   :  { %v5932_v48 = vadd.f32 %v7596_v5, %v5931_v62  ;;  %v7600_v31 = vpop.eup %7599 }
 0x95a   :  { %v7602_v37 = vpop.eup %7601 }
 0x95b   :  { %v5933_v35 = vadd.f32 %v7598_v55, %v5932_v48  ;;  %v7604_v2 = vpop.eup %7603 }
 0x95c   :  { %v7606_v39 = vpop.eup %7605 }
 0x95d   :  { %v5934_v4 = vadd.f32 %v7600_v31, %v5933_v35 }
 0x95f   :  { %v5935_v6 = vadd.f32 %v7602_v37, %v5934_v4 }
 0x961   :  { %v5936_v53 = vadd.f32 %v7604_v2, %v5935_v6 }
 0x963   :  { %v5937_v51 = vadd.f32 %v7606_v39, %v5936_v53 }
 0x965   :  { %7607 = vrcp.f32 %v5937_v51 }
 0x96f   :  { %v7608_v41 = vpop.eup %7607 }
 0x970   :  { %v5939_v52 = vmul.f32 %v7608_v41, %v7592_v1  ;;  %v5940_v21 = vmul.f32 %v7608_v41, %v7594_v47  ;;  %v5941_v25 = vmul.f32 %v7608_v41, %v7596_v5  ;;  %v5942_v22 = vmul.f32 %v7608_v41, %v7598_v55 }
 0x971   :  { %v5943_v23 = vmul.f32 %v7608_v41, %v7600_v31  ;;  %v5944_v63 = vmul.f32 %v7608_v41, %v7602_v37  ;;  %v5945_v10 = vmul.f32 %v7608_v41, %v7604_v2 }
 0x972   :  { %v5962_v26 = vmul.f32 %v5939_v52, %v9277_v61  ;;  %v5963_v30 = vmul.f32 %v5940_v21, %v9253_v34  ;;  %v5964_v15 = vmul.f32 %v5941_v25, %v9147_v43  ;;  %v5947_v59 = vmul.f32 %v5939_v52, %v9547_v9  ;;  %v9552_v34 = vld [vmem:[#allocation37_spill] sm:$0xff] }
 0x973   :  { %v5948_v18 = vmul.f32 %v5940_v21, %v9548_v42  ;;  %v5965_v54 = vmul.f32 %v5942_v22, %v9549_v19  ;;  %v5949_v60 = vmul.f32 %v5941_v25, %v9550_v40  ;;  %v5966_v61 = vmul.f32 %v5943_v23, %v9551_v12 }
 0x974   :  { %v5970_v16 = vadd.f32 %v5963_v30, %v5962_v26  ;;  %v5950_v17 = vmul.f32 %v5942_v22, %v9552_v34  ;;  %v5946_v43 = vmul.f32 %v7608_v41, %v7606_v39  ;;  %v5967_v44 = vmul.f32 %v5944_v63, %v9553_v8 }
 0x975   :  { %v5955_v36 = vadd.f32 %v5948_v18, %v5947_v59  ;;  %v5951_v24 = vmul.f32 %v5943_v23, %v9554_v0  ;;  %v5968_v49 = vmul.f32 %v5945_v10, %v9546_v33  ;;  %v5952_v57 = vmul.f32 %v5944_v63, %v9555_v3 }
 0x976   :  { %v5971_v56 = vadd.f32 %v5970_v16, %v5964_v15  ;;  %v5969_v27 = vmul.f32 %v5946_v43, %v9545_v58  ;;  %v5953_v7 = vmul.f32 %v5945_v10, %v9208_v45  ;;  %v5954_v1 = vmul.f32 %v5946_v43, %v9270_v46  ;;  %v6837_v58 = vld [vmem:[%s9363_s10] ss:$0 sm:$0xff] }
 0x977   :  { %v5956_v14 = vadd.f32 %v5955_v36, %v5949_v60 }
 0x978   :  { %v5972_v13 = vadd.f32 %v5971_v56, %v5965_v54 }
 0x979   :  { %v5957_v11 = vadd.f32 %v5956_v14, %v5950_v17 }
 0x97a   :  { %v5973_v20 = vadd.f32 %v5972_v13, %v5966_v61 }
 0x97b   :  { %v5958_v50 = vadd.f32 %v5957_v11, %v5951_v24 }
 0x97c   :  { %v5974_v38 = vadd.f32 %v5973_v20, %v5967_v44 }
 0x97d   :  { %v5959_v32 = vadd.f32 %v5958_v50, %v5952_v57 }
 0x97e   :  { %v5975_v28 = vadd.f32 %v5974_v38, %v5968_v49 }
 0x97f   :  { %v5960_v47 = vadd.f32 %v5959_v32, %v5953_v7 }
 0x980   :  { %v5976_v29 = vadd.f32 %v5975_v28, %v5969_v27 }
 0x981   :  { %v5961_v5 = vadd.f32 %v5960_v47, %v5954_v1 }
 0x982   :  { %v5994_v62 = vpack.c.bf16 %v5976_v29, %v5976_v29 }
 0x983   :  { %v5977_v48 = vpack.c.bf16 %v5961_v5, %v5961_v5 }
 0x984   :  { %6905 = vmatmul.mubr.bf16.vlgmr.msra.gmra.mrb[96].mxu0 %v5994_v62 }
 0x985   :  { %6925 = vmatmul.mubr.bf16.vlgmr.msra.gmra.mrb[96].mxu1 %v5977_v48 }
 0xa57   :  { %v6093_v33 = vpop.f32.mrb[96].mxu0 }
 0xa58   :  { %v6906_v55 = vpop.f32.mrb[97].mxu0  ;;  %v6181_v35 = vpop.f32.mrb[96].mxu1 }
 0xa59   :  { %v6096_v31 = vpop.f32.mrb[98].mxu0  ;;  %v6182_v4 = vadd.f32 %v6181_v35, %v6093_v33  ;;  %v6926_v45 = vpop.f32.mrb[97].mxu1 }
 0xa5a   :  { %v6907_v37 = vpop.f32.mrb[99].mxu0  ;;  %v6184_v6 = vpop.f32.mrb[98].mxu1 }
 0xa5b   :  { %v6194_v46 = vadd.f32 %v6837_v58, %v6182_v4  ;;  %v6927_v2 = vpop.f32.mrb[99].mxu1 }
 0xa5d   :  { %6196 = vst.msk [vmem:[%s9364_s11] sm:$0xff] %vm6195_vm2, %v6194_v46 }
 0xa5e   :  { %6201 = vsyncpa [#allocation7], 1 }
 0xa5f   :  { %6202 = vsyncpa [#allocation9], 1 }

</bundles_post_ra>
